<compile_context>
chip_gen: v5e
topology: v5e:2x2
jax: 0.10.0
libtpu: 0.0.40
codegen_flags: <defaults>
</compile_context>

<pallas_src>
import functools

import jax
import jax.numpy as jnp
from jax import lax
from jax.experimental import pallas as pl
from jax.experimental.pallas import tpu as pltpu

BN_EPS = 1e-5
LANE = 128
# bf16 MXU inputs (f32 accumulation) halve HBM/VMEM traffic on v6e/v7x; kept at
# f32 here so the self-test matches the f32 PyTorch semantics tightly.
MATMUL_INPUT_DTYPE = jnp.float32
VMEM_LIMIT = 32 * 1024 * 1024


# ----------------------------- math helpers -----------------------------

def _hswish(x):
    return x * jnp.clip(x + 3.0, 0.0, 6.0) * (1.0 / 6.0)


def _hsigmoid(x):
    return jnp.clip(x + 3.0, 0.0, 6.0) * (1.0 / 6.0)


def _rup(c, m=LANE):
    return ((c + m - 1) // m) * m


def _pad_to(a, shape):
    pads = [(0, t - s) for s, t in zip(a.shape, shape)]
    if all(p == (0, 0) for p in pads):
        return a
    return jnp.pad(a, pads)


def _pick_row_tile(m, cap=256):
    """Largest row tile (multiple of 8, divides m, <= cap); fallback: full m."""
    t = min(cap, m)
    while t > 8 and m % t != 0:
        t //= 2
    return t if (m % t == 0 and t % 8 == 0) else m


def _fold_bn(sum_partials, sq_partials, count, gamma, beta):
    """Reduce per-tile partial sums -> folded BN scale/shift (single-pass stats)."""
    s = jnp.sum(sum_partials, axis=0, keepdims=True)        # (1, C)
    q = jnp.sum(sq_partials, axis=0, keepdims=True)          # (1, C)
    mean = s / count
    var = jnp.maximum(q / count - mean * mean, 0.0)
    scale = gamma * lax.rsqrt(var + BN_EPS)
    shift = beta - mean * scale
    return scale, shift


def _cparams(*sem):
    return pltpu.CompilerParams(dimension_semantics=sem,
                                vmem_limit_bytes=VMEM_LIMIT)


# ----------------------------- Pallas kernels -----------------------------

def expand_kernel(x_ref, w_ref, z_ref, s_ref, q_ref):
    """1x1 expand conv as a row-tiled matmul + per-tile BN1 partial stats."""
    z = jnp.dot(x_ref[...].astype(MATMUL_INPUT_DTYPE),
                w_ref[...].astype(MATMUL_INPUT_DTYPE),
                preferred_element_type=jnp.float32)
    z_ref[...] = z
    c = z.shape[-1]
    s_ref[0:1, :] = jnp.sum(z, axis=0, keepdims=True)
    s_ref[1:8, :] = jnp.zeros((7, c), jnp.float32)
    q_ref[0:1, :] = jnp.sum(z * z, axis=0, keepdims=True)
    q_ref[1:8, :] = jnp.zeros((7, c), jnp.float32)


def make_dw_kernel(K, stride, H, W, Ho, Wo, pad_hw, C):
    """Depthwise KxK conv with fused BN1-apply + HSwish on its input.

    Halo is built in a VMEM scratch (no HBM pad), taps accumulate per
    output-row strip (bounded vreg live ranges), partial BN2 stats emitted.
    """
    rows = 8 if Ho % 8 == 0 else Ho  # output-row strip size

    def kernel(z1_ref, w_ref, sc1_ref, sh1_ref, z2_ref, s_ref, q_ref, xp_ref):
        # BN1 (pre-folded scale/shift) + HSwish applied on the fly.
        xp_ref[...] = jnp.zeros(xp_ref.shape, xp_ref.dtype)
        y1 = _hswish(z1_ref[...] * sc1_ref[...].reshape(1, 1, C)
                     + sh1_ref[...].reshape(1, 1, C))               # (H, W, C)
        xp_ref[pad_hw:pad_hw + H, pad_hw:pad_hw + W, :] = y1

        s_tot = jnp.zeros((1, C), jnp.float32)
        q_tot = jnp.zeros((1, C), jnp.float32)
        for r0 in range(0, Ho, rows):
            acc = jnp.zeros((rows, Wo, C), jnp.float32)
            for t in range(K * K):                                  # static taps
                kh, kw = t // K, t % K
                if stride == 1:
                    sl = xp_ref[r0 + kh:r0 + kh + rows, kw:kw + Wo, :]
                else:
                    # stride>1: strided sublane reads; see review note about
                    # pre-deinterleaving for production stride-2 blocks.
                    sl = xp_ref[pl.ds(r0 * stride + kh, rows, stride),
                                pl.ds(kw, Wo, stride), :]
                acc = acc + sl * w_ref[t].reshape(1, 1, C)
            z2_ref[r0:r0 + rows] = acc
            flat = acc.reshape(rows * Wo, C)
            s_tot = s_tot + jnp.sum(flat, axis=0, keepdims=True)
            q_tot = q_tot + jnp.sum(flat * flat, axis=0, keepdims=True)

        s_ref[0:1, :] = s_tot
        s_ref[1:8, :] = jnp.zeros((7, C), jnp.float32)
        q_ref[0:1, :] = q_tot
        q_ref[1:8, :] = jnp.zeros((7, C), jnp.float32)

    return kernel


def pool_kernel(z2_ref, sc2_ref, sh2_ref, pool_ref, gram_ref):
    """Per-image: BN2-apply + HSwish, SE pooling partials, and Y2^T Y2 Gram.

    The Gram matrix lets BN3's batch statistics be computed analytically
    (the 1x1 projection is linear), avoiding another pass over the output.
    """
    y2 = _hswish(z2_ref[...] * sc2_ref[...] + sh2_ref[...])          # (HWo, C)
    c = y2.shape[-1]
    pool_ref[0:1, :] = jnp.sum(y2, axis=0, keepdims=True)
    pool_ref[1:8, :] = jnp.zeros((7, c), jnp.float32)
    gram_ref[...] = lax.dot_general(y2, y2, (((0,), (0,)), ((), ())),
                                    preferred_element_type=jnp.float32)


def se_excite_kernel(pool_ref, wsq_ref, bsq_ref, wex_ref, bex_ref, e_ref):
    """SE squeeze/excite MLP (tiny): ReLU + HSigmoid on pooled features."""
    s = jnp.dot(pool_ref[...], wsq_ref[...],
                preferred_element_type=jnp.float32) + bsq_ref[...]
    s = jnp.maximum(s, 0.0)
    t = jnp.dot(s, wex_ref[...],
                preferred_element_type=jnp.float32) + bex_ref[...]
    e_ref[...] = _hsigmoid(t)


def make_project_kernel(use_res):
    """Fused BN2-apply + HSwish + SE scale + 1x1 project + BN3 + residual."""

    def kernel(z2_ref, sc2_ref, sh2_ref, e_ref, w2_ref, sc3_ref, sh3_ref, *rest):
        if use_res:
            res_ref, o_ref = rest
        else:
            (o_ref,) = rest
        n = pl.program_id(0)
        y2 = _hswish(z2_ref[...] * sc2_ref[...] + sh2_ref[...])      # (TRO, C)
        y3 = y2 * e_ref[pl.ds(n, 1), :]                              # SE scale
        z3 = jnp.dot(y3.astype(MATMUL_INPUT_DTYPE),
                     w2_ref[...].astype(MATMUL_INPUT_DTYPE),
                     preferred_element_type=jnp.float32)
        out = z3 * sc3_ref[...] + sh3_ref[...]                       # BN3
        if use_res:
            out = out + res_ref[...]                                 # residual
        o_ref[...] = out

    return kernel


# ----------------------------- IRBlock forward -----------------------------

def init_params(key, cin, cout, k, expansion_rate, se_reduction=4):
    chid = int(cin * expansion_rate)
    csq = chid // se_reduction
    ks = jax.random.split(key, 13)
    return {
        # point_wise (1x1 conv, no bias) + BN
        "w_pw": 0.2 * jax.random.normal(ks[0], (cin, chid), jnp.float32),
        "g1": 1.0 + 0.1 * jax.random.normal(ks[1], (1, chid), jnp.float32),
        "b1": 0.1 * jax.random.normal(ks[2], (1, chid), jnp.float32),
        # depthwise KxK conv (groups=chid, no bias) + BN
        "w_dw": 0.2 * jax.random.normal(ks[3], (k * k, chid), jnp.float32),
        "g2": 1.0 + 0.1 * jax.random.normal(ks[4], (1, chid), jnp.float32),
        "b2": 0.1 * jax.random.normal(ks[5], (1, chid), jnp.float32),
        # SE module (1x1 convs with bias)
        "w_sq": 0.2 * jax.random.normal(ks[6], (chid, csq), jnp.float32),
        "b_sq": 0.1 * jax.random.normal(ks[7], (1, csq), jnp.float32),
        "w_ex": 0.2 * jax.random.normal(ks[8], (csq, chid), jnp.float32),
        "b_ex": 0.1 * jax.random.normal(ks[9], (1, chid), jnp.float32),
        # point_wise_1 (1x1 conv, no bias) + BN (no activation)
        "w_pw1": 0.2 * jax.random.normal(ks[10], (chid, cout), jnp.float32),
        "g3": 1.0 + 0.1 * jax.random.normal(ks[11], (1, cout), jnp.float32),
        "b3": 0.1 * jax.random.normal(ks[12], (1, cout), jnp.float32),
    }


def irblock_forward(x, p, *, kernel_size, stride):
    N, H, W, Cin = x.shape
    Chid = p["w_pw"].shape[1]
    Cout = p["w_pw1"].shape[1]
    Csq = p["w_sq"].shape[1]
    K = kernel_size
    pad_hw = K // 2
    Ho = (H + 2 * pad_hw - K) // stride + 1
    Wo = (W + 2 * pad_hw - K) // stride + 1
    use_res = (stride == 1) and (Cin == Cout)

    # lane-dense channel padding (to multiples of 128), carried through all stages
    Ci, C, Co, Cs = _rup(Cin), _rup(Chid), _rup(Cout), _rup(Csq)
    M, Mo, HWo = N * H * W, N * Ho * Wo, Ho * Wo

    x_rows = _pad_to(x, (N, H, W, Ci)).reshape(M, Ci)
    w1 = _pad_to(p["w_pw"], (Ci, C))
    g1, b1 = _pad_to(p["g1"], (1, C)), _pad_to(p["b1"], (1, C))
    wdw = _pad_to(p["w_dw"], (K * K, C))
    g2, b2 = _pad_to(p["g2"], (1, C)), _pad_to(p["b2"], (1, C))
    wsq, bsq = _pad_to(p["w_sq"], (C, Cs)), _pad_to(p["b_sq"], (1, Cs))
    wex, bex = _pad_to(p["w_ex"], (Cs, C)), _pad_to(p["b_ex"], (1, C))
    w2 = _pad_to(p["w_pw1"], (C, Co))
    g3, b3 = _pad_to(p["g3"], (1, Co)), _pad_to(p["b3"], (1, Co))

    # ---------------- stage 1: expand matmul (row tiles, parallel) ----------------
    TR = _pick_row_tile(M)
    G = M // TR
    z1, s1, q1 = pl.pallas_call(
        expand_kernel,
        grid=(G,),
        in_specs=[pl.BlockSpec((TR, Ci), lambda i: (i, 0)),
                  pl.BlockSpec((Ci, C), lambda i: (0, 0))],
        out_specs=(pl.BlockSpec((TR, C), lambda i: (i, 0)),
                   pl.BlockSpec((8, C), lambda i: (i, 0)),
                   pl.BlockSpec((8, C), lambda i: (i, 0))),
        out_shape=(jax.ShapeDtypeStruct((M, C), jnp.float32),
                   jax.ShapeDtypeStruct((G * 8, C), jnp.float32),
                   jax.ShapeDtypeStruct((G * 8, C), jnp.float32)),
        compiler_params=_cparams("parallel"),
        cost_estimate=pl.CostEstimate(
            flops=2 * M * Ci * C, transcendentals=0,
            bytes_accessed=4 * (M * Ci + Ci * C + M * C + 16 * G * C)),
    )(x_rows, w1)
    sc1, sh1 = _fold_bn(s1, q1, M, g1, b1)

    # ------------- stage 2: depthwise + fused BN1-apply + HSwish (per image) -------------
    z1_img = z1.reshape(N, H, W, C)
    z2, s2, q2 = pl.pallas_call(
        make_dw_kernel(K, stride, H, W, Ho, Wo, pad_hw, C),
        grid=(N,),
        in_specs=[pl.BlockSpec((None, H, W, C), lambda n: (n, 0, 0, 0)),
                  pl.BlockSpec((K * K, C), lambda n: (0, 0)),
                  pl.BlockSpec((1, C), lambda n: (0, 0)),
                  pl.BlockSpec((1, C), lambda n: (0, 0))],
        out_specs=(pl.BlockSpec((None, Ho, Wo, C), lambda n: (n, 0, 0, 0)),
                   pl.BlockSpec((8, C), lambda n: (n, 0)),
                   pl.BlockSpec((8, C), lambda n: (n, 0))),
        out_shape=(jax.ShapeDtypeStruct((N, Ho, Wo, C), jnp.float32),
                   jax.ShapeDtypeStruct((N * 8, C), jnp.float32),
                   jax.ShapeDtypeStruct((N * 8, C), jnp.float32)),
        scratch_shapes=[pltpu.VMEM((H + 2 * pad_hw, W + 2 * pad_hw, C),
                                   jnp.float32)],
        compiler_params=_cparams("parallel"),
        cost_estimate=pl.CostEstimate(
            flops=2 * K * K * Mo * C, transcendentals=0,
            bytes_accessed=4 * (M * C + Mo * C + K * K * C + 16 * N * C)),
    )(z1_img, wdw, sc1, sh1)
    sc2, sh2 = _fold_bn(s2, q2, Mo, g2, b2)

    # ------- stage 3: BN2-apply + SE pooling partials + Gram (analytic BN3 stats) -------
    z2_rows = z2.reshape(N, HWo, C)
    pool8, gram = pl.pallas_call(
        pool_kernel,
        grid=(N,),
        in_specs=[pl.BlockSpec((None, HWo, C), lambda n: (n, 0, 0)),
                  pl.BlockSpec((1, C), lambda n: (0, 0)),
                  pl.BlockSpec((1, C), lambda n: (0, 0))],
        out_specs=(pl.BlockSpec((8, C), lambda n: (n, 0)),
                   pl.BlockSpec((None, C, C), lambda n: (n, 0, 0))),
        out_shape=(jax.ShapeDtypeStruct((N * 8, C), jnp.float32),
                   jax.ShapeDtypeStruct((N, C, C), jnp.float32)),
        compiler_params=_cparams("parallel"),
        cost_estimate=pl.CostEstimate(
            flops=2 * Mo * C * C, transcendentals=0,
            bytes_accessed=4 * (Mo * C + N * C * C + 8 * N * C)),
    )(z2_rows, sc2, sh2)
    pools = pool8.reshape(N, 8, C).sum(axis=1)          # (N, C): sum_hw y2
    pooled_mean = pools / float(HWo)                    # AdaptiveAvgPool2d(1)

    # ---------------- stage 4: tiny SE excitation MLP (single block) ----------------
    e = pl.pallas_call(
        se_excite_kernel,
        grid=(1,),
        in_specs=[pl.BlockSpec((N, C), lambda i: (0, 0)),
                  pl.BlockSpec((C, Cs), lambda i: (0, 0)),
                  pl.BlockSpec((1, Cs), lambda i: (0, 0)),
                  pl.BlockSpec((Cs, C), lambda i: (0, 0)),
                  pl.BlockSpec((1, C), lambda i: (0, 0))],
        out_specs=pl.BlockSpec((N, C), lambda i: (0, 0)),
        out_shape=jax.ShapeDtypeStruct((N, C), jnp.float32),
    )(pooled_mean, wsq, bsq, wex, bex)

    # analytic BN3 batch statistics: z3 = (y2 * e) @ W2 is linear in y2, so its
    # row-mean and second moment follow from pools, e and the per-image Grams.
    mean_y3 = jnp.sum(e * pools, axis=0) / float(Mo)              # (C,)
    mean3 = mean_y3 @ w2                                          # (Co,)
    m2 = jnp.einsum("nk,nl,nkl->kl", e, e, gram) / float(Mo)      # (C, C)
    ez3sq = jnp.sum(w2 * (m2 @ w2), axis=0)                       # (Co,)
    var3 = jnp.maximum(ez3sq - mean3 * mean3, 0.0)
    sc3 = g3 * lax.rsqrt(var3 + BN_EPS)                           # (1, Co)
    sh3 = b3 - mean3[None, :] * sc3                               # (1, Co)

    # ------ stage 5: fused BN2-apply + SE scale + project + BN3 + residual ------
    TRO = _pick_row_tile(HWo)
    T = HWo // TRO
    proj_inputs = [z2_rows, sc2, sh2, e, w2, sc3, sh3]
    in_specs = [pl.BlockSpec((None, TRO, C), lambda n, t: (n, t, 0)),
                pl.BlockSpec((1, C), lambda n, t: (0, 0)),
                pl.BlockSpec((1, C), lambda n, t: (0, 0)),
                pl.BlockSpec((N, C), lambda n, t: (0, 0)),
                pl.BlockSpec((C, Co), lambda n, t: (0, 0)),
                pl.BlockSpec((1, Co), lambda n, t: (0, 0)),
                pl.BlockSpec((1, Co), lambda n, t: (0, 0))]
    if use_res:
        # residual only exists when use_res; no zero-tensor DMA otherwise.
        res_rows = x_rows.reshape(N, HWo, Ci)           # Ci == Co, H*W == HWo
        proj_inputs.append(res_rows)
        in_specs.append(pl.BlockSpec((None, TRO, Co), lambda n, t: (n, t, 0)))

    out = pl.pallas_call(
        make_project_kernel(use_res),
        grid=(N, T),
        in_specs=in_specs,
        out_specs=pl.BlockSpec((None, TRO, Co), lambda n, t: (n, t, 0)),
        out_shape=jax.ShapeDtypeStruct((N, HWo, Co), jnp.float32),
        compiler_params=_cparams("parallel", "parallel"),
        cost_estimate=pl.CostEstimate(
            flops=2 * Mo * C * Co, transcendentals=0,
            bytes_accessed=4 * (Mo * C + C * Co + Mo * Co * (2 if use_res else 1))),
    )(*proj_inputs)

    return out.reshape(N, Ho, Wo, Co)[..., :Cout]


# ----------------------------- plain-JAX reference -----------------------------

def _bn_rows_ref(y, gamma, beta):
    mean = jnp.mean(y, axis=0, keepdims=True)
    var = jnp.mean((y - mean) ** 2, axis=0, keepdims=True)
    return gamma * (y - mean) * lax.rsqrt(var + BN_EPS) + beta


def reference_forward(x, p, *, kernel_size, stride):
    N, H, W, Cin = x.shape
    Chid = p["w_pw"].shape[1]
    Cout = p["w_pw1"].shape[1]
    K = kernel_size
    pad_hw = K // 2
    Ho = (H + 2 * pad_hw - K) // stride + 1
    Wo = (W + 2 * pad_hw - K) // stride + 1

    xf = x.reshape(N * H * W, Cin)
    y = _hswish(_bn_rows_ref(xf @ p["w_pw"], p["g1"], p["b1"])).reshape(N, H, W, Chid)

    xp = jnp.pad(y, ((0, 0), (pad_hw, pad_hw), (pad_hw, pad_hw), (0, 0)))
    acc = jnp.zeros((N, Ho, Wo, Chid), jnp.float32)
    for kh in range(K):
        for kw in range(K):
            sl = xp[:, kh:kh + (Ho - 1) * stride + 1:stride,
                       kw:kw + (Wo - 1) * stride + 1:stride, :]
            acc = acc + sl * p["w_dw"][kh * K + kw].reshape(1, 1, 1, Chid)
    y = _hswish(_bn_rows_ref(acc.reshape(-1, Chid), p["g2"], p["b2"]))
    y = y.reshape(N, Ho, Wo, Chid)

    pooled = jnp.mean(y, axis=(1, 2))
    s = jnp.maximum(pooled @ p["w_sq"] + p["b_sq"], 0.0)
    e = _hsigmoid(s @ p["w_ex"] + p["b_ex"])
    y = y * e[:, None, None, :]

    z = _bn_rows_ref(y.reshape(-1, Chid) @ p["w_pw1"], p["g3"], p["b3"])
    if stride == 1 and Cin == Cout:
        z = z + xf
    return z.reshape(N, Ho, Wo, Cout)


# ----------------------------- main -----------------------------

if __name__ == "__main__":
    # IRBlock(in=8, out=8, kernel_size=3, stride=1, activation='hswish',
    #         se=True, expansion_rate=2, point_group=1) -> use_res_connect=True
    N, H, W = 2, 16, 16
    Cin = Cout = 8
    K = 3
    STRIDE = 1
    EXPANSION = 2

    key = jax.random.PRNGKey(0)
    kx, kp = jax.random.split(key)
    x = jax.random.normal(kx, (N, H, W, Cin), jnp.float32)  # NHWC (== NCHW [2,8,16,16])
    params = init_params(kp, Cin, Cout, K, EXPANSION)

    fwd = jax.jit(functools.partial(irblock_forward, kernel_size=K, stride=STRIDE))
    out = jax.block_until_ready(fwd(x, params))

    ref = reference_forward(x, params, kernel_size=K, stride=STRIDE)
    assert out.shape == (N, H, W, Cout), out.shape
    max_err = float(jnp.max(jnp.abs(out - ref)))
    assert jnp.allclose(out, ref, atol=2e-3, rtol=2e-3), ("max abs diff", max_err)

    print("KERNEL_OK")
</pallas_src>

<mosaic_0001>
module attributes {stable_mosaic.version = 11 : i64} {
  func.func @expand_kernel(%arg0: i32, %arg1: memref<256x128xf32, #tpu.memory_space<vmem>>, %arg2: memref<128x128xf32, #tpu.memory_space<vmem>>, %arg3: memref<256x128xf32, #tpu.memory_space<vmem>>, %arg4: memref<8x128xf32, #tpu.memory_space<vmem>>, %arg5: memref<8x128xf32, #tpu.memory_space<vmem>>) attributes {dimension_semantics = [#tpu.dimension_semantics<parallel>], iteration_bounds = array<i64: 2>, scalar_prefetch = 0 : i64, scratch_operands = 0 : i64, tpu.core_type = #tpu.core_type<tc>, window_params = [{transform_indices = @transform_0, window_bounds = array<i64: 256, 128>}, {pipeline_mode = #tpu.pipeline_mode<synchronous>, transform_indices = @transform_1, window_bounds = array<i64: 128, 128>}, {transform_indices = @transform_2, window_bounds = array<i64: 256, 128>}, {transform_indices = @transform_3, window_bounds = array<i64: 8, 128>}, {transform_indices = @transform_4, window_bounds = array<i64: 8, 128>}]} {
    %c0 = arith.constant 0 : index
    %c0_0 = arith.constant 0 : index
    %0 = vector.load %arg1[%c0, %c0_0] : memref<256x128xf32, #tpu.memory_space<vmem>>, vector<256x128xf32>
    %c0_1 = arith.constant 0 : index
    %c0_2 = arith.constant 0 : index
    %1 = vector.load %arg2[%c0_1, %c0_2] : memref<128x128xf32, #tpu.memory_space<vmem>>, vector<128x128xf32>
    %cst = arith.constant dense<0.000000e+00> : vector<256x128xf32>
    %2 = tpu.matmul %0, %1, %cst {dimension_numbers = #tpu.dot_dimension_numbers<[1], [0], [0], [1], [0, 0, 1, 1], [], []>} : vector<256x128xf32>, vector<128x128xf32>, vector<256x128xf32> -> vector<256x128xf32>
    %c0_3 = arith.constant 0 : index
    %c0_4 = arith.constant 0 : index
    %3 = vector.load %arg3[%c0_3, %c0_4] : memref<256x128xf32, #tpu.memory_space<vmem>>, vector<256x128xf32>
    tpu.vector_store %arg3[%c0_3, %c0_4], %2 {strides = array<i32>} : memref<256x128xf32, #tpu.memory_space<vmem>>, vector<256x128xf32>,
    %cst_5 = arith.constant dense<0.000000e+00> : vector<128xf32>
    %4 = vector.multi_reduction <add>, %2, %cst_5 [0] : vector<256x128xf32> to vector<128xf32>
    %5 = vector.shape_cast %4 : vector<128xf32> to vector<1x128xf32>
    %c0_6 = arith.constant 0 : index
    %c0_7 = arith.constant 0 : index
    %6 = vector.load %arg4[%c0_6, %c0_7] : memref<8x128xf32, #tpu.memory_space<vmem>>, vector<1x128xf32>
    tpu.vector_store %arg4[%c0_6, %c0_7], %5 {strides = array<i32>} : memref<8x128xf32, #tpu.memory_space<vmem>>, vector<1x128xf32>,
    %cst_8 = arith.constant 0.000000e+00 : f32
    %7 = vector.broadcast %cst_8 : f32 to vector<7x128xf32>
    %c1 = arith.constant 1 : index
    %c0_9 = arith.constant 0 : index
    %8 = vector.load %arg4[%c1, %c0_9] : memref<8x128xf32, #tpu.memory_space<vmem>>, vector<7x128xf32>
    tpu.vector_store %arg4[%c1, %c0_9], %7 {strides = array<i32>} : memref<8x128xf32, #tpu.memory_space<vmem>>, vector<7x128xf32>,
    %9 = arith.mulf %2, %2 : vector<256x128xf32>
    %cst_10 = arith.constant dense<0.000000e+00> : vector<128xf32>
    %10 = vector.multi_reduction <add>, %9, %cst_10 [0] : vector<256x128xf32> to vector<128xf32>
    %11 = vector.shape_cast %10 : vector<128xf32> to vector<1x128xf32>
    %c0_11 = arith.constant 0 : index
    %c0_12 = arith.constant 0 : index
    %12 = vector.load %arg5[%c0_11, %c0_12] : memref<8x128xf32, #tpu.memory_space<vmem>>, vector<1x128xf32>
    tpu.vector_store %arg5[%c0_11, %c0_12], %11 {strides = array<i32>} : memref<8x128xf32, #tpu.memory_space<vmem>>, vector<1x128xf32>,
    %cst_13 = arith.constant 0.000000e+00 : f32
    %13 = vector.broadcast %cst_13 : f32 to vector<7x128xf32>
    %c1_14 = arith.constant 1 : index
    %c0_15 = arith.constant 0 : index
    %14 = vector.load %arg5[%c1_14, %c0_15] : memref<8x128xf32, #tpu.memory_space<vmem>>, vector<7x128xf32>
    tpu.vector_store %arg5[%c1_14, %c0_15], %13 {strides = array<i32>} : memref<8x128xf32, #tpu.memory_space<vmem>>, vector<7x128xf32>,
    return
  }
  func.func @transform_0(%arg0: i32) -> (i32, i32) {
    %c0_i32 = arith.constant 0 : i32
    %c0_i32_0 = arith.constant 0 : i32
    return %arg0, %c0_i32 : i32, i32
  }
  func.func @transform_1(%arg0: i32) -> (i32, i32) {
    %c0_i32 = arith.constant 0 : i32
    %c0_i32_0 = arith.constant 0 : i32
    %c0_i32_1 = arith.constant 0 : i32
    return %c0_i32, %c0_i32_0 : i32, i32
  }
  func.func @transform_2(%arg0: i32) -> (i32, i32) {
    %c0_i32 = arith.constant 0 : i32
    %c0_i32_0 = arith.constant 0 : i32
    return %arg0, %c0_i32 : i32, i32
  }
  func.func @transform_3(%arg0: i32) -> (i32, i32) {
    %c0_i32 = arith.constant 0 : i32
    %c0_i32_0 = arith.constant 0 : i32
    return %arg0, %c0_i32 : i32, i32
  }
  func.func @transform_4(%arg0: i32) -> (i32, i32) {
    %c0_i32 = arith.constant 0 : i32
    %c0_i32_0 = arith.constant 0 : i32
    return %arg0, %c0_i32 : i32, i32
  }
}

module attributes {stable_mosaic.version = 11 : i64} {
  func.func @kernel(%arg0: i32, %arg1: memref<1x16x16x128xf32, #tpu.memory_space<vmem>>, %arg2: memref<9x128xf32, #tpu.memory_space<vmem>>, %arg3: memref<1x128xf32, #tpu.memory_space<vmem>>, %arg4: memref<1x128xf32, #tpu.memory_space<vmem>>, %arg5: memref<1x16x16x128xf32, #tpu.memory_space<vmem>>, %arg6: memref<8x128xf32, #tpu.memory_space<vmem>>, %arg7: memref<8x128xf32, #tpu.memory_space<vmem>>, %arg8: memref<18x18x128xf32, #tpu.memory_space<vmem>>) attributes {dimension_semantics = [#tpu.dimension_semantics<parallel>], iteration_bounds = array<i64: 2>, scalar_prefetch = 0 : i64, scratch_operands = 1 : i64, tpu.core_type = #tpu.core_type<tc>, window_params = [{transform_indices = @transform_0, window_bounds = array<i64: 1, 16, 16, 128>}, {pipeline_mode = #tpu.pipeline_mode<synchronous>, transform_indices = @transform_1, window_bounds = array<i64: 9, 128>}, {pipeline_mode = #tpu.pipeline_mode<synchronous>, transform_indices = @transform_2, window_bounds = array<i64: 1, 128>}, {pipeline_mode = #tpu.pipeline_mode<synchronous>, transform_indices = @transform_3, window_bounds = array<i64: 1, 128>}, {transform_indices = @transform_4, window_bounds = array<i64: 1, 16, 16, 128>}, {transform_indices = @transform_5, window_bounds = array<i64: 8, 128>}, {transform_indices = @transform_6, window_bounds = array<i64: 8, 128>}]} {
    %cst = arith.constant 0.000000e+00 : f32
    %0 = vector.broadcast %cst : f32 to vector<18x18x128xf32>
    %c0 = arith.constant 0 : index
    %c0_0 = arith.constant 0 : index
    %c0_1 = arith.constant 0 : index
    %1 = vector.load %arg8[%c0, %c0_0, %c0_1] : memref<18x18x128xf32, #tpu.memory_space<vmem>>, vector<18x18x128xf32>
    tpu.vector_store %arg8[%c0, %c0_0, %c0_1], %0 {strides = array<i32>} : memref<18x18x128xf32, #tpu.memory_space<vmem>>, vector<18x18x128xf32>,
    %c0_2 = arith.constant 0 : index
    %c0_3 = arith.constant 0 : index
    %c0_4 = arith.constant 0 : index
    %c0_5 = arith.constant 0 : index
    %2 = vector.load %arg1[%c0_2, %c0_3, %c0_4, %c0_5] : memref<1x16x16x128xf32, #tpu.memory_space<vmem>>, vector<1x16x16x128xf32>
    %3 = vector.shape_cast %2 : vector<1x16x16x128xf32> to vector<16x16x128xf32>
    %c0_6 = arith.constant 0 : index
    %c0_7 = arith.constant 0 : index
    %4 = vector.load %arg3[%c0_6, %c0_7] : memref<1x128xf32, #tpu.memory_space<vmem>>, vector<1x128xf32>
    %5 = vector.shape_cast %4 : vector<1x128xf32> to vector<1x1x128xf32>
    %6 = vector.broadcast %5 : vector<1x1x128xf32> to vector<16x16x128xf32>
    %7 = arith.mulf %3, %6 : vector<16x16x128xf32>
    %c0_8 = arith.constant 0 : index
    %c0_9 = arith.constant 0 : index
    %8 = vector.load %arg4[%c0_8, %c0_9] : memref<1x128xf32, #tpu.memory_space<vmem>>, vector<1x128xf32>
    %9 = vector.shape_cast %8 : vector<1x128xf32> to vector<1x1x128xf32>
    %10 = vector.broadcast %9 : vector<1x1x128xf32> to vector<16x16x128xf32>
    %11 = arith.addf %7, %10 : vector<16x16x128xf32>
    %cst_10 = arith.constant 3.000000e+00 : f32
    %12 = vector.broadcast %cst_10 : f32 to vector<16x16x128xf32>
    %13 = arith.addf %11, %12 : vector<16x16x128xf32>
    %cst_11 = arith.constant 0.000000e+00 : f32
    %cst_12 = arith.constant 6.000000e+00 : f32
    %14 = vector.broadcast %cst_11 : f32 to vector<16x16x128xf32>
    %15 = arith.maximumf %14, %13 : vector<16x16x128xf32>
    %16 = vector.broadcast %cst_12 : f32 to vector<16x16x128xf32>
    %17 = arith.minimumf %16, %15 : vector<16x16x128xf32>
    %18 = arith.mulf %11, %17 : vector<16x16x128xf32>
    %cst_13 = arith.constant 0.166666672 : f32
    %19 = vector.broadcast %cst_13 : f32 to vector<16x16x128xf32>
    %20 = arith.mulf %18, %19 : vector<16x16x128xf32>
    %c1 = arith.constant 1 : index
    %c1_14 = arith.constant 1 : index
    %c0_15 = arith.constant 0 : index
    %21 = vector.load %arg8[%c1, %c1_14, %c0_15] : memref<18x18x128xf32, #tpu.memory_space<vmem>>, vector<16x16x128xf32>
    tpu.vector_store %arg8[%c1, %c1_14, %c0_15], %20 {strides = array<i32>} : memref<18x18x128xf32, #tpu.memory_space<vmem>>, vector<16x16x128xf32>,
    %cst_16 = arith.constant 0.000000e+00 : f32
    %22 = vector.broadcast %cst_16 : f32 to vector<1x128xf32>
    %cst_17 = arith.constant 0.000000e+00 : f32
    %23 = vector.broadcast %cst_17 : f32 to vector<1x128xf32>
    %cst_18 = arith.constant 0.000000e+00 : f32
    %24 = vector.broadcast %cst_18 : f32 to vector<8x16x128xf32>
    %c0_19 = arith.constant 0 : index
    %c0_20 = arith.constant 0 : index
    %c0_21 = arith.constant 0 : index
    %25 = vector.load %arg8[%c0_19, %c0_20, %c0_21] : memref<18x18x128xf32, #tpu.memory_space<vmem>>, vector<8x16x128xf32>
    %c0_22 = arith.constant 0 : index
    %c0_23 = arith.constant 0 : index
    %26 = vector.load %arg2[%c0_22, %c0_23] : memref<9x128xf32, #tpu.memory_space<vmem>>, vector<1x128xf32>
    %27 = vector.shape_cast %26 : vector<1x128xf32> to vector<128xf32>
    %28 = vector.shape_cast %27 : vector<128xf32> to vector<1x1x128xf32>
    %29 = vector.broadcast %28 : vector<1x1x128xf32> to vector<8x16x128xf32>
    %30 = arith.mulf %25, %29 : vector<8x16x128xf32>
    %31 = arith.addf %24, %30 : vector<8x16x128xf32>
    %c0_24 = arith.constant 0 : index
    %c1_25 = arith.constant 1 : index
    %c0_26 = arith.constant 0 : index
    %32 = vector.load %arg8[%c0_24, %c1_25, %c0_26] : memref<18x18x128xf32, #tpu.memory_space<vmem>>, vector<8x16x128xf32>
    %c1_27 = arith.constant 1 : index
    %c0_28 = arith.constant 0 : index
    %33 = vector.load %arg2[%c1_27, %c0_28] : memref<9x128xf32, #tpu.memory_space<vmem>>, vector<1x128xf32>
    %34 = vector.shape_cast %33 : vector<1x128xf32> to vector<128xf32>
    %35 = vector.shape_cast %34 : vector<128xf32> to vector<1x1x128xf32>
    %36 = vector.broadcast %35 : vector<1x1x128xf32> to vector<8x16x128xf32>
    %37 = arith.mulf %32, %36 : vector<8x16x128xf32>
    %38 = arith.addf %31, %37 : vector<8x16x128xf32>
    %c0_29 = arith.constant 0 : index
    %c2 = arith.constant 2 : index
    %c0_30 = arith.constant 0 : index
    %39 = vector.load %arg8[%c0_29, %c2, %c0_30] : memref<18x18x128xf32, #tpu.memory_space<vmem>>, vector<8x16x128xf32>
    %c2_31 = arith.constant 2 : index
    %c0_32 = arith.constant 0 : index
    %40 = vector.load %arg2[%c2_31, %c0_32] : memref<9x128xf32, #tpu.memory_space<vmem>>, vector<1x128xf32>
    %41 = vector.shape_cast %40 : vector<1x128xf32> to vector<128xf32>
    %42 = vector.shape_cast %41 : vector<128xf32> to vector<1x1x128xf32>
    %43 = vector.broadcast %42 : vector<1x1x128xf32> to vector<8x16x128xf32>
    %44 = arith.mulf %39, %43 : vector<8x16x128xf32>
    %45 = arith.addf %38, %44 : vector<8x16x128xf32>
    %c1_33 = arith.constant 1 : index
    %c0_34 = arith.constant 0 : index
    %c0_35 = arith.constant 0 : index
    %46 = vector.load %arg8[%c1_33, %c0_34, %c0_35] : memref<18x18x128xf32, #tpu.memory_space<vmem>>, vector<8x16x128xf32>
    %c3 = arith.constant 3 : index
    %c0_36 = arith.constant 0 : index
    %47 = vector.load %arg2[%c3, %c0_36] : memref<9x128xf32, #tpu.memory_space<vmem>>, vector<1x128xf32>
    %48 = vector.shape_cast %47 : vector<1x128xf32> to vector<128xf32>
    %49 = vector.shape_cast %48 : vector<128xf32> to vector<1x1x128xf32>
    %50 = vector.broadcast %49 : vector<1x1x128xf32> to vector<8x16x128xf32>
    %51 = arith.mulf %46, %50 : vector<8x16x128xf32>
    %52 = arith.addf %45, %51 : vector<8x16x128xf32>
    %c1_37 = arith.constant 1 : index
    %c1_38 = arith.constant 1 : index
    %c0_39 = arith.constant 0 : index
    %53 = vector.load %arg8[%c1_37, %c1_38, %c0_39] : memref<18x18x128xf32, #tpu.memory_space<vmem>>, vector<8x16x128xf32>
    %c4 = arith.constant 4 : index
    %c0_40 = arith.constant 0 : index
    %54 = vector.load %arg2[%c4, %c0_40] : memref<9x128xf32, #tpu.memory_space<vmem>>, vector<1x128xf32>
    %55 = vector.shape_cast %54 : vector<1x128xf32> to vector<128xf32>
    %56 = vector.shape_cast %55 : vector<128xf32> to vector<1x1x128xf32>
    %57 = vector.broadcast %56 : vector<1x1x128xf32> to vector<8x16x128xf32>
    %58 = arith.mulf %53, %57 : vector<8x16x128xf32>
    %59 = arith.addf %52, %58 : vector<8x16x128xf32>
    %c1_41 = arith.constant 1 : index
    %c2_42 = arith.constant 2 : index
    %c0_43 = arith.constant 0 : index
    %60 = vector.load %arg8[%c1_41, %c2_42, %c0_43] : memref<18x18x128xf32, #tpu.memory_space<vmem>>, vector<8x16x128xf32>
    %c5 = arith.constant 5 : index
    %c0_44 = arith.constant 0 : index
    %61 = vector.load %arg2[%c5, %c0_44] : memref<9x128xf32, #tpu.memory_space<vmem>>, vector<1x128xf32>
    %62 = vector.shape_cast %61 : vector<1x128xf32> to vector<128xf32>
    %63 = vector.shape_cast %62 : vector<128xf32> to vector<1x1x128xf32>
    %64 = vector.broadcast %63 : vector<1x1x128xf32> to vector<8x16x128xf32>
    %65 = arith.mulf %60, %64 : vector<8x16x128xf32>
    %66 = arith.addf %59, %65 : vector<8x16x128xf32>
    %c2_45 = arith.constant 2 : index
    %c0_46 = arith.constant 0 : index
    %c0_47 = arith.constant 0 : index
    %67 = vector.load %arg8[%c2_45, %c0_46, %c0_47] : memref<18x18x128xf32, #tpu.memory_space<vmem>>, vector<8x16x128xf32>
    %c6 = arith.constant 6 : index
    %c0_48 = arith.constant 0 : index
    %68 = vector.load %arg2[%c6, %c0_48] : memref<9x128xf32, #tpu.memory_space<vmem>>, vector<1x128xf32>
    %69 = vector.shape_cast %68 : vector<1x128xf32> to vector<128xf32>
    %70 = vector.shape_cast %69 : vector<128xf32> to vector<1x1x128xf32>
    %71 = vector.broadcast %70 : vector<1x1x128xf32> to vector<8x16x128xf32>
    %72 = arith.mulf %67, %71 : vector<8x16x128xf32>
    %73 = arith.addf %66, %72 : vector<8x16x128xf32>
    %c2_49 = arith.constant 2 : index
    %c1_50 = arith.constant 1 : index
    %c0_51 = arith.constant 0 : index
    %74 = vector.load %arg8[%c2_49, %c1_50, %c0_51] : memref<18x18x128xf32, #tpu.memory_space<vmem>>, vector<8x16x128xf32>
    %c7 = arith.constant 7 : index
    %c0_52 = arith.constant 0 : index
    %75 = vector.load %arg2[%c7, %c0_52] : memref<9x128xf32, #tpu.memory_space<vmem>>, vector<1x128xf32>
    %76 = vector.shape_cast %75 : vector<1x128xf32> to vector<128xf32>
    %77 = vector.shape_cast %76 : vector<128xf32> to vector<1x1x128xf32>
    %78 = vector.broadcast %77 : vector<1x1x128xf32> to vector<8x16x128xf32>
    %79 = arith.mulf %74, %78 : vector<8x16x128xf32>
    %80 = arith.addf %73, %79 : vector<8x16x128xf32>
    %c2_53 = arith.constant 2 : index
    %c2_54 = arith.constant 2 : index
    %c0_55 = arith.constant 0 : index
    %81 = vector.load %arg8[%c2_53, %c2_54, %c0_55] : memref<18x18x128xf32, #tpu.memory_space<vmem>>, vector<8x16x128xf32>
    %c8 = arith.constant 8 : index
    %c0_56 = arith.constant 0 : index
    %82 = vector.load %arg2[%c8, %c0_56] : memref<9x128xf32, #tpu.memory_space<vmem>>, vector<1x128xf32>
    %83 = vector.shape_cast %82 : vector<1x128xf32> to vector<128xf32>
    %84 = vector.shape_cast %83 : vector<128xf32> to vector<1x1x128xf32>
    %85 = vector.broadcast %84 : vector<1x1x128xf32> to vector<8x16x128xf32>
    %86 = arith.mulf %81, %85 : vector<8x16x128xf32>
    %87 = arith.addf %80, %86 : vector<8x16x128xf32>
    %c0_57 = arith.constant 0 : index
    %c0_58 = arith.constant 0 : index
    %c0_59 = arith.constant 0 : index
    %c0_60 = arith.constant 0 : index
    %88 = vector.load %arg5[%c0_57, %c0_58, %c0_59, %c0_60] : memref<1x16x16x128xf32, #tpu.memory_space<vmem>>, vector<1x8x16x128xf32>
    %89 = vector.shape_cast %88 : vector<1x8x16x128xf32> to vector<8x16x128xf32>
    %90 = vector.shape_cast %87 : vector<8x16x128xf32> to vector<1x8x16x128xf32>
    tpu.vector_store %arg5[%c0_57, %c0_58, %c0_59, %c0_60], %90 {strides = array<i32>} : memref<1x16x16x128xf32, #tpu.memory_space<vmem>>, vector<1x8x16x128xf32>,
    %91 = vector.shape_cast %87 : vector<8x16x128xf32> to vector<128x128xf32>
    %cst_61 = arith.constant dense<0.000000e+00> : vector<128xf32>
    %92 = vector.multi_reduction <add>, %91, %cst_61 [0] : vector<128x128xf32> to vector<128xf32>
    %93 = vector.shape_cast %92 : vector<128xf32> to vector<1x128xf32>
    %94 = arith.addf %22, %93 : vector<1x128xf32>
    %95 = arith.mulf %91, %91 : vector<128x128xf32>
    %cst_62 = arith.constant dense<0.000000e+00> : vector<128xf32>
    %96 = vector.multi_reduction <add>, %95, %cst_62 [0] : vector<128x128xf32> to vector<128xf32>
    %97 = vector.shape_cast %96 : vector<128xf32> to vector<1x128xf32>
    %98 = arith.addf %23, %97 : vector<1x128xf32>
    %cst_63 = arith.constant 0.000000e+00 : f32
    %99 = vector.broadcast %cst_63 : f32 to vector<8x16x128xf32>
    %c8_64 = arith.constant 8 : index
    %c0_65 = arith.constant 0 : index
    %c0_66 = arith.constant 0 : index
    %100 = vector.load %arg8[%c8_64, %c0_65, %c0_66] : memref<18x18x128xf32, #tpu.memory_space<vmem>>, vector<8x16x128xf32>
    %c0_67 = arith.constant 0 : index
    %c0_68 = arith.constant 0 : index
    %101 = vector.load %arg2[%c0_67, %c0_68] : memref<9x128xf32, #tpu.memory_space<vmem>>, vector<1x128xf32>
    %102 = vector.shape_cast %101 : vector<1x128xf32> to vector<128xf32>
    %103 = vector.shape_cast %102 : vector<128xf32> to vector<1x1x128xf32>
    %104 = vector.broadcast %103 : vector<1x1x128xf32> to vector<8x16x128xf32>
    %105 = arith.mulf %100, %104 : vector<8x16x128xf32>
    %106 = arith.addf %99, %105 : vector<8x16x128xf32>
    %c8_69 = arith.constant 8 : index
    %c1_70 = arith.constant 1 : index
    %c0_71 = arith.constant 0 : index
    %107 = vector.load %arg8[%c8_69, %c1_70, %c0_71] : memref<18x18x128xf32, #tpu.memory_space<vmem>>, vector<8x16x128xf32>
    %c1_72 = arith.constant 1 : index
    %c0_73 = arith.constant 0 : index
    %108 = vector.load %arg2[%c1_72, %c0_73] : memref<9x128xf32, #tpu.memory_space<vmem>>, vector<1x128xf32>
    %109 = vector.shape_cast %108 : vector<1x128xf32> to vector<128xf32>
    %110 = vector.shape_cast %109 : vector<128xf32> to vector<1x1x128xf32>
    %111 = vector.broadcast %110 : vector<1x1x128xf32> to vector<8x16x128xf32>
    %112 = arith.mulf %107, %111 : vector<8x16x128xf32>
    %113 = arith.addf %106, %112 : vector<8x16x128xf32>
    %c8_74 = arith.constant 8 : index
    %c2_75 = arith.constant 2 : index
    %c0_76 = arith.constant 0 : index
    %114 = vector.load %arg8[%c8_74, %c2_75, %c0_76] : memref<18x18x128xf32, #tpu.memory_space<vmem>>, vector<8x16x128xf32>
    %c2_77 = arith.constant 2 : index
    %c0_78 = arith.constant 0 : index
    %115 = vector.load %arg2[%c2_77, %c0_78] : memref<9x128xf32, #tpu.memory_space<vmem>>, vector<1x128xf32>
    %116 = vector.shape_cast %115 : vector<1x128xf32> to vector<128xf32>
    %117 = vector.shape_cast %116 : vector<128xf32> to vector<1x1x128xf32>
    %118 = vector.broadcast %117 : vector<1x1x128xf32> to vector<8x16x128xf32>
    %119 = arith.mulf %114, %118 : vector<8x16x128xf32>
    %120 = arith.addf %113, %119 : vector<8x16x128xf32>
    %c9 = arith.constant 9 : index
    %c0_79 = arith.constant 0 : index
    %c0_80 = arith.constant 0 : index
    %121 = vector.load %arg8[%c9, %c0_79, %c0_80] : memref<18x18x128xf32, #tpu.memory_space<vmem>>, vector<8x16x128xf32>
    %c3_81 = arith.constant 3 : index
    %c0_82 = arith.constant 0 : index
    %122 = vector.load %arg2[%c3_81, %c0_82] : memref<9x128xf32, #tpu.memory_space<vmem>>, vector<1x128xf32>
    %123 = vector.shape_cast %122 : vector<1x128xf32> to vector<128xf32>
    %124 = vector.shape_cast %123 : vector<128xf32> to vector<1x1x128xf32>
    %125 = vector.broadcast %124 : vector<1x1x128xf32> to vector<8x16x128xf32>
    %126 = arith.mulf %121, %125 : vector<8x16x128xf32>
    %127 = arith.addf %120, %126 : vector<8x16x128xf32>
    %c9_83 = arith.constant 9 : index
    %c1_84 = arith.constant 1 : index
    %c0_85 = arith.constant 0 : index
    %128 = vector.load %arg8[%c9_83, %c1_84, %c0_85] : memref<18x18x128xf32, #tpu.memory_space<vmem>>, vector<8x16x128xf32>
    %c4_86 = arith.constant 4 : index
    %c0_87 = arith.constant 0 : index
    %129 = vector.load %arg2[%c4_86, %c0_87] : memref<9x128xf32, #tpu.memory_space<vmem>>, vector<1x128xf32>
    %130 = vector.shape_cast %129 : vector<1x128xf32> to vector<128xf32>
    %131 = vector.shape_cast %130 : vector<128xf32> to vector<1x1x128xf32>
    %132 = vector.broadcast %131 : vector<1x1x128xf32> to vector<8x16x128xf32>
    %133 = arith.mulf %128, %132 : vector<8x16x128xf32>
    %134 = arith.addf %127, %133 : vector<8x16x128xf32>
    %c9_88 = arith.constant 9 : index
    %c2_89 = arith.constant 2 : index
    %c0_90 = arith.constant 0 : index
    %135 = vector.load %arg8[%c9_88, %c2_89, %c0_90] : memref<18x18x128xf32, #tpu.memory_space<vmem>>, vector<8x16x128xf32>
    %c5_91 = arith.constant 5 : index
    %c0_92 = arith.constant 0 : index
    %136 = vector.load %arg2[%c5_91, %c0_92] : memref<9x128xf32, #tpu.memory_space<vmem>>, vector<1x128xf32>
    %137 = vector.shape_cast %136 : vector<1x128xf32> to vector<128xf32>
    %138 = vector.shape_cast %137 : vector<128xf32> to vector<1x1x128xf32>
    %139 = vector.broadcast %138 : vector<1x1x128xf32> to vector<8x16x128xf32>
    %140 = arith.mulf %135, %139 : vector<8x16x128xf32>
    %141 = arith.addf %134, %140 : vector<8x16x128xf32>
    %c10 = arith.constant 10 : index
    %c0_93 = arith.constant 0 : index
    %c0_94 = arith.constant 0 : index
    %142 = vector.load %arg8[%c10, %c0_93, %c0_94] : memref<18x18x128xf32, #tpu.memory_space<vmem>>, vector<8x16x128xf32>
    %c6_95 = arith.constant 6 : index
    %c0_96 = arith.constant 0 : index
    %143 = vector.load %arg2[%c6_95, %c0_96] : memref<9x128xf32, #tpu.memory_space<vmem>>, vector<1x128xf32>
    %144 = vector.shape_cast %143 : vector<1x128xf32> to vector<128xf32>
    %145 = vector.shape_cast %144 : vector<128xf32> to vector<1x1x128xf32>
    %146 = vector.broadcast %145 : vector<1x1x128xf32> to vector<8x16x128xf32>
    %147 = arith.mulf %142, %146 : vector<8x16x128xf32>
    %148 = arith.addf %141, %147 : vector<8x16x128xf32>
    %c10_97 = arith.constant 10 : index
    %c1_98 = arith.constant 1 : index
    %c0_99 = arith.constant 0 : index
    %149 = vector.load %arg8[%c10_97, %c1_98, %c0_99] : memref<18x18x128xf32, #tpu.memory_space<vmem>>, vector<8x16x128xf32>
    %c7_100 = arith.constant 7 : index
    %c0_101 = arith.constant 0 : index
    %150 = vector.load %arg2[%c7_100, %c0_101] : memref<9x128xf32, #tpu.memory_space<vmem>>, vector<1x128xf32>
    %151 = vector.shape_cast %150 : vector<1x128xf32> to vector<128xf32>
    %152 = vector.shape_cast %151 : vector<128xf32> to vector<1x1x128xf32>
    %153 = vector.broadcast %152 : vector<1x1x128xf32> to vector<8x16x128xf32>
    %154 = arith.mulf %149, %153 : vector<8x16x128xf32>
    %155 = arith.addf %148, %154 : vector<8x16x128xf32>
    %c10_102 = arith.constant 10 : index
    %c2_103 = arith.constant 2 : index
    %c0_104 = arith.constant 0 : index
    %156 = vector.load %arg8[%c10_102, %c2_103, %c0_104] : memref<18x18x128xf32, #tpu.memory_space<vmem>>, vector<8x16x128xf32>
    %c8_105 = arith.constant 8 : index
    %c0_106 = arith.constant 0 : index
    %157 = vector.load %arg2[%c8_105, %c0_106] : memref<9x128xf32, #tpu.memory_space<vmem>>, vector<1x128xf32>
    %158 = vector.shape_cast %157 : vector<1x128xf32> to vector<128xf32>
    %159 = vector.shape_cast %158 : vector<128xf32> to vector<1x1x128xf32>
    %160 = vector.broadcast %159 : vector<1x1x128xf32> to vector<8x16x128xf32>
    %161 = arith.mulf %156, %160 : vector<8x16x128xf32>
    %162 = arith.addf %155, %161 : vector<8x16x128xf32>
    %c0_107 = arith.constant 0 : index
    %c8_108 = arith.constant 8 : index
    %c0_109 = arith.constant 0 : index
    %c0_110 = arith.constant 0 : index
    %163 = vector.load %arg5[%c0_107, %c8_108, %c0_109, %c0_110] : memref<1x16x16x128xf32, #tpu.memory_space<vmem>>, vector<1x8x16x128xf32>
    %164 = vector.shape_cast %163 : vector<1x8x16x128xf32> to vector<8x16x128xf32>
    %165 = vector.shape_cast %162 : vector<8x16x128xf32> to vector<1x8x16x128xf32>
    tpu.vector_store %arg5[%c0_107, %c8_108, %c0_109, %c0_110], %165 {strides = array<i32>} : memref<1x16x16x128xf32, #tpu.memory_space<vmem>>, vector<1x8x16x128xf32>,
    %166 = vector.shape_cast %162 : vector<8x16x128xf32> to vector<128x128xf32>
    %cst_111 = arith.constant dense<0.000000e+00> : vector<128xf32>
    %167 = vector.multi_reduction <add>, %166, %cst_111 [0] : vector<128x128xf32> to vector<128xf32>
    %168 = vector.shape_cast %167 : vector<128xf32> to vector<1x128xf32>
    %169 = arith.addf %94, %168 : vector<1x128xf32>
    %170 = arith.mulf %166, %166 : vector<128x128xf32>
    %cst_112 = arith.constant dense<0.000000e+00> : vector<128xf32>
    %171 = vector.multi_reduction <add>, %170, %cst_112 [0] : vector<128x128xf32> to vector<128xf32>
    %172 = vector.shape_cast %171 : vector<128xf32> to vector<1x128xf32>
    %173 = arith.addf %98, %172 : vector<1x128xf32>
    %c0_113 = arith.constant 0 : index
    %c0_114 = arith.constant 0 : index
    %174 = vector.load %arg6[%c0_113, %c0_114] : memref<8x128xf32, #tpu.memory_space<vmem>>, vector<1x128xf32>
    tpu.vector_store %arg6[%c0_113, %c0_114], %169 {strides = array<i32>} : memref<8x128xf32, #tpu.memory_space<vmem>>, vector<1x128xf32>,
    %cst_115 = arith.constant 0.000000e+00 : f32
    %175 = vector.broadcast %cst_115 : f32 to vector<7x128xf32>
    %c1_116 = arith.constant 1 : index
    %c0_117 = arith.constant 0 : index
    %176 = vector.load %arg6[%c1_116, %c0_117] : memref<8x128xf32, #tpu.memory_space<vmem>>, vector<7x128xf32>
    tpu.vector_store %arg6[%c1_116, %c0_117], %175 {strides = array<i32>} : memref<8x128xf32, #tpu.memory_space<vmem>>, vector<7x128xf32>,
    %c0_118 = arith.constant 0 : index
    %c0_119 = arith.constant 0 : index
    %177 = vector.load %arg7[%c0_118, %c0_119] : memref<8x128xf32, #tpu.memory_space<vmem>>, vector<1x128xf32>
    tpu.vector_store %arg7[%c0_118, %c0_119], %173 {strides = array<i32>} : memref<8x128xf32, #tpu.memory_space<vmem>>, vector<1x128xf32>,
    %cst_120 = arith.constant 0.000000e+00 : f32
    %178 = vector.broadcast %cst_120 : f32 to vector<7x128xf32>
    %c1_121 = arith.constant 1 : index
    %c0_122 = arith.constant 0 : index
    %179 = vector.load %arg7[%c1_121, %c0_122] : memref<8x128xf32, #tpu.memory_space<vmem>>, vector<7x128xf32>
    tpu.vector_store %arg7[%c1_121, %c0_122], %178 {strides = array<i32>} : memref<8x128xf32, #tpu.memory_space<vmem>>, vector<7x128xf32>,
    return
  }
  func.func @transform_0(%arg0: i32) -> (i32, i32, i32, i32) {
    %c0_i32 = arith.constant 0 : i32
    %c0_i32_0 = arith.constant 0 : i32
    %c0_i32_1 = arith.constant 0 : i32
    %c0_i32_2 = arith.constant 0 : i32
    return %arg0, %c0_i32, %c0_i32_0, %c0_i32_1 : i32, i32, i32, i32
  }
  func.func @transform_1(%arg0: i32) -> (i32, i32) {
    %c0_i32 = arith.constant 0 : i32
    %c0_i32_0 = arith.constant 0 : i32
    %c0_i32_1 = arith.constant 0 : i32
    return %c0_i32, %c0_i32_0 : i32, i32
  }
  func.func @transform_2(%arg0: i32) -> (i32, i32) {
    %c0_i32 = arith.constant 0 : i32
    %c0_i32_0 = arith.constant 0 : i32
    %c0_i32_1 = arith.constant 0 : i32
    return %c0_i32, %c0_i32_0 : i32, i32
  }
  func.func @transform_3(%arg0: i32) -> (i32, i32) {
    %c0_i32 = arith.constant 0 : i32
    %c0_i32_0 = arith.constant 0 : i32
    %c0_i32_1 = arith.constant 0 : i32
    return %c0_i32, %c0_i32_0 : i32, i32
  }
  func.func @transform_4(%arg0: i32) -> (i32, i32, i32, i32) {
    %c0_i32 = arith.constant 0 : i32
    %c0_i32_0 = arith.constant 0 : i32
    %c0_i32_1 = arith.constant 0 : i32
    %c0_i32_2 = arith.constant 0 : i32
    return %arg0, %c0_i32, %c0_i32_0, %c0_i32_1 : i32, i32, i32, i32
  }
  func.func @transform_5(%arg0: i32) -> (i32, i32) {
    %c0_i32 = arith.constant 0 : i32
    %c0_i32_0 = arith.constant 0 : i32
    return %arg0, %c0_i32 : i32, i32
  }
  func.func @transform_6(%arg0: i32) -> (i32, i32) {
    %c0_i32 = arith.constant 0 : i32
    %c0_i32_0 = arith.constant 0 : i32
    return %arg0, %c0_i32 : i32, i32
  }
}

module attributes {stable_mosaic.version = 11 : i64} {
  func.func @pool_kernel(%arg0: i32, %arg1: memref<1x256x128xf32, #tpu.memory_space<vmem>>, %arg2: memref<1x128xf32, #tpu.memory_space<vmem>>, %arg3: memref<1x128xf32, #tpu.memory_space<vmem>>, %arg4: memref<8x128xf32, #tpu.memory_space<vmem>>, %arg5: memref<1x128x128xf32, #tpu.memory_space<vmem>>) attributes {dimension_semantics = [#tpu.dimension_semantics<parallel>], iteration_bounds = array<i64: 2>, scalar_prefetch = 0 : i64, scratch_operands = 0 : i64, tpu.core_type = #tpu.core_type<tc>, window_params = [{transform_indices = @transform_0, window_bounds = array<i64: 1, 256, 128>}, {pipeline_mode = #tpu.pipeline_mode<synchronous>, transform_indices = @transform_1, window_bounds = array<i64: 1, 128>}, {pipeline_mode = #tpu.pipeline_mode<synchronous>, transform_indices = @transform_2, window_bounds = array<i64: 1, 128>}, {transform_indices = @transform_3, window_bounds = array<i64: 8, 128>}, {transform_indices = @transform_4, window_bounds = array<i64: 1, 128, 128>}]} {
    %c0 = arith.constant 0 : index
    %c0_0 = arith.constant 0 : index
    %c0_1 = arith.constant 0 : index
    %0 = vector.load %arg1[%c0, %c0_0, %c0_1] : memref<1x256x128xf32, #tpu.memory_space<vmem>>, vector<1x256x128xf32>
    %1 = vector.shape_cast %0 : vector<1x256x128xf32> to vector<256x128xf32>
    %c0_2 = arith.constant 0 : index
    %c0_3 = arith.constant 0 : index
    %2 = vector.load %arg2[%c0_2, %c0_3] : memref<1x128xf32, #tpu.memory_space<vmem>>, vector<1x128xf32>
    %3 = vector.broadcast %2 : vector<1x128xf32> to vector<256x128xf32>
    %4 = arith.mulf %1, %3 : vector<256x128xf32>
    %c0_4 = arith.constant 0 : index
    %c0_5 = arith.constant 0 : index
    %5 = vector.load %arg3[%c0_4, %c0_5] : memref<1x128xf32, #tpu.memory_space<vmem>>, vector<1x128xf32>
    %6 = vector.broadcast %5 : vector<1x128xf32> to vector<256x128xf32>
    %7 = arith.addf %4, %6 : vector<256x128xf32>
    %cst = arith.constant 3.000000e+00 : f32
    %8 = vector.broadcast %cst : f32 to vector<256x128xf32>
    %9 = arith.addf %7, %8 : vector<256x128xf32>
    %cst_6 = arith.constant 0.000000e+00 : f32
    %cst_7 = arith.constant 6.000000e+00 : f32
    %10 = vector.broadcast %cst_6 : f32 to vector<256x128xf32>
    %11 = arith.maximumf %10, %9 : vector<256x128xf32>
    %12 = vector.broadcast %cst_7 : f32 to vector<256x128xf32>
    %13 = arith.minimumf %12, %11 : vector<256x128xf32>
    %14 = arith.mulf %7, %13 : vector<256x128xf32>
    %cst_8 = arith.constant 0.166666672 : f32
    %15 = vector.broadcast %cst_8 : f32 to vector<256x128xf32>
    %16 = arith.mulf %14, %15 : vector<256x128xf32>
    %cst_9 = arith.constant dense<0.000000e+00> : vector<128xf32>
    %17 = vector.multi_reduction <add>, %16, %cst_9 [0] : vector<256x128xf32> to vector<128xf32>
    %18 = vector.shape_cast %17 : vector<128xf32> to vector<1x128xf32>
    %c0_10 = arith.constant 0 : index
    %c0_11 = arith.constant 0 : index
    %19 = vector.load %arg4[%c0_10, %c0_11] : memref<8x128xf32, #tpu.memory_space<vmem>>, vector<1x128xf32>
    tpu.vector_store %arg4[%c0_10, %c0_11], %18 {strides = array<i32>} : memref<8x128xf32, #tpu.memory_space<vmem>>, vector<1x128xf32>,
    %cst_12 = arith.constant 0.000000e+00 : f32
    %20 = vector.broadcast %cst_12 : f32 to vector<7x128xf32>
    %c1 = arith.constant 1 : index
    %c0_13 = arith.constant 0 : index
    %21 = vector.load %arg4[%c1, %c0_13] : memref<8x128xf32, #tpu.memory_space<vmem>>, vector<7x128xf32>
    tpu.vector_store %arg4[%c1, %c0_13], %20 {strides = array<i32>} : memref<8x128xf32, #tpu.memory_space<vmem>>, vector<7x128xf32>,
    %cst_14 = arith.constant dense<0.000000e+00> : vector<128x128xf32>
    %22 = tpu.matmul %16, %16, %cst_14 {dimension_numbers = #tpu.dot_dimension_numbers<[0], [0], [1], [1], [0, 1, 1, 1], [], []>} : vector<256x128xf32>, vector<256x128xf32>, vector<128x128xf32> -> vector<128x128xf32>
    %c0_15 = arith.constant 0 : index
    %c0_16 = arith.constant 0 : index
    %c0_17 = arith.constant 0 : index
    %23 = vector.load %arg5[%c0_15, %c0_16, %c0_17] : memref<1x128x128xf32, #tpu.memory_space<vmem>>, vector<1x128x128xf32>
    %24 = vector.shape_cast %23 : vector<1x128x128xf32> to vector<128x128xf32>
    %25 = vector.shape_cast %22 : vector<128x128xf32> to vector<1x128x128xf32>
    tpu.vector_store %arg5[%c0_15, %c0_16, %c0_17], %25 {strides = array<i32>} : memref<1x128x128xf32, #tpu.memory_space<vmem>>, vector<1x128x128xf32>,
    return
  }
  func.func @transform_0(%arg0: i32) -> (i32, i32, i32) {
    %c0_i32 = arith.constant 0 : i32
    %c0_i32_0 = arith.constant 0 : i32
    %c0_i32_1 = arith.constant 0 : i32
    return %arg0, %c0_i32, %c0_i32_0 : i32, i32, i32
  }
  func.func @transform_1(%arg0: i32) -> (i32, i32) {
    %c0_i32 = arith.constant 0 : i32
    %c0_i32_0 = arith.constant 0 : i32
    %c0_i32_1 = arith.constant 0 : i32
    return %c0_i32, %c0_i32_0 : i32, i32
  }
  func.func @transform_2(%arg0: i32) -> (i32, i32) {
    %c0_i32 = arith.constant 0 : i32
    %c0_i32_0 = arith.constant 0 : i32
    %c0_i32_1 = arith.constant 0 : i32
    return %c0_i32, %c0_i32_0 : i32, i32
  }
  func.func @transform_3(%arg0: i32) -> (i32, i32) {
    %c0_i32 = arith.constant 0 : i32
    %c0_i32_0 = arith.constant 0 : i32
    return %arg0, %c0_i32 : i32, i32
  }
  func.func @transform_4(%arg0: i32) -> (i32, i32, i32) {
    %c0_i32 = arith.constant 0 : i32
    %c0_i32_0 = arith.constant 0 : i32
    %c0_i32_1 = arith.constant 0 : i32
    return %arg0, %c0_i32, %c0_i32_0 : i32, i32, i32
  }
}

module attributes {stable_mosaic.version = 11 : i64} {
  func.func @se_excite_kernel(%arg0: i32, %arg1: memref<2x128xf32, #tpu.memory_space<vmem>>, %arg2: memref<128x128xf32, #tpu.memory_space<vmem>>, %arg3: memref<1x128xf32, #tpu.memory_space<vmem>>, %arg4: memref<128x128xf32, #tpu.memory_space<vmem>>, %arg5: memref<1x128xf32, #tpu.memory_space<vmem>>, %arg6: memref<2x128xf32, #tpu.memory_space<vmem>>) attributes {dimension_semantics = [#tpu.dimension_semantics<arbitrary>], iteration_bounds = array<i64: 1>, scalar_prefetch = 0 : i64, scratch_operands = 0 : i64, tpu.core_type = #tpu.core_type<tc>, window_params = [{pipeline_mode = #tpu.pipeline_mode<synchronous>, transform_indices = @transform_0, window_bounds = array<i64: 2, 128>}, {pipeline_mode = #tpu.pipeline_mode<synchronous>, transform_indices = @transform_1, window_bounds = array<i64: 128, 128>}, {pipeline_mode = #tpu.pipeline_mode<synchronous>, transform_indices = @transform_2, window_bounds = array<i64: 1, 128>}, {pipeline_mode = #tpu.pipeline_mode<synchronous>, transform_indices = @transform_3, window_bounds = array<i64: 128, 128>}, {pipeline_mode = #tpu.pipeline_mode<synchronous>, transform_indices = @transform_4, window_bounds = array<i64: 1, 128>}, {pipeline_mode = #tpu.pipeline_mode<synchronous>, transform_indices = @transform_5, window_bounds = array<i64: 2, 128>}]} {
    %c0 = arith.constant 0 : index
    %c0_0 = arith.constant 0 : index
    %0 = vector.load %arg1[%c0, %c0_0] : memref<2x128xf32, #tpu.memory_space<vmem>>, vector<2x128xf32>
    %c0_1 = arith.constant 0 : index
    %c0_2 = arith.constant 0 : index
    %1 = vector.load %arg2[%c0_1, %c0_2] : memref<128x128xf32, #tpu.memory_space<vmem>>, vector<128x128xf32>
    %cst = arith.constant dense<0.000000e+00> : vector<2x128xf32>
    %2 = tpu.matmul %0, %1, %cst {dimension_numbers = #tpu.dot_dimension_numbers<[1], [0], [0], [1], [0, 0, 1, 1], [], []>} : vector<2x128xf32>, vector<128x128xf32>, vector<2x128xf32> -> vector<2x128xf32>
    %c0_3 = arith.constant 0 : index
    %c0_4 = arith.constant 0 : index
    %3 = vector.load %arg3[%c0_3, %c0_4] : memref<1x128xf32, #tpu.memory_space<vmem>>, vector<1x128xf32>
    %4 = vector.broadcast %3 : vector<1x128xf32> to vector<2x128xf32>
    %5 = arith.addf %2, %4 : vector<2x128xf32>
    %cst_5 = arith.constant 0.000000e+00 : f32
    %6 = vector.broadcast %cst_5 : f32 to vector<2x128xf32>
    %7 = arith.maximumf %5, %6 : vector<2x128xf32>
    %c0_6 = arith.constant 0 : index
    %c0_7 = arith.constant 0 : index
    %8 = vector.load %arg4[%c0_6, %c0_7] : memref<128x128xf32, #tpu.memory_space<vmem>>, vector<128x128xf32>
    %cst_8 = arith.constant dense<0.000000e+00> : vector<2x128xf32>
    %9 = tpu.matmul %7, %8, %cst_8 {dimension_numbers = #tpu.dot_dimension_numbers<[1], [0], [0], [1], [0, 0, 1, 1], [], []>} : vector<2x128xf32>, vector<128x128xf32>, vector<2x128xf32> -> vector<2x128xf32>
    %c0_9 = arith.constant 0 : index
    %c0_10 = arith.constant 0 : index
    %10 = vector.load %arg5[%c0_9, %c0_10] : memref<1x128xf32, #tpu.memory_space<vmem>>, vector<1x128xf32>
    %11 = vector.broadcast %10 : vector<1x128xf32> to vector<2x128xf32>
    %12 = arith.addf %9, %11 : vector<2x128xf32>
    %cst_11 = arith.constant 3.000000e+00 : f32
    %13 = vector.broadcast %cst_11 : f32 to vector<2x128xf32>
    %14 = arith.addf %12, %13 : vector<2x128xf32>
    %cst_12 = arith.constant 0.000000e+00 : f32
    %cst_13 = arith.constant 6.000000e+00 : f32
    %15 = vector.broadcast %cst_12 : f32 to vector<2x128xf32>
    %16 = arith.maximumf %15, %14 : vector<2x128xf32>
    %17 = vector.broadcast %cst_13 : f32 to vector<2x128xf32>
    %18 = arith.minimumf %17, %16 : vector<2x128xf32>
    %cst_14 = arith.constant 0.166666672 : f32
    %19 = vector.broadcast %cst_14 : f32 to vector<2x128xf32>
    %20 = arith.mulf %18, %19 : vector<2x128xf32>
    %c0_15 = arith.constant 0 : index
    %c0_16 = arith.constant 0 : index
    %21 = vector.load %arg6[%c0_15, %c0_16] : memref<2x128xf32, #tpu.memory_space<vmem>>, vector<2x128xf32>
    tpu.vector_store %arg6[%c0_15, %c0_16], %20 {strides = array<i32>} : memref<2x128xf32, #tpu.memory_space<vmem>>, vector<2x128xf32>,
    return
  }
  func.func @transform_0(%arg0: i32) -> (i32, i32) {
    %c0_i32 = arith.constant 0 : i32
    %c0_i32_0 = arith.constant 0 : i32
    %c0_i32_1 = arith.constant 0 : i32
    return %c0_i32, %c0_i32_0 : i32, i32
  }
  func.func @transform_1(%arg0: i32) -> (i32, i32) {
    %c0_i32 = arith.constant 0 : i32
    %c0_i32_0 = arith.constant 0 : i32
    %c0_i32_1 = arith.constant 0 : i32
    return %c0_i32, %c0_i32_0 : i32, i32
  }
  func.func @transform_2(%arg0: i32) -> (i32, i32) {
    %c0_i32 = arith.constant 0 : i32
    %c0_i32_0 = arith.constant 0 : i32
    %c0_i32_1 = arith.constant 0 : i32
    return %c0_i32, %c0_i32_0 : i32, i32
  }
  func.func @transform_3(%arg0: i32) -> (i32, i32) {
    %c0_i32 = arith.constant 0 : i32
    %c0_i32_0 = arith.constant 0 : i32
    %c0_i32_1 = arith.constant 0 : i32
    return %c0_i32, %c0_i32_0 : i32, i32
  }
  func.func @transform_4(%arg0: i32) -> (i32, i32) {
    %c0_i32 = arith.constant 0 : i32
    %c0_i32_0 = arith.constant 0 : i32
    %c0_i32_1 = arith.constant 0 : i32
    return %c0_i32, %c0_i32_0 : i32, i32
  }
  func.func @transform_5(%arg0: i32) -> (i32, i32) {
    %c0_i32 = arith.constant 0 : i32
    %c0_i32_0 = arith.constant 0 : i32
    %c0_i32_1 = arith.constant 0 : i32
    return %c0_i32, %c0_i32_0 : i32, i32
  }
}

module attributes {stable_mosaic.version = 11 : i64} {
  func.func @kernel(%arg0: i32, %arg1: i32, %arg2: memref<1x256x128xf32, #tpu.memory_space<vmem>>, %arg3: memref<1x128xf32, #tpu.memory_space<vmem>>, %arg4: memref<1x128xf32, #tpu.memory_space<vmem>>, %arg5: memref<2x128xf32, #tpu.memory_space<vmem>>, %arg6: memref<128x128xf32, #tpu.memory_space<vmem>>, %arg7: memref<1x128xf32, #tpu.memory_space<vmem>>, %arg8: memref<1x128xf32, #tpu.memory_space<vmem>>, %arg9: memref<1x256x128xf32, #tpu.memory_space<vmem>>, %arg10: memref<1x256x128xf32, #tpu.memory_space<vmem>>) attributes {dimension_semantics = [#tpu.dimension_semantics<parallel>, #tpu.dimension_semantics<parallel>], iteration_bounds = array<i64: 2, 1>, scalar_prefetch = 0 : i64, scratch_operands = 0 : i64, tpu.core_type = #tpu.core_type<tc>, window_params = [{transform_indices = @transform_0, window_bounds = array<i64: 1, 256, 128>}, {pipeline_mode = #tpu.pipeline_mode<synchronous>, transform_indices = @transform_1, window_bounds = array<i64: 1, 128>}, {pipeline_mode = #tpu.pipeline_mode<synchronous>, transform_indices = @transform_2, window_bounds = array<i64: 1, 128>}, {pipeline_mode = #tpu.pipeline_mode<synchronous>, transform_indices = @transform_3, window_bounds = array<i64: 2, 128>}, {pipeline_mode = #tpu.pipeline_mode<synchronous>, transform_indices = @transform_4, window_bounds = array<i64: 128, 128>}, {pipeline_mode = #tpu.pipeline_mode<synchronous>, transform_indices = @transform_5, window_bounds = array<i64: 1, 128>}, {pipeline_mode = #tpu.pipeline_mode<synchronous>, transform_indices = @transform_6, window_bounds = array<i64: 1, 128>}, {transform_indices = @transform_7, window_bounds = array<i64: 1, 256, 128>}, {transform_indices = @transform_8, window_bounds = array<i64: 1, 256, 128>}]} {
    %c0 = arith.constant 0 : index
    %c0_0 = arith.constant 0 : index
    %c0_1 = arith.constant 0 : index
    %0 = vector.load %arg2[%c0, %c0_0, %c0_1] : memref<1x256x128xf32, #tpu.memory_space<vmem>>, vector<1x256x128xf32>
    %1 = vector.shape_cast %0 : vector<1x256x128xf32> to vector<256x128xf32>
    %c0_2 = arith.constant 0 : index
    %c0_3 = arith.constant 0 : index
    %2 = vector.load %arg3[%c0_2, %c0_3] : memref<1x128xf32, #tpu.memory_space<vmem>>, vector<1x128xf32>
    %3 = vector.broadcast %2 : vector<1x128xf32> to vector<256x128xf32>
    %4 = arith.mulf %1, %3 : vector<256x128xf32>
    %c0_4 = arith.constant 0 : index
    %c0_5 = arith.constant 0 : index
    %5 = vector.load %arg4[%c0_4, %c0_5] : memref<1x128xf32, #tpu.memory_space<vmem>>, vector<1x128xf32>
    %6 = vector.broadcast %5 : vector<1x128xf32> to vector<256x128xf32>
    %7 = arith.addf %4, %6 : vector<256x128xf32>
    %cst = arith.constant 3.000000e+00 : f32
    %8 = vector.broadcast %cst : f32 to vector<256x128xf32>
    %9 = arith.addf %7, %8 : vector<256x128xf32>
    %cst_6 = arith.constant 0.000000e+00 : f32
    %cst_7 = arith.constant 6.000000e+00 : f32
    %10 = vector.broadcast %cst_6 : f32 to vector<256x128xf32>
    %11 = arith.maximumf %10, %9 : vector<256x128xf32>
    %12 = vector.broadcast %cst_7 : f32 to vector<256x128xf32>
    %13 = arith.minimumf %12, %11 : vector<256x128xf32>
    %14 = arith.mulf %7, %13 : vector<256x128xf32>
    %cst_8 = arith.constant 0.166666672 : f32
    %15 = vector.broadcast %cst_8 : f32 to vector<256x128xf32>
    %16 = arith.mulf %14, %15 : vector<256x128xf32>
    %17 = arith.index_cast %arg0 : i32 to index
    %c0_9 = arith.constant 0 : index
    %18 = vector.load %arg5[%17, %c0_9] : memref<2x128xf32, #tpu.memory_space<vmem>>, vector<1x128xf32>
    %19 = vector.broadcast %18 : vector<1x128xf32> to vector<256x128xf32>
    %20 = arith.mulf %16, %19 : vector<256x128xf32>
    %c0_10 = arith.constant 0 : index
    %c0_11 = arith.constant 0 : index
    %21 = vector.load %arg6[%c0_10, %c0_11] : memref<128x128xf32, #tpu.memory_space<vmem>>, vector<128x128xf32>
    %cst_12 = arith.constant dense<0.000000e+00> : vector<256x128xf32>
    %22 = tpu.matmul %20, %21, %cst_12 {dimension_numbers = #tpu.dot_dimension_numbers<[1], [0], [0], [1], [0, 0, 1, 1], [], []>} : vector<256x128xf32>, vector<128x128xf32>, vector<256x128xf32> -> vector<256x128xf32>
    %c0_13 = arith.constant 0 : index
    %c0_14 = arith.constant 0 : index
    %23 = vector.load %arg7[%c0_13, %c0_14] : memref<1x128xf32, #tpu.memory_space<vmem>>, vector<1x128xf32>
    %24 = vector.broadcast %23 : vector<1x128xf32> to vector<256x128xf32>
    %25 = arith.mulf %22, %24 : vector<256x128xf32>
    %c0_15 = arith.constant 0 : index
    %c0_16 = arith.constant 0 : index
    %26 = vector.load %arg8[%c0_15, %c0_16] : memref<1x128xf32, #tpu.memory_space<vmem>>, vector<1x128xf32>
    %27 = vector.broadcast %26 : vector<1x128xf32> to vector<256x128xf32>
    %28 = arith.addf %25, %27 : vector<256x128xf32>
    %c0_17 = arith.constant 0 : index
    %c0_18 = arith.constant 0 : index
    %c0_19 = arith.constant 0 : index
    %29 = vector.load %arg9[%c0_17, %c0_18, %c0_19] : memref<1x256x128xf32, #tpu.memory_space<vmem>>, vector<1x256x128xf32>
    %30 = vector.shape_cast %29 : vector<1x256x128xf32> to vector<256x128xf32>
    %31 = arith.addf %28, %30 : vector<256x128xf32>
    %c0_20 = arith.constant 0 : index
    %c0_21 = arith.constant 0 : index
    %c0_22 = arith.constant 0 : index
    %32 = vector.load %arg10[%c0_20, %c0_21, %c0_22] : memref<1x256x128xf32, #tpu.memory_space<vmem>>, vector<1x256x128xf32>
    %33 = vector.shape_cast %32 : vector<1x256x128xf32> to vector<256x128xf32>
    %34 = vector.shape_cast %31 : vector<256x128xf32> to vector<1x256x128xf32>
    tpu.vector_store %arg10[%c0_20, %c0_21, %c0_22], %34 {strides = array<i32>} : memref<1x256x128xf32, #tpu.memory_space<vmem>>, vector<1x256x128xf32>,
    return
  }
  func.func @transform_0(%arg0: i32, %arg1: i32) -> (i32, i32, i32) {
    %c0_i32 = arith.constant 0 : i32
    %c0_i32_0 = arith.constant 0 : i32
    return %arg0, %arg1, %c0_i32 : i32, i32, i32
  }
  func.func @transform_1(%arg0: i32, %arg1: i32) -> (i32, i32) {
    %c0_i32 = arith.constant 0 : i32
    %c0_i32_0 = arith.constant 0 : i32
    %c0_i32_1 = arith.constant 0 : i32
    return %c0_i32, %c0_i32_0 : i32, i32
  }
  func.func @transform_2(%arg0: i32, %arg1: i32) -> (i32, i32) {
    %c0_i32 = arith.constant 0 : i32
    %c0_i32_0 = arith.constant 0 : i32
    %c0_i32_1 = arith.constant 0 : i32
    return %c0_i32, %c0_i32_0 : i32, i32
  }
  func.func @transform_3(%arg0: i32, %arg1: i32) -> (i32, i32) {
    %c0_i32 = arith.constant 0 : i32
    %c0_i32_0 = arith.constant 0 : i32
    %c0_i32_1 = arith.constant 0 : i32
    return %c0_i32, %c0_i32_0 : i32, i32
  }
  func.func @transform_4(%arg0: i32, %arg1: i32) -> (i32, i32) {
    %c0_i32 = arith.constant 0 : i32
    %c0_i32_0 = arith.constant 0 : i32
    %c0_i32_1 = arith.constant 0 : i32
    return %c0_i32, %c0_i32_0 : i32, i32
  }
  func.func @transform_5(%arg0: i32, %arg1: i32) -> (i32, i32) {
    %c0_i32 = arith.constant 0 : i32
    %c0_i32_0 = arith.constant 0 : i32
    %c0_i32_1 = arith.constant 0 : i32
    return %c0_i32, %c0_i32_0 : i32, i32
  }
  func.func @transform_6(%arg0: i32, %arg1: i32) -> (i32, i32) {
    %c0_i32 = arith.constant 0 : i32
    %c0_i32_0 = arith.constant 0 : i32
    %c0_i32_1 = arith.constant 0 : i32
    return %c0_i32, %c0_i32_0 : i32, i32
  }
  func.func @transform_7(%arg0: i32, %arg1: i32) -> (i32, i32, i32) {
    %c0_i32 = arith.constant 0 : i32
    %c0_i32_0 = arith.constant 0 : i32
    return %arg0, %arg1, %c0_i32 : i32, i32, i32
  }
  func.func @transform_8(%arg0: i32, %arg1: i32) -> (i32, i32, i32) {
    %c0_i32 = arith.constant 0 : i32
    %c0_i32_0 = arith.constant 0 : i32
    return %arg0, %arg1, %c0_i32 : i32, i32, i32
  }
}

</mosaic_0001>

<bundles_post_ra>
// kernel: irblock_forward.5
= control target key start
LH: loop header
LB: loop body
LE: loop exit
PB: predicated region body
PF: predicated region fallthrough
CT: control target
= control target key end

     0   :  { %s747_s15 = smov 0   ;;  %s1020_s0 = inlined_call_operand.vmem [shape: f32[512,128], index: 0, kind: input, shape index: {}]   ;;  %s1021_s1 = inlined_call_operand.vmem [shape: f32[128,128], index: 1, kind: input, shape index: {}]   ;;  %s1022_s2 = inlined_call_operand.vmem [shape: f32[512,128], index: 2, kind: output, shape index: {0}]   ;;  %s1023_s3 = inlined_call_operand.vmem [shape: f32[16,128], index: 3, kind: output, shape index: {1}]   ;;  %s1024_s4 = inlined_call_operand.vmem [shape: f32[16,128], index: 4, kind: output, shape index: {2}]  }
   0x1 LB: > { %s753_s16 = sadd.s32 4294967295, %s719_s15   ;;  %p647_p0 = scmp.ge.s32.totalorder %s719_s15, 1  ;;  %s719_s15 = sphi %s747_s15, %s15_s15  }
   0x2   : > { %p168_p1 = scmp.lt.s32.totalorder %s719_s15, 3 }
   0x4   : > { %p169_p2 = pnand %p647_p0, %p168_p1 }
   0x5   : > { %s648_s7 = sshll.u32 (!%p169_p2), %s753_s16, 5  ;;  %p214_p4 = scmp.lt.s32.totalorder (!%p169_p2), %s753_s16, 1 }
   0x6   : > { %172 = sbr.rel (%p169_p2) target bundleno = 290 (0x122), region = 28  ;;  %p203_p3 = scmp.lt.s32.totalorder (!%p169_p2), %s648_s7, 63 }
   0xb   : > { %v269_v0 = vld [vmem:[%s1021_s1 + $0x78] sm:$0xff]  ;;  %v268_v1 = vld [vmem:[%s1021_s1 + $0x70] sm:$0xff]  ;;  %v267_v2 = vld [vmem:[%s1021_s1 + $0x68] sm:$0xff]  ;;  %s1026_s7 = smov (!%p203_p3, %s648_s7), 63  ;;  %s1028_s16 = smov (!%p214_p4, %s753_s16), 1 }
   0xc   : > { %270 = vmatpush.msra.mxu0 %v269_v0  ;;  %656 = vmatpush.msra.mxu1 %v269_v0  ;;  %v266_v3 = vld [vmem:[%s1021_s1 + $0x60] sm:$0xff]  ;;  %v265_v4 = vld [vmem:[%s1021_s1 + $0x58] sm:$0xff]  ;;  %v264_v5 = vld [vmem:[%s1021_s1 + $0x50] sm:$0xff]  ;;  %s649_s20 = sshll.u32 %s1026_s7, 3  ;;  %s652_s7 = sshll.u32 %s1028_s16, 3 }
   0xd   : > { %657 = vmatpush.msra.mxu2 %v269_v0  ;;  %658 = vmatpush.msra.mxu3 %v269_v0  ;;  %v263_v6 = vld [vmem:[%s1021_s1 + $0x48] sm:$0xff]  ;;  %v262_v7 = vld [vmem:[%s1021_s1 + $0x40] sm:$0xff]  ;;  %v261_v8 = vld [vmem:[%s1021_s1 + $0x38] sm:$0xff]  ;;  %s811_s27 = scalar_lea.vmem %s1020_s0, %s649_s20  ;;  %s853_s6 = scalar_lea.vmem %s1022_s2, %s649_s20 }
   0xe   : > { %271 = vmatpush.msra.mxu0 %v268_v1  ;;  %659 = vmatpush.msra.mxu1 %v268_v1  ;;  %v260_v9 = vld [vmem:[%s1021_s1 + $0x30] sm:$0xff]  ;;  %v259_v10 = vld [vmem:[%s1021_s1 + $0x28] sm:$0xff]  ;;  %v258_v11 = vld [vmem:[%s1021_s1 + $0x20] sm:$0xff]  ;;  %s985_s10 = scalar_lea.vmem %s1024_s4, %s652_s7  ;;  %s990_s16 = scalar_lea.vmem %s1023_s3, %s652_s7 }
   0xf   : > { %660 = vmatpush.msra.mxu2 %v268_v1  ;;  %661 = vmatpush.msra.mxu3 %v268_v1  ;;  %v257_v12 = vld [vmem:[%s1021_s1 + $0x18] sm:$0xff]  ;;  %v256_v13 = vld [vmem:[%s1021_s1 + $0x10] sm:$0xff]  ;;  %v255_v14 = vld [vmem:[%s1021_s1 + $0x8] sm:$0xff] }
  0x10   : > { %272 = vmatpush.msra.mxu0 %v267_v2  ;;  %662 = vmatpush.msra.mxu1 %v267_v2  ;;  %v254_v15 = vld [vmem:[%s1021_s1] sm:$0xff]  ;;  %v223_v19 = vld [vmem:[%s811_s27 + $0x8] sm:$0xff]  ;;  %v224_v23 = vld [vmem:[%s811_s27 + $0x10] sm:$0xff] }
  0x11   : > { %663 = vmatpush.msra.mxu2 %v267_v2  ;;  %664 = vmatpush.msra.mxu3 %v267_v2  ;;  %v222_v16 = vld [vmem:[%s811_s27] sm:$0xff]  ;;  %v231_v20 = vld [vmem:[%s811_s27 + $0x48] sm:$0xff]  ;;  %v232_v24 = vld [vmem:[%s811_s27 + $0x50] sm:$0xff] }
  0x12   : > { %273 = vmatpush.msra.mxu0 %v266_v3  ;;  %665 = vmatpush.msra.mxu1 %v266_v3  ;;  %v230_v17 = vld [vmem:[%s811_s27 + $0x40] sm:$0xff]  ;;  %v239_v21 = vld [vmem:[%s811_s27 + $0x88] sm:$0xff]  ;;  %v240_v25 = vld [vmem:[%s811_s27 + $0x90] sm:$0xff] }
  0x13   : > { %666 = vmatpush.msra.mxu2 %v266_v3  ;;  %667 = vmatpush.msra.mxu3 %v266_v3  ;;  %v238_v18 = vld [vmem:[%s811_s27 + $0x80] sm:$0xff]  ;;  %v247_v26 = vld [vmem:[%s811_s27 + $0xc8] sm:$0xff]  ;;  %v225_v27 = vld [vmem:[%s811_s27 + $0x18] sm:$0xff] }
  0x14   : > { %274 = vmatpush.msra.mxu0 %v265_v4  ;;  %668 = vmatpush.msra.mxu1 %v265_v4  ;;  %v246_v22 = vld [vmem:[%s811_s27 + $0xc0] sm:$0xff]  ;;  %v233_v28 = vld [vmem:[%s811_s27 + $0x58] sm:$0xff]  ;;  %v248_v30 = vld [vmem:[%s811_s27 + $0xd0] sm:$0xff] }
  0x15   : > { %669 = vmatpush.msra.mxu2 %v265_v4  ;;  %670 = vmatpush.msra.mxu3 %v265_v4  ;;  %v241_v29 = vld [vmem:[%s811_s27 + $0x98] sm:$0xff]  ;;  %v226_v31 = vld [vmem:[%s811_s27 + $0x20] sm:$0xff]  ;;  %v227_v35 = vld [vmem:[%s811_s27 + $0x28] sm:$0xff] }
  0x16   : > { %275 = vmatpush.msra.mxu0 %v264_v5  ;;  %671 = vmatpush.msra.mxu1 %v264_v5  ;;  %v234_v32 = vld [vmem:[%s811_s27 + $0x60] sm:$0xff]  ;;  %v249_v33 = vld [vmem:[%s811_s27 + $0xd8] sm:$0xff]  ;;  %v235_v36 = vld [vmem:[%s811_s27 + $0x68] sm:$0xff] }
  0x17   : > { %672 = vmatpush.msra.mxu2 %v264_v5  ;;  %673 = vmatpush.msra.mxu3 %v264_v5  ;;  %v242_v34 = vld [vmem:[%s811_s27 + $0xa0] sm:$0xff]  ;;  %v243_v38 = vld [vmem:[%s811_s27 + $0xa8] sm:$0xff]  ;;  %v228_v39 = vld [vmem:[%s811_s27 + $0x30] sm:$0xff] }
  0x18   : > { %276 = vmatpush.msra.mxu0 %v263_v6  ;;  %674 = vmatpush.msra.mxu1 %v263_v6  ;;  %v250_v37 = vld [vmem:[%s811_s27 + $0xe0] sm:$0xff]  ;;  %v236_v40 = vld [vmem:[%s811_s27 + $0x70] sm:$0xff]  ;;  %v251_v41 = vld [vmem:[%s811_s27 + $0xe8] sm:$0xff] }
  0x19   : > { %675 = vmatpush.msra.mxu2 %v263_v6  ;;  %676 = vmatpush.msra.mxu3 %v263_v6  ;;  %v244_v42 = vld [vmem:[%s811_s27 + $0xb0] sm:$0xff]  ;;  %v229_v43 = vld [vmem:[%s811_s27 + $0x38] sm:$0xff] }
  0x1a   : > { %277 = vmatpush.msra.mxu0 %v262_v7  ;;  %677 = vmatpush.msra.mxu1 %v262_v7  ;;  %v237_v44 = vld [vmem:[%s811_s27 + $0x78] sm:$0xff]  ;;  %v252_v45 = vld [vmem:[%s811_s27 + $0xf0] sm:$0xff] }
  0x1b   : > { %678 = vmatpush.msra.mxu2 %v262_v7  ;;  %679 = vmatpush.msra.mxu3 %v262_v7  ;;  %v245_v46 = vld [vmem:[%s811_s27 + $0xb8] sm:$0xff] }
  0x1c   : > { %278 = vmatpush.msra.mxu0 %v261_v8  ;;  %680 = vmatpush.msra.mxu1 %v261_v8  ;;  %v253_v47 = vld [vmem:[%s811_s27 + $0xf8] sm:$0xff] }
  0x1d   : > { %681 = vmatpush.msra.mxu2 %v261_v8  ;;  %682 = vmatpush.msra.mxu3 %v261_v8 }
  0x1e   : > { %279 = vmatpush.msra.mxu0 %v260_v9  ;;  %683 = vmatpush.msra.mxu1 %v260_v9 }
  0x1f   : > { %684 = vmatpush.msra.mxu2 %v260_v9  ;;  %685 = vmatpush.msra.mxu3 %v260_v9 }
  0x20   : > { %280 = vmatpush.msra.mxu0 %v259_v10  ;;  %686 = vmatpush.msra.mxu1 %v259_v10 }
  0x21   : > { %687 = vmatpush.msra.mxu2 %v259_v10  ;;  %688 = vmatpush.msra.mxu3 %v259_v10 }
  0x22   : > { %281 = vmatpush.msra.mxu0 %v258_v11  ;;  %689 = vmatpush.msra.mxu1 %v258_v11 }
  0x23   : > { %690 = vmatpush.msra.mxu2 %v258_v11  ;;  %691 = vmatpush.msra.mxu3 %v258_v11 }
  0x24   : > { %282 = vmatpush.msra.mxu0 %v257_v12  ;;  %692 = vmatpush.msra.mxu1 %v257_v12 }
  0x25   : > { %693 = vmatpush.msra.mxu2 %v257_v12  ;;  %694 = vmatpush.msra.mxu3 %v257_v12 }
  0x26   : > { %283 = vmatpush.msra.mxu0 %v256_v13  ;;  %695 = vmatpush.msra.mxu1 %v256_v13 }
  0x27   : > { %696 = vmatpush.msra.mxu2 %v256_v13  ;;  %697 = vmatpush.msra.mxu3 %v256_v13 }
  0x28   : > { %284 = vmatpush.msra.mxu0 %v255_v14  ;;  %698 = vmatpush.msra.mxu1 %v255_v14 }
  0x29   : > { %699 = vmatpush.msra.mxu2 %v255_v14  ;;  %700 = vmatpush.msra.mxu3 %v255_v14 }
  0x2a   : > { %285 = vmatpush.msra.mxu0 %v254_v15  ;;  %701 = vmatpush.msra.mxu1 %v254_v15 }
  0x2b   : > { %286 = vmatmul.f32.vlgmr.msra.gmra.mxu0 %v222_v16  ;;  %310 = vmatmul.f32.vlgmr.msra.gmra.mxu1 %v230_v17 }
  0x2c   : > { %702 = vmatpush.msra.mxu2 %v254_v15  ;;  %703 = vmatpush.msra.mxu3 %v254_v15 }
  0x2d   : > { %334 = vmatmul.f32.vlgmr.msra.gmra.mxu2 %v238_v18  ;;  %358 = vmatmul.f32.vlgmr.msra.gmra.mxu3 %v246_v22 }
  0x33   : > { %289 = vmatmul.f32.gmra.mxu0 %v223_v19  ;;  %313 = vmatmul.f32.gmra.mxu1 %v231_v20 }
  0x35   : > { %337 = vmatmul.f32.gmra.mxu2 %v239_v21  ;;  %361 = vmatmul.f32.gmra.mxu3 %v247_v26 }
  0x3b   : > { %292 = vmatmul.f32.gmra.mxu0 %v224_v23  ;;  %316 = vmatmul.f32.gmra.mxu1 %v232_v24 }
  0x3d   : > { %340 = vmatmul.f32.gmra.mxu2 %v240_v25  ;;  %364 = vmatmul.f32.gmra.mxu3 %v248_v30 }
  0x43   : > { %295 = vmatmul.f32.gmra.mxu0 %v225_v27  ;;  %319 = vmatmul.f32.gmra.mxu1 %v233_v28 }
  0x45   : > { %343 = vmatmul.f32.gmra.mxu2 %v241_v29  ;;  %367 = vmatmul.f32.gmra.mxu3 %v249_v33 }
  0x4b   : > { %298 = vmatmul.f32.gmra.mxu0 %v226_v31  ;;  %322 = vmatmul.f32.gmra.mxu1 %v234_v32 }
  0x4d   : > { %346 = vmatmul.f32.gmra.mxu2 %v242_v34  ;;  %370 = vmatmul.f32.gmra.mxu3 %v250_v37 }
  0x53   : > { %301 = vmatmul.f32.gmra.mxu0 %v227_v35  ;;  %325 = vmatmul.f32.gmra.mxu1 %v235_v36 }
  0x55   : > { %349 = vmatmul.f32.gmra.mxu2 %v243_v38  ;;  %373 = vmatmul.f32.gmra.mxu3 %v251_v41 }
  0x5b   : > { %304 = vmatmul.f32.gmra.mxu0 %v228_v39  ;;  %328 = vmatmul.f32.gmra.mxu1 %v236_v40 }
  0x5d   : > { %352 = vmatmul.f32.gmra.mxu2 %v244_v42  ;;  %376 = vmatmul.f32.gmra.mxu3 %v252_v45 }
  0x63   : > { %307 = vmatmul.f32.gmra.mxu0 %v229_v43  ;;  %331 = vmatmul.f32.gmra.mxu1 %v237_v44 }
  0x65   : > { %355 = vmatmul.f32.gmra.mxu2 %v245_v46  ;;  %379 = vmatmul.f32.gmra.mxu3 %v253_v47 }
  0xa8   : > { %v287_v48 = vpop.f32.mrf.mxu0  ;;  %v855_v49 = vpop.f32.mrf.mxu1 }
  0xa9   : > { %383 = vst [vmem:[%s853_s6] sm:$0xff] %v287_v48  ;;  %v454_v6 = vmul.f32 %v287_v48, %v287_v48  ;;  %v462_v34 = vmul.f32 %v855_v49, %v855_v49 }
  0xaa   : > { %391 = vst [vmem:[%s853_s6 + $0x40] sm:$0xff] %v855_v49 }
  0xb0   : > { %v290_v50 = vpop.f32.mrf.mxu0  ;;  %v860_v51 = vpop.f32.mrf.mxu1 }
  0xb1   : > { %384 = vst [vmem:[%s853_s6 + $0x8] sm:$0xff] %v290_v50  ;;  %v863_v52 = vpop.f32.mrf.mxu2  ;;  %v874_v56 = vpop.f32.mrf.mxu3  ;;  %v455_v5 = vmul.f32 %v290_v50, %v290_v50  ;;  %v415_v7 = vadd.f32 %v290_v50, %v287_v48  ;;  %v463_v37 = vmul.f32 %v860_v51, %v860_v51 }
  0xb2   : > { %392 = vst [vmem:[%s853_s6 + $0x48] sm:$0xff] %v860_v51 }
  0xb3   : > { %399 = vst [vmem:[%s853_s6 + $0x80] sm:$0xff] %v863_v52  ;;  %v486_v9 = vadd.f32 %v455_v5, %v454_v6 }
  0xb4   : > { %407 = vst [vmem:[%s853_s6 + $0xc0] sm:$0xff] %v874_v56 }
  0xb8   : > { %v293_v53 = vpop.f32.mrf.mxu0  ;;  %v869_v54 = vpop.f32.mrf.mxu1 }
  0xb9   : > { %385 = vst [vmem:[%s853_s6 + $0x10] sm:$0xff] %v293_v53  ;;  %v872_v55 = vpop.f32.mrf.mxu2  ;;  %v887_v60 = vpop.f32.mrf.mxu3  ;;  %v456_v8 = vmul.f32 %v293_v53, %v293_v53  ;;  %v416_v10 = vadd.f32 %v415_v7, %v293_v53  ;;  %v464_v40 = vmul.f32 %v869_v54, %v869_v54 }
  0xba   : > { %393 = vst [vmem:[%s853_s6 + $0x50] sm:$0xff] %v869_v54 }
  0xbb   : > { %400 = vst [vmem:[%s853_s6 + $0x88] sm:$0xff] %v872_v55  ;;  %v487_v14 = vadd.f32 %v486_v9, %v456_v8 }
  0xbc   : > { %408 = vst [vmem:[%s853_s6 + $0xc8] sm:$0xff] %v887_v60 }
  0xc0   : > { %v296_v57 = vpop.f32.mrf.mxu0  ;;  %v882_v58 = vpop.f32.mrf.mxu1 }
  0xc1   : > { %386 = vst [vmem:[%s853_s6 + $0x18] sm:$0xff] %v296_v57  ;;  %v885_v59 = vpop.f32.mrf.mxu2  ;;  %v900_v0 = vpop.f32.mrf.mxu3  ;;  %v457_v11 = vmul.f32 %v296_v57, %v296_v57  ;;  %v417_v15 = vadd.f32 %v416_v10, %v296_v57  ;;  %v465_v43 = vmul.f32 %v882_v58, %v882_v58 }
  0xc2   : > { %394 = vst [vmem:[%s853_s6 + $0x58] sm:$0xff] %v882_v58 }
  0xc3   : > { %401 = vst [vmem:[%s853_s6 + $0x90] sm:$0xff] %v885_v59  ;;  %v488_v19 = vadd.f32 %v487_v14, %v457_v11 }
  0xc4   : > { %409 = vst [vmem:[%s853_s6 + $0xd0] sm:$0xff] %v900_v0 }
  0xc8   : > { %v299_v61 = vpop.f32.mrf.mxu0  ;;  %v895_v62 = vpop.f32.mrf.mxu1 }
  0xc9   : > { %387 = vst [vmem:[%s853_s6 + $0x20] sm:$0xff] %v299_v61  ;;  %v898_v63 = vpop.f32.mrf.mxu2  ;;  %v913_v4 = vpop.f32.mrf.mxu3  ;;  %v458_v16 = vmul.f32 %v299_v61, %v299_v61  ;;  %v418_v20 = vadd.f32 %v417_v15, %v299_v61  ;;  %v466_v48 = vmul.f32 %v895_v62, %v895_v62 }
  0xca   : > { %395 = vst [vmem:[%s853_s6 + $0x60] sm:$0xff] %v895_v62  ;;  %v473_v15 = vmul.f32 %v898_v63, %v898_v63 }
  0xcb   : > { %402 = vst [vmem:[%s853_s6 + $0x98] sm:$0xff] %v898_v63  ;;  %v489_v22 = vadd.f32 %v488_v19, %v458_v16 }
  0xcc   : > { %410 = vst [vmem:[%s853_s6 + $0xd8] sm:$0xff] %v913_v4 }
  0xd0   : > { %v302_v1 = vpop.f32.mrf.mxu0  ;;  %v908_v2 = vpop.f32.mrf.mxu1 }
  0xd1   : > { %388 = vst [vmem:[%s853_s6 + $0x28] sm:$0xff] %v302_v1  ;;  %v911_v3 = vpop.f32.mrf.mxu2  ;;  %v924_v18 = vpop.f32.mrf.mxu3  ;;  %v459_v21 = vmul.f32 %v302_v1, %v302_v1  ;;  %v419_v23 = vadd.f32 %v418_v20, %v302_v1  ;;  %v467_v53 = vmul.f32 %v908_v2, %v908_v2 }
  0xd2   : > { %396 = vst [vmem:[%s853_s6 + $0x68] sm:$0xff] %v908_v2  ;;  %v474_v19 = vmul.f32 %v911_v3, %v911_v3 }
  0xd3   : > { %403 = vst [vmem:[%s853_s6 + $0xa0] sm:$0xff] %v911_v3  ;;  %v490_v25 = vadd.f32 %v489_v22, %v459_v21 }
  0xd4   : > { %411 = vst [vmem:[%s853_s6 + $0xe0] sm:$0xff] %v924_v18 }
  0xd8   : > { %v305_v12 = vpop.f32.mrf.mxu0  ;;  %v329_v13 = vpop.f32.mrf.mxu1 }
  0xd9   : > { %389 = vst [vmem:[%s853_s6 + $0x30] sm:$0xff] %v305_v12  ;;  %v922_v17 = vpop.f32.mrf.mxu2  ;;  %v460_v24 = vmul.f32 %v305_v12, %v305_v12  ;;  %v420_v26 = vadd.f32 %v419_v23, %v305_v12  ;;  %v932_v33 = vpop.f32.mrf.mxu3  ;;  %v468_v61 = vmul.f32 %v329_v13, %v329_v13  ;;  %v472_v12 = vmul.f32 %v885_v59, %v885_v59 }
  0xda   : > { %397 = vst [vmem:[%s853_s6 + $0x70] sm:$0xff] %v329_v13 }
  0xdb   : > { %404 = vst [vmem:[%s853_s6 + $0xa8] sm:$0xff] %v922_v17  ;;  %v491_v29 = vadd.f32 %v490_v25, %v460_v24 }
  0xdc   : > { %412 = vst [vmem:[%s853_s6 + $0xe8] sm:$0xff] %v932_v33 }
  0xe0   : > { %v308_v27 = vpop.f32.mrf.mxu0  ;;  %v332_v28 = vpop.f32.mrf.mxu1 }
  0xe1   : > { %390 = vst [vmem:[%s853_s6 + $0x38] sm:$0xff] %v308_v27  ;;  %v421_v30 = vadd.f32 %v420_v26, %v308_v27  ;;  %v461_v31 = vmul.f32 %v308_v27, %v308_v27  ;;  %v353_v32 = vpop.f32.mrf.mxu2  ;;  %v950_v47 = vpop.f32.mrf.mxu3  ;;  %v469_v1 = vmul.f32 %v332_v28, %v332_v28  ;;  %v478_v27 = vmul.f32 %v874_v56, %v874_v56 }
  0xe2   : > { %398 = vst [vmem:[%s853_s6 + $0x78] sm:$0xff] %v332_v28  ;;  %v476_v23 = vmul.f32 %v353_v32, %v353_v32 }
  0xe3   : > { %v422_v35 = vadd.f32 %v421_v30, %v855_v49  ;;  %v492_v36 = vadd.f32 %v491_v29, %v461_v31  ;;  %405 = vst [vmem:[%s853_s6 + $0xb0] sm:$0xff] %v353_v32  ;;  %v479_v30 = vmul.f32 %v887_v60, %v887_v60 }
  0xe4   : > { %413 = vst [vmem:[%s853_s6 + $0xf0] sm:$0xff] %v950_v47 }
  0xe5   : > { %v423_v38 = vadd.f32 %v422_v35, %v860_v51  ;;  %v493_v39 = vadd.f32 %v492_v36, %v462_v34  ;;  %v480_v34 = vmul.f32 %v900_v0, %v900_v0 }
  0xe7   : > { %v424_v41 = vadd.f32 %v423_v38, %v869_v54  ;;  %v494_v42 = vadd.f32 %v493_v39, %v463_v37  ;;  %v481_v37 = vmul.f32 %v913_v4, %v913_v4 }
  0xe9   : > { %v495_v44 = vadd.f32 %v494_v42, %v464_v40  ;;  %v425_v45 = vadd.f32 %v424_v41, %v882_v58  ;;  %v356_v46 = vpop.f32.mrf.mxu2  ;;  %v380_v7 = vpop.f32.mrf.mxu3  ;;  %v483_v42 = vmul.f32 %v932_v33, %v932_v33 }
  0xea   : > { %406 = vst [vmem:[%s853_s6 + $0xb8] sm:$0xff] %v356_v46  ;;  %v477_v25 = vmul.f32 %v356_v46, %v356_v46 }
  0xeb   : > { %v426_v49 = vadd.f32 %v425_v45, %v895_v62  ;;  %v496_v50 = vadd.f32 %v495_v44, %v465_v43  ;;  %414 = vst [vmem:[%s853_s6 + $0xf8] sm:$0xff] %v380_v7  ;;  %v470_v62 = vmul.f32 %v863_v52, %v863_v52  ;;  %v484_v45 = vmul.f32 %v950_v47, %v950_v47 }
  0xed   : > { %v427_v51 = vadd.f32 %v426_v49, %v908_v2  ;;  %v497_v54 = vadd.f32 %v496_v50, %v466_v48  ;;  %v471_v2 = vmul.f32 %v872_v55, %v872_v55 }
  0xef   : > { %v498_v57 = vadd.f32 %v497_v54, %v467_v53  ;;  %v428_v58 = vadd.f32 %v427_v51, %v329_v13 }
  0xf1   : > { %v499_v5 = vadd.f32 %v498_v57, %v468_v61  ;;  %v429_v6 = vadd.f32 %v428_v58, %v332_v28 }
  0xf3   : > { %v430_v8 = vadd.f32 %v429_v6, %v863_v52  ;;  %v500_v9 = vadd.f32 %v499_v5, %v469_v1 }
  0xf5   : > { %v431_v10 = vadd.f32 %v430_v8, %v872_v55  ;;  %v501_v11 = vadd.f32 %v500_v9, %v470_v62 }
  0xf7   : > { %v432_v13 = vadd.f32 %v431_v10, %v885_v59  ;;  %v502_v14 = vadd.f32 %v501_v11, %v471_v2  ;;  %v475_v59 = vmul.f32 %v922_v17, %v922_v17 }
  0xf9   : > { %v503_v16 = vadd.f32 %v502_v14, %v472_v12  ;;  %v433_v52 = vadd.f32 %v432_v13, %v898_v63 }
  0xfb   : > { %v434_v20 = vadd.f32 %v433_v52, %v911_v3  ;;  %v504_v55 = vadd.f32 %v503_v16, %v473_v15  ;;  %v721_v3 = vmov 0.0  }
  0xfc   : > { %453 = vst [vmem:[%s990_s16 + $0x1] sm:$0x7f] %v721_v3 }
  0xfd   : > { %v435_v21 = vadd.f32 %v434_v20, %v922_v17  ;;  %v505_v22 = vadd.f32 %v504_v55, %v474_v19  ;;  %524 = vst [vmem:[%s985_s10 + $0x1] sm:$0x7f] %v721_v3 }
  0xff   : > { %v506_v63 = vadd.f32 %v505_v22, %v475_v59  ;;  %v436_v24 = vadd.f32 %v435_v21, %v353_v32 }
 0x101   : > { %v507_v17 = vadd.f32 %v506_v63, %v476_v23  ;;  %v437_v26 = vadd.f32 %v436_v24, %v356_v46 }
 0x103   : > { %v438_v28 = vadd.f32 %v437_v26, %v874_v56  ;;  %v508_v29 = vadd.f32 %v507_v17, %v477_v25  ;;  %v482_v56 = vmul.f32 %v924_v18, %v924_v18 }
 0x105   : > { %v439_v31 = vadd.f32 %v438_v28, %v887_v60  ;;  %v509_v32 = vadd.f32 %v508_v29, %v478_v27 }
 0x107   : > { %v440_v35 = vadd.f32 %v439_v31, %v900_v0  ;;  %v510_v36 = vadd.f32 %v509_v32, %v479_v30 }
 0x109   : > { %v511_v38 = vadd.f32 %v510_v36, %v480_v34  ;;  %v441_v39 = vadd.f32 %v440_v35, %v913_v4  ;;  %v485_v4 = vmul.f32 %v380_v7, %v380_v7 }
 0x10b   : > { %v442_v40 = vadd.f32 %v441_v39, %v924_v18  ;;  %v512_v41 = vadd.f32 %v511_v38, %v481_v37 }
 0x10d   : > { %v443_v60 = vadd.f32 %v442_v40, %v932_v33  ;;  %v513_v43 = vadd.f32 %v512_v41, %v482_v56 }
 0x10f   : > { %v514_v0 = vadd.f32 %v513_v43, %v483_v42  ;;  %v444_v44 = vadd.f32 %v443_v60, %v950_v47 }
 0x111   : > { %v515_v46 = vadd.f32 %v514_v0, %v484_v45  ;;  %v445_v48 = vadd.f32 %v444_v44, %v380_v7 }
 0x113   : > { %v446_v49 = vrot.slane %v445_v48, 4  ;;  %v516_v18 = vadd.f32 %v515_v46, %v485_v4 }
 0x115   : > { %v447_v50 = vadd.f32 %v446_v49, %v445_v48  ;;  %v517_v51 = vrot.slane %v516_v18, 4 }
 0x117   : > { %v448_v53 = vrot.slane %v447_v50, 2  ;;  %v518_v54 = vadd.f32 %v517_v51, %v516_v18 }
 0x119   : > { %v449_v57 = vadd.f32 %v448_v53, %v447_v50  ;;  %v519_v33 = vrot.slane %v518_v54, 2 }
 0x11b   : > { %v450_v58 = vrot.slane %v449_v57, 1  ;;  %v520_v61 = vadd.f32 %v519_v33, %v518_v54 }
 0x11d   : > { %v451_v1 = vadd.f32 %v450_v58, %v449_v57  ;;  %v521_v5 = vrot.slane %v520_v61, 1 }
 0x11f   : > { %452 = vst [vmem:[%s990_s16] sm:$0x1] %v451_v1  ;;  %v522_v6 = vadd.f32 %v521_v5, %v520_v61 }
 0x121   : > { %523 = vst [vmem:[%s985_s10] sm:$0x1] %v522_v6 }
 0x122 PF: > { %s15_s15 = sadd.s32 1, %s719_s15  }
 0x123   : > { %p12_p5 = scmp.ge.s32.totalorder %s15_s15, 4  }
 0x125   :  { %14 = sbr.rel (!%p12_p5) target bundleno = 1 (0x1), region = 82 }

// kernel: irblock_forward.7
= control target key start
LH: loop header
LB: loop body
LE: loop exit
PB: predicated region body
PF: predicated region fallthrough
CT: control target
= control target key end

     0   :  { %s1011_s15 = smov 0   ;;  %s1358_s0 = inlined_call_operand.vmem [shape: f32[2,256,128], index: 0, kind: input, shape index: {}]   ;;  %s1359_s1 = inlined_call_operand.vmem [shape: f32[1,128], index: 1, kind: input, shape index: {}]   ;;  %s1360_s2 = inlined_call_operand.vmem [shape: f32[1,128], index: 2, kind: input, shape index: {}]   ;;  %s1361_s3 = inlined_call_operand.vmem [shape: f32[16,128], index: 3, kind: output, shape index: {0}]   ;;  %s1362_s4 = inlined_call_operand.vmem [shape: f32[2,128,128], index: 4, kind: output, shape index: {1}]  }
   0x1 LB: > { %s808_s16 = sadd.s32 4294967295, %s983_s15   ;;  %p812_p0 = scmp.ge.s32.totalorder %s983_s15, 1  ;;  %s983_s15 = sphi %s1011_s15, %s15_s15  }
   0x2   : > { %p165_p1 = scmp.lt.s32.totalorder %s983_s15, 3 }
   0x4   : > { %p166_p2 = pnand %p812_p0, %p165_p1 }
   0x5   : > { %p195_p3 = scmp.lt.s32.totalorder (!%p166_p2), %s808_s16, 1 }
   0x6   : > { %169 = sbr.rel (%p166_p2) target bundleno = 454 (0x1c6), region = 32 }
   0xb   : > { %s1364_s16 = smov (!%p195_p3, %s808_s16), 1  ;;  %v1024_v0 = vld [vmem:[%s1359_s1] ss:$0 sm:$0xff] }
   0xc   : > { %s820_s19 = sshll.u32 %s1364_s16, 8  ;;  %v1035_v1 = vld [vmem:[%s1360_s2] ss:$0 sm:$0xff]  ;;  %s815_s25 = sshll.u32 %s1364_s16, 3 }
   0xd   : > { %s1030_s22 = scalar_lea.vmem %s1358_s0, %s820_s19  ;;  %s1222_s28 = scalar_lea.vmem %s1361_s3, %s815_s25 }
   0xe   : > { %v209_v2 = vld [vmem:[%s1030_s22] sm:$0xff]  ;;  %v210_v4 = vld [vmem:[%s1030_s22 + $0x8] sm:$0xff]  ;;  %v211_v9 = vld [vmem:[%s1030_s22 + $0x10] sm:$0xff]  ;;  %s821_s29 = sshll.u32 %s1364_s16, 7 }
   0xf   : > { %v225_v3 = vld [vmem:[%s1030_s22 + $0x80] sm:$0xff]  ;;  %v245_v5 = vmul.f32 %v1024_v0, %v209_v2  ;;  %v226_v7 = vld [vmem:[%s1030_s22 + $0x88] sm:$0xff]  ;;  %v246_v8 = vmul.f32 %v1024_v0, %v210_v4  ;;  %v227_v10 = vld [vmem:[%s1030_s22 + $0x90] sm:$0xff]  ;;  %v247_v12 = vmul.f32 %v1024_v0, %v211_v9  ;;  %s1337_s6 = scalar_lea.vmem %s1362_s4, %s821_s29 }
  0x10   : > { %v261_v6 = vmul.f32 %v1024_v0, %v225_v3  ;;  %v262_v11 = vmul.f32 %v1024_v0, %v226_v7  ;;  %v263_v13 = vmul.f32 %v1024_v0, %v227_v10  ;;  %v212_v20 = vld [vmem:[%s1030_s22 + $0x18] sm:$0xff]  ;;  %v213_v48 = vld [vmem:[%s1030_s22 + $0x20] sm:$0xff]  ;;  %v214_v4 = vld [vmem:[%s1030_s22 + $0x28] sm:$0xff] }
  0x11   : > { %v281_v14 = vadd.f32 %v1035_v1, %v245_v5  ;;  %v282_v16 = vadd.f32 %v1035_v1, %v246_v8  ;;  %v283_v18 = vadd.f32 %v1035_v1, %v247_v12  ;;  %v228_v24 = vld [vmem:[%s1030_s22 + $0x98] sm:$0xff]  ;;  %v248_v29 = vmul.f32 %v1024_v0, %v212_v20  ;;  %v229_v49 = vld [vmem:[%s1030_s22 + $0xa0] sm:$0xff]  ;;  %v230_v5 = vld [vmem:[%s1030_s22 + $0xa8] sm:$0xff] }
  0x12   : > { %v297_v15 = vadd.f32 %v1035_v1, %v261_v6  ;;  %v298_v17 = vadd.f32 %v1035_v1, %v262_v11  ;;  %v299_v19 = vadd.f32 %v1035_v1, %v263_v13  ;;  %v264_v33 = vmul.f32 %v1024_v0, %v228_v24 }
  0x13   : > { %v313_v21 = vadd.f32 3.0, %v281_v14  ;;  %v314_v23 = vadd.f32 3.0, %v282_v16  ;;  %v315_v31 = vadd.f32 3.0, %v283_v18  ;;  %v284_v42 = vadd.f32 %v1035_v1, %v248_v29 }
  0x14   : > { %v329_v22 = vadd.f32 3.0, %v297_v15  ;;  %v330_v25 = vadd.f32 3.0, %v298_v17  ;;  %v331_v32 = vadd.f32 3.0, %v299_v19  ;;  %v300_v43 = vadd.f32 %v1035_v1, %v264_v33 }
  0x15   : > { %v345_v26 = vmax.f32 %v313_v21, 0.0  ;;  %v346_v28 = vmax.f32 %v314_v23, 0.0  ;;  %v347_v40 = vmax.f32 %v315_v31, 0.0  ;;  %v316_v53 = vadd.f32 3.0, %v284_v42  ;;  %v215_v21 = vld [vmem:[%s1030_s22 + $0x30] sm:$0xff] }
  0x16   : > { %v361_v27 = vmax.f32 %v329_v22, 0.0  ;;  %v362_v30 = vmax.f32 %v330_v25, 0.0  ;;  %v363_v41 = vmax.f32 %v331_v32, 0.0  ;;  %v332_v54 = vadd.f32 3.0, %v300_v43  ;;  %v231_v22 = vld [vmem:[%s1030_s22 + $0xb0] sm:$0xff] }
  0x17   : > { %v377_v34 = vmin.f32 %v345_v26, 6.0  ;;  %v378_v36 = vmin.f32 %v346_v28, 6.0  ;;  %v379_v51 = vmin.f32 %v347_v40, 6.0  ;;  %v249_v57 = vmul.f32 %v1024_v0, %v213_v48 }
  0x18   : > { %v393_v35 = vmin.f32 %v361_v27, 6.0  ;;  %v394_v37 = vmin.f32 %v362_v30, 6.0  ;;  %v395_v52 = vmin.f32 %v363_v41, 6.0  ;;  %v265_v58 = vmul.f32 %v1024_v0, %v229_v49 }
  0x19   : > { %v409_v38 = vmul.f32 %v377_v34, %v281_v14  ;;  %v410_v46 = vmul.f32 %v378_v36, %v282_v16  ;;  %v411_v59 = vmul.f32 %v379_v51, %v283_v18  ;;  %v348_v60 = vmax.f32 %v316_v53, 0.0 }
  0x1a   : > { %v425_v39 = vmul.f32 %v393_v35, %v297_v15  ;;  %v426_v47 = vmul.f32 %v394_v37, %v298_v17  ;;  %v364_v61 = vmax.f32 %v332_v54, 0.0  ;;  %v427_v63 = vmul.f32 %v395_v52, %v299_v19 }
  0x1b   : > { %v1061_v44 = vmul.f32 0.16666667, %v409_v38  ;;  %v1069_v55 = vmul.f32 0.16666667, %v410_v46  ;;  %v285_v2 = vadd.f32 %v1035_v1, %v249_v57  ;;  %v301_v3 = vadd.f32 %v1035_v1, %v265_v58  ;;  %v216_v38 = vld [vmem:[%s1030_s22 + $0x38] sm:$0xff] }
  0x1c   : > { %v1063_v45 = vmul.f32 0.16666667, %v425_v39  ;;  %v1071_v56 = vmul.f32 0.16666667, %v426_v47  ;;  %v1081_v6 = vmul.f32 0.16666667, %v411_v59  ;;  %v250_v9 = vmul.f32 %v1024_v0, %v214_v4 }
  0x1d   : > { %v380_v7 = vmin.f32 %v348_v60, 6.0  ;;  %v396_v8 = vmin.f32 %v364_v61, 6.0  ;;  %v1084_v10 = vmul.f32 0.16666667, %v427_v63  ;;  %v317_v11 = vadd.f32 3.0, %v285_v2  ;;  %v232_v39 = vld [vmem:[%s1030_s22 + $0xb8] sm:$0xff] }
  0x1e   : > { %v863_v50 = vpack.i.bf16 %v1063_v45, %v1061_v44  ;;  %v865_v62 = vpack.i.bf16 %v1071_v56, %v1069_v55  ;;  %v333_v12 = vadd.f32 3.0, %v301_v3  ;;  %v266_v13 = vmul.f32 %v1024_v0, %v230_v5  ;;  %v217_v59 = vld [vmem:[%s1030_s22 + $0x40] sm:$0xff] }
  0x1f   : > { %v412_v14 = vmul.f32 %v380_v7, %v284_v42  ;;  %v428_v15 = vmul.f32 %v396_v8, %v300_v43  ;;  %v286_v16 = vadd.f32 %v1035_v1, %v250_v9  ;;  %v867_v17 = vpack.i.bf16 %v1084_v10, %v1081_v6  ;;  %v233_v60 = vld [vmem:[%s1030_s22 + $0xc0] sm:$0xff]  ;;  %v218_v9 = vld [vmem:[%s1030_s22 + $0x48] sm:$0xff] }
  0x20   : > { %864 = vxpose.xlu0.b32.start [1/16] %v863_v50, 128  ;;  %v349_v18 = vmax.f32 %v317_v11, 0.0  ;;  %v365_v19 = vmax.f32 %v333_v12, 0.0  ;;  %v302_v20 = vadd.f32 %v1035_v1, %v266_v13  ;;  %v251_v25 = vmul.f32 %v1024_v0, %v215_v21  ;;  %v219_v21 = vld [vmem:[%s1030_s22 + $0x50] sm:$0xff] }
  0x21   : > { %v1093_v23 = vmul.f32 0.16666667, %v412_v14  ;;  %v318_v24 = vadd.f32 3.0, %v286_v16  ;;  %v267_v26 = vmul.f32 %v1024_v0, %v231_v22  ;;  %v1097_v27 = vmul.f32 0.16666667, %v428_v15 }
  0x22   : > { %v381_v28 = vmin.f32 %v349_v18, 6.0  ;;  %v397_v29 = vmin.f32 %v365_v19, 6.0  ;;  %v334_v30 = vadd.f32 3.0, %v302_v20  ;;  %v287_v32 = vadd.f32 %v1035_v1, %v251_v25  ;;  %v234_v19 = vld [vmem:[%s1030_s22 + $0xc8] sm:$0xff] }
  0x23   : > { %v350_v31 = vmax.f32 %v318_v24, 0.0  ;;  %v303_v33 = vadd.f32 %v1035_v1, %v267_v26  ;;  %v869_v34 = vpack.i.bf16 %v1097_v27, %v1093_v23  ;;  %v252_v43 = vmul.f32 %v1024_v0, %v216_v38 }
  0x24   : > { %v413_v35 = vmul.f32 %v381_v28, %v285_v2  ;;  %v429_v36 = vmul.f32 %v397_v29, %v301_v3  ;;  %v366_v37 = vmax.f32 %v334_v30, 0.0  ;;  %v319_v41 = vadd.f32 3.0, %v287_v32 }
  0x25   : > { %v382_v40 = vmin.f32 %v350_v31, 6.0  ;;  %v335_v42 = vadd.f32 3.0, %v303_v33  ;;  %v268_v49 = vmul.f32 %v1024_v0, %v232_v39  ;;  %v288_v53 = vadd.f32 %v1035_v1, %v252_v43  ;;  %v235_v43 = vld [vmem:[%s1030_s22 + $0xd0] sm:$0xff] }
  0x26   : > { %v1106_v46 = vmul.f32 0.16666667, %v413_v35  ;;  %v1108_v47 = vmul.f32 0.16666667, %v429_v36  ;;  %v398_v48 = vmin.f32 %v366_v37, 6.0  ;;  %v351_v51 = vmax.f32 %v319_v41, 0.0 }
  0x27   : > { %v414_v50 = vmul.f32 %v382_v40, %v286_v16  ;;  %v367_v52 = vmax.f32 %v335_v42, 0.0  ;;  %v304_v58 = vadd.f32 %v1035_v1, %v268_v49  ;;  %v473_v61 = vadd.f32 %v1069_v55, %v1061_v44  ;;  %v220_v37 = vld [vmem:[%s1030_s22 + $0x58] sm:$0xff] }
  0x28   : > { %866 = vxpose.xlu0.b32.cont [2/16] %v865_v62, 128  ;;  %v871_v54 = vpack.i.bf16 %v1108_v47, %v1106_v46  ;;  %v430_v57 = vmul.f32 %v398_v48, %v302_v20  ;;  %v383_v63 = vmin.f32 %v351_v51, 6.0  ;;  %v320_v3 = vadd.f32 3.0, %v288_v53 }
  0x29   : > { %v1119_v62 = vmul.f32 0.16666667, %v414_v50  ;;  %v399_v2 = vmin.f32 %v367_v52, 6.0  ;;  %v336_v5 = vadd.f32 3.0, %v304_v58  ;;  %v253_v7 = vmul.f32 %v1024_v0, %v217_v59 }
  0x2a   : > { %v1121_v4 = vmul.f32 0.16666667, %v430_v57  ;;  %v269_v8 = vmul.f32 %v1024_v0, %v233_v60  ;;  %v474_v11 = vadd.f32 %v473_v61, %v1081_v6  ;;  %v415_v12 = vmul.f32 %v383_v63, %v287_v32 }
  0x2b   : > { %v431_v13 = vmul.f32 %v399_v2, %v303_v33  ;;  %v352_v14 = vmax.f32 %v320_v3, 0.0  ;;  %v368_v16 = vmax.f32 %v336_v5, 0.0  ;;  %v254_v20 = vmul.f32 %v1024_v0, %v218_v9 }
  0x2c   : > { %v873_v15 = vpack.i.bf16 %v1121_v4, %v1119_v62  ;;  %v305_v18 = vadd.f32 %v1035_v1, %v269_v8  ;;  %v475_v22 = vadd.f32 %v474_v11, %v1093_v23  ;;  %v1135_v24 = vmul.f32 0.16666667, %v415_v12  ;;  %v236_v12 = vld [vmem:[%s1030_s22 + $0xd8] sm:$0xff] }
  0x2d   : > { %v384_v25 = vmin.f32 %v352_v14, 6.0  ;;  %v270_v26 = vmul.f32 %v1024_v0, %v234_v19  ;;  %v1138_v28 = vmul.f32 0.16666667, %v431_v13  ;;  %v400_v29 = vmin.f32 %v368_v16, 6.0 }
  0x2e   : > { %v337_v31 = vadd.f32 3.0, %v305_v18  ;;  %v290_v32 = vadd.f32 %v1035_v1, %v254_v20  ;;  %v255_v33 = vmul.f32 %v1024_v0, %v219_v21  ;;  %v256_v49 = vmul.f32 %v1024_v0, %v220_v37 }
  0x2f   : > { %v416_v35 = vmul.f32 %v384_v25, %v288_v53  ;;  %v306_v36 = vadd.f32 %v1035_v1, %v270_v26  ;;  %v875_v38 = vpack.i.bf16 %v1138_v28, %v1135_v24  ;;  %v432_v39 = vmul.f32 %v400_v29, %v304_v58  ;;  %v221_v53 = vld [vmem:[%s1030_s22 + $0x60] sm:$0xff] }
  0x30   : > { %868 = vxpose.xlu0.b32.cont [3/16] %v867_v17, 128  ;;  %v289_v17 = vadd.f32 %v1035_v1, %v253_v7  ;;  %v369_v41 = vmax.f32 %v337_v31, 0.0  ;;  %v322_v42 = vadd.f32 3.0, %v290_v32  ;;  %v291_v48 = vadd.f32 %v1035_v1, %v255_v33 }
  0x31   : > { %v1151_v51 = vmul.f32 0.16666667, %v416_v35  ;;  %v338_v52 = vadd.f32 3.0, %v306_v36  ;;  %v271_v59 = vmul.f32 %v1024_v0, %v235_v43  ;;  %v292_v63 = vadd.f32 %v1035_v1, %v256_v49 }
  0x32   : > { %v321_v30 = vadd.f32 3.0, %v289_v17  ;;  %v401_v58 = vmin.f32 %v369_v41, 6.0  ;;  %v354_v60 = vmax.f32 %v322_v42, 0.0  ;;  %v323_v61 = vadd.f32 3.0, %v291_v48 }
  0x33   : > { %v257_v2 = vmul.f32 %v1024_v0, %v221_v53  ;;  %v370_v5 = vmax.f32 %v338_v52, 0.0  ;;  %v307_v11 = vadd.f32 %v1035_v1, %v271_v59  ;;  %v272_v21 = vmul.f32 %v1024_v0, %v236_v12  ;;  %v239_v59 = vld [vmem:[%s1030_s22 + $0xf0] sm:$0xff] }
  0x34   : > { %v353_v40 = vmax.f32 %v321_v30, 0.0  ;;  %v433_v9 = vmul.f32 %v401_v58, %v305_v18  ;;  %v386_v13 = vmin.f32 %v354_v60, 6.0  ;;  %v355_v14 = vmax.f32 %v323_v61, 0.0 }
  0x35   : > { %v293_v16 = vadd.f32 %v1035_v1, %v257_v2  ;;  %v402_v20 = vmin.f32 %v370_v5, 6.0  ;;  %v339_v18 = vadd.f32 3.0, %v307_v11 }
  0x36   : > { %v385_v57 = vmin.f32 %v353_v40, 6.0  ;;  %v418_v29 = vmul.f32 %v386_v13, %v290_v32  ;;  %v387_v30 = vmin.f32 %v355_v14, 6.0  ;;  %v237_v32 = vld [vmem:[%s1030_s22 + $0xe0] sm:$0xff] }
  0x37   : > { %v325_v33 = vadd.f32 3.0, %v293_v16  ;;  %v434_v37 = vmul.f32 %v402_v20, %v306_v36  ;;  %v371_v40 = vmax.f32 %v339_v18, 0.0  ;;  %v223_v36 = vld [vmem:[%s1030_s22 + $0x70] sm:$0xff]  ;;  %v273_v61 = vmul.f32 %v1024_v0, %v237_v32 }
  0x38   : > { %870 = vxpose.xlu0.b32.cont [4/16] %v869_v34, 128  ;;  %v476_v34 = vadd.f32 %v475_v22, %v1106_v46  ;;  %v417_v8 = vmul.f32 %v385_v57, %v289_v17  ;;  %v222_v22 = vld [vmem:[%s1030_s22 + $0x68] sm:$0xff]  ;;  %v1170_v17 = vmul.f32 0.16666667, %v433_v9  ;;  %v1178_v41 = vmul.f32 0.16666667, %v418_v29 }
  0x39   : > { %v258_v26 = vmul.f32 %v1024_v0, %v222_v22  ;;  %v419_v42 = vmul.f32 %v387_v30, %v291_v48  ;;  %v357_v49 = vmax.f32 %v325_v33, 0.0  ;;  %v1182_v53 = vmul.f32 0.16666667, %v434_v37  ;;  %v240_v37 = vld [vmem:[%s1030_s22 + $0xf8] sm:$0xff] }
  0x3a   : > { %v477_v50 = vadd.f32 %v476_v34, %v1119_v62  ;;  %v1168_v25 = vmul.f32 0.16666667, %v417_v8  ;;  %v403_v60 = vmin.f32 %v371_v40, 6.0  ;;  %v259_v2 = vmul.f32 %v1024_v0, %v223_v36 }
  0x3b   : > { %v294_v34 = vadd.f32 %v1035_v1, %v258_v26  ;;  %v275_v48 = vmul.f32 %v1024_v0, %v239_v59  ;;  %v389_v8 = vmin.f32 %v357_v49, 6.0  ;;  %v881_v13 = vpack.i.bf16 %v1182_v53, %v1178_v41 }
  0x3c   : > { %v478_v3 = vadd.f32 %v477_v50, %v1135_v24  ;;  %v238_v50 = vld [vmem:[%s1030_s22 + $0xe8] sm:$0xff]  ;;  %v295_v12 = vadd.f32 %v1035_v1, %v259_v2 }
  0x3d   : > { %v326_v52 = vadd.f32 3.0, %v294_v34  ;;  %v274_v5 = vmul.f32 %v1024_v0, %v238_v50  ;;  %v421_v26 = vmul.f32 %v389_v8, %v293_v16 }
  0x3e   : > { %v479_v19 = vadd.f32 %v478_v3, %v1151_v51  ;;  %v1190_v3 = vmul.f32 0.16666667, %v419_v42  ;;  %v327_v22 = vadd.f32 3.0, %v295_v12 }
  0x3f   : > { %v358_v9 = vmax.f32 %v326_v52, 0.0  ;;  %v1209_v49 = vmul.f32 0.16666667, %v421_v26 }
  0x40   : > { %872 = vxpose.xlu0.b32.cont [5/16] %v871_v54, 128  ;;  %v1154_v54 = vmul.f32 0.16666667, %v432_v39  ;;  %v480_v35 = vadd.f32 %v479_v19, %v1168_v25  ;;  %v879_v39 = vpack.i.bf16 %v1170_v17, %v1168_v25  ;;  %v435_v19 = vmul.f32 %v403_v60, %v307_v11 }
  0x41   : > { %v390_v29 = vmin.f32 %v358_v9, 6.0  ;;  %v359_v30 = vmax.f32 %v327_v22, 0.0  ;;  %v985_v22 = vmov 0.0  }
  0x42   : > { %v877_v7 = vpack.i.bf16 %v1154_v54, %v1151_v51  ;;  %v481_v57 = vadd.f32 %v480_v35, %v1178_v41  ;;  %v224_v35 = vld [vmem:[%s1030_s22 + $0x78] sm:$0xff]  ;;  %511 = vst [vmem:[%s1222_s28 + $0x1] sm:$0x7f] %v985_v22 }
  0x43   : > { %v260_v42 = vmul.f32 %v1024_v0, %v224_v35  ;;  %v422_v16 = vmul.f32 %v390_v29, %v294_v34  ;;  %v391_v50 = vmin.f32 %v359_v30, 6.0 }
  0x44   : > { %v482_v20 = vadd.f32 %v481_v57, %v1190_v3 }
  0x45   : > { %v296_v52 = vadd.f32 %v1035_v1, %v260_v42  ;;  %v423_v34 = vmul.f32 %v391_v50, %v295_v12 }
  0x47   : > { %v328_v2 = vadd.f32 3.0, %v296_v52  ;;  %v1228_v12 = vmul.f32 0.16666667, %v423_v34 }
  0x48   : > { %874 = vxpose.xlu0.b32.cont [6/16] %v873_v15, 128  ;;  %v324_v15 = vadd.f32 3.0, %v292_v63 }
  0x4a   : > { %v356_v31 = vmax.f32 %v324_v15, 0.0  ;;  %v311_v15 = vadd.f32 %v1035_v1, %v275_v48 }
  0x4c   : > { %v388_v43 = vmin.f32 %v356_v31, 6.0  ;;  %v343_v33 = vadd.f32 3.0, %v311_v15 }
  0x50   : > { %876 = vxpose.xlu0.b32.cont [7/16] %v875_v38, 128  ;;  %v308_v38 = vadd.f32 %v1035_v1, %v272_v21  ;;  %v309_v21 = vadd.f32 %v1035_v1, %v273_v61 }
  0x52   : > { %v340_v58 = vadd.f32 3.0, %v308_v38  ;;  %v341_v40 = vadd.f32 3.0, %v309_v21 }
  0x54   : > { %v372_v14 = vmax.f32 %v340_v58, 0.0  ;;  %v375_v58 = vmax.f32 %v343_v33, 0.0  ;;  %v373_v60 = vmax.f32 %v341_v40, 0.0 }
  0x56   : > { %v404_v31 = vmin.f32 %v372_v14, 6.0  ;;  %v405_v9 = vmin.f32 %v373_v60, 6.0 }
  0x58   : > { %878 = vxpose.xlu0.b32.cont [8/16] %v877_v7, 128  ;;  %v420_v7 = vmul.f32 %v388_v43, %v292_v63  ;;  %v310_v63 = vadd.f32 %v1035_v1, %v274_v5  ;;  %v276_v43 = vmul.f32 %v1024_v0, %v240_v37  ;;  %v436_v57 = vmul.f32 %v404_v31, %v308_v38 }
  0x59   : > { %v1217_v5 = vmul.f32 0.16666667, %v422_v16  ;;  %v360_v38 = vmax.f32 %v328_v2, 0.0  ;;  %v437_v33 = vmul.f32 %v405_v9, %v309_v21 }
  0x5a   : > { %v1200_v18 = vmul.f32 0.16666667, %v420_v7  ;;  %v342_v32 = vadd.f32 3.0, %v310_v63  ;;  %v312_v36 = vadd.f32 %v1035_v1, %v276_v43  ;;  %v1224_v1 = vmul.f32 0.16666667, %v436_v57 }
  0x5b   : > { %v407_v7 = vmin.f32 %v375_v58, 6.0  ;;  %v392_v14 = vmin.f32 %v360_v38, 6.0 }
  0x5c   : > { %v483_v11 = vadd.f32 %v482_v20, %v1200_v18  ;;  %v374_v48 = vmax.f32 %v342_v32, 0.0  ;;  %v344_v0 = vadd.f32 3.0, %v312_v36  ;;  %v885_v31 = vpack.i.bf16 %v1224_v1, %v1200_v18 }
  0x5d   : > { %v424_v26 = vmul.f32 %v392_v14, %v296_v52  ;;  %v439_v29 = vmul.f32 %v407_v7, %v311_v15  ;;  %v1243_v15 = vmul.f32 0.16666667, %v437_v33 }
  0x5e   : > { %v484_v61 = vadd.f32 %v483_v11, %v1209_v49  ;;  %v376_v8 = vmax.f32 %v344_v0, 0.0 }
  0x5f   : > { %v1233_v37 = vmul.f32 0.16666667, %v424_v26  ;;  %v1239_v42 = vmul.f32 0.16666667, %v439_v29  ;;  %v887_v43 = vpack.i.bf16 %v1243_v15, %v1209_v49 }
  0x60   : > { %880 = vxpose.xlu0.b32.cont [9/16] %v879_v39, 128  ;;  %v1204_v39 = vmul.f32 0.16666667, %v435_v19  ;;  %v406_v19 = vmin.f32 %v374_v48, 6.0  ;;  %v408_v20 = vmin.f32 %v376_v8, 6.0 }
  0x61   : > { %576 = vmatpush.msra.mxu0 %v1233_v37  ;;  %822 = vmatpush.msra.mxu2 %v1233_v37 }
  0x62   : > { %v883_v59 = vpack.i.bf16 %v1204_v39, %v1190_v3  ;;  %v440_v30 = vmul.f32 %v408_v20, %v312_v36  ;;  %v438_v11 = vmul.f32 %v406_v19, %v310_v63 }
  0x63   : > { %577 = vmatpush.msra.mxu0 %v1228_v12  ;;  %823 = vmatpush.msra.mxu2 %v1228_v12 }
  0x64   : > { %v1235_v40 = vmul.f32 0.16666667, %v440_v30  ;;  %v1247_v63 = vmul.f32 0.16666667, %v438_v11 }
  0x65   : > { %578 = vmatpush.msra.mxu0 %v1217_v5  ;;  %824 = vmatpush.msra.mxu2 %v1217_v5 }
  0x66   : > { %641 = vmatpush.msra.mxu1 %v1235_v40  ;;  %838 = vmatpush.msra.mxu3 %v1235_v40 }
  0x67   : > { %579 = vmatpush.msra.mxu0 %v1209_v49  ;;  %825 = vmatpush.msra.mxu2 %v1209_v49 }
  0x68   : > { %882 = vxpose.xlu0.b32.cont [10/16] %v881_v13, 128  ;;  %v485_v13 = vadd.f32 %v484_v61, %v1217_v5  ;;  %642 = vmatpush.msra.mxu1 %v1239_v42 }
  0x69   : > { %839 = vmatpush.msra.mxu3 %v1239_v42  ;;  %580 = vmatpush.msra.mxu0 %v1200_v18 }
  0x6a   : > { %v486_v35 = vadd.f32 %v485_v13, %v1228_v12  ;;  %643 = vmatpush.msra.mxu1 %v1247_v63  ;;  %826 = vmatpush.msra.mxu2 %v1200_v18  ;;  %v889_v18 = vpack.i.bf16 %v1247_v63, %v1217_v5 }
  0x6b   : > { %840 = vmatpush.msra.mxu3 %v1247_v63  ;;  %581 = vmatpush.msra.mxu0 %v1190_v3 }
  0x6c   : > { %v487_v21 = vadd.f32 %v486_v35, %v1233_v37  ;;  %644 = vmatpush.msra.mxu1 %v1243_v15  ;;  %827 = vmatpush.msra.mxu2 %v1190_v3 }
  0x6d   : > { %841 = vmatpush.msra.mxu3 %v1243_v15  ;;  %582 = vmatpush.msra.mxu0 %v1178_v41 }
  0x6e   : > { %v488_v32 = vadd.f32 %v487_v21, %v1063_v45  ;;  %645 = vmatpush.msra.mxu1 %v1224_v1  ;;  %828 = vmatpush.msra.mxu2 %v1178_v41 }
  0x6f   : > { %842 = vmatpush.msra.mxu3 %v1224_v1  ;;  %583 = vmatpush.msra.mxu0 %v1168_v25 }
  0x70   : > { %884 = vxpose.xlu0.b32.cont [11/16] %v883_v59, 128  ;;  %v489_v16 = vadd.f32 %v488_v32, %v1071_v56  ;;  %646 = vmatpush.msra.mxu1 %v1204_v39 }
  0x71   : > { %843 = vmatpush.msra.mxu3 %v1204_v39  ;;  %584 = vmatpush.msra.mxu0 %v1151_v51 }
  0x72   : > { %v490_v50 = vadd.f32 %v489_v16, %v1084_v10  ;;  %647 = vmatpush.msra.mxu1 %v1182_v53  ;;  %829 = vmatpush.msra.mxu2 %v1168_v25  ;;  %v891_v25 = vpack.i.bf16 %v1239_v42, %v1228_v12 }
  0x73   : > { %844 = vmatpush.msra.mxu3 %v1182_v53  ;;  %585 = vmatpush.msra.mxu0 %v1135_v24 }
  0x74   : > { %v491_v52 = vadd.f32 %v490_v50, %v1097_v27  ;;  %648 = vmatpush.msra.mxu1 %v1170_v17  ;;  %830 = vmatpush.msra.mxu2 %v1151_v51 }
  0x75   : > { %845 = vmatpush.msra.mxu3 %v1170_v17  ;;  %586 = vmatpush.msra.mxu0 %v1119_v62 }
  0x76   : > { %v492_v49 = vadd.f32 %v491_v52, %v1108_v47  ;;  %649 = vmatpush.msra.mxu1 %v1154_v54  ;;  %831 = vmatpush.msra.mxu2 %v1135_v24 }
  0x77   : > { %846 = vmatpush.msra.mxu3 %v1154_v54  ;;  %587 = vmatpush.msra.mxu0 %v1106_v46 }
  0x78   : > { %886 = vxpose.xlu0.b32.cont [12/16] %v885_v31, 128  ;;  %v493_v57 = vadd.f32 %v492_v49, %v1121_v4  ;;  %650 = vmatpush.msra.mxu1 %v1138_v28 }
  0x79   : > { %847 = vmatpush.msra.mxu3 %v1138_v28  ;;  %832 = vmatpush.msra.mxu2 %v1119_v62 }
  0x7a   : > { %v494_v58 = vadd.f32 %v493_v57, %v1138_v28  ;;  %651 = vmatpush.msra.mxu1 %v1121_v4  ;;  %588 = vmatpush.msra.mxu0 %v1093_v23 }
  0x7b   : > { %848 = vmatpush.msra.mxu3 %v1121_v4  ;;  %833 = vmatpush.msra.mxu2 %v1106_v46  ;;  %v893_v46 = vpack.i.bf16 %v1235_v40, %v1233_v37 }
  0x7c   : > { %v495_v3 = vadd.f32 %v494_v58, %v1154_v54  ;;  %652 = vmatpush.msra.mxu1 %v1108_v47  ;;  %589 = vmatpush.msra.mxu0 %v1081_v6 }
  0x7d   : > { %849 = vmatpush.msra.mxu3 %v1108_v47  ;;  %834 = vmatpush.msra.mxu2 %v1093_v23 }
  0x7e   : > { %v496_v41 = vadd.f32 %v495_v3, %v1170_v17  ;;  %653 = vmatpush.msra.mxu1 %v1097_v27  ;;  %590 = vmatpush.msra.mxu0 %v1069_v55 }
  0x7f   : > { %850 = vmatpush.msra.mxu3 %v1097_v27  ;;  %835 = vmatpush.msra.mxu2 %v1081_v6 }
  0x80   : > { %888 = vxpose.xlu0.b32.cont [13/16] %v887_v43, 128  ;;  %v497_v36 = vadd.f32 %v496_v41, %v1182_v53  ;;  %654 = vmatpush.msra.mxu1 %v1084_v10 }
  0x81   : > { %591 = vmatpush.msra.mxu0 %v1061_v44  ;;  %851 = vmatpush.msra.mxu3 %v1084_v10 }
  0x82   : > { %v498_v51 = vadd.f32 %v497_v36, %v1204_v39  ;;  %655 = vmatpush.msra.mxu1 %v1071_v56  ;;  %836 = vmatpush.msra.mxu2 %v1069_v55 }
  0x83   : > { %852 = vmatpush.msra.mxu3 %v1071_v56 }
  0x84   : > { %v499_v24 = vadd.f32 %v498_v51, %v1224_v1  ;;  %656 = vmatpush.msra.mxu1 %v1063_v45  ;;  %837 = vmatpush.msra.mxu2 %v1061_v44 }
  0x85   : > { %853 = vmatpush.msra.mxu3 %v1063_v45 }
  0x86   : > { %v500_v62 = vadd.f32 %v499_v24, %v1243_v15 }
  0x88   : > { %890 = vxpose.xlu0.b32.cont [14/16] %v889_v18, 128  ;;  %v501_v4 = vadd.f32 %v500_v62, %v1247_v63 }
  0x8a   : > { %v502_v23 = vadd.f32 %v501_v4, %v1239_v42 }
  0x8c   : > { %v503_v27 = vadd.f32 %v502_v23, %v1235_v40 }
  0x8e   : > { %v504_v47 = vrot.slane %v503_v27, 4 }
  0x90   : > { %892 = vxpose.xlu0.b32.cont [15/16] %v891_v25, 128  ;;  %v505_v6 = vadd.f32 %v504_v47, %v503_v27 }
  0x92   : > { %v506_v28 = vrot.slane %v505_v6, 2 }
  0x94   : > { %v507_v54 = vadd.f32 %v506_v28, %v505_v6 }
  0x96   : > { %v508_v17 = vrot.slane %v507_v54, 1 }
  0x98   : > { %894 = vxpose.xlu0.b32.end [16/16] %v893_v46, 128  ;;  %v509_v53 = vadd.f32 %v508_v17, %v507_v54 }
  0x9a   : > { %510 = vst [vmem:[%s1222_s28] sm:$0x1] %v509_v53 }
  0xc4   : > { %v895_v10 = vpop.trf.xlu0 }
  0xc5   : > { %v896_v39 = vunpack.i.l.bf16 %v895_v10  ;;  %v899_v59 = vunpack.i.h.bf16 %v895_v10 }
  0xc7   : > { %592 = vmatmul.f32.vlgmr.msra.gmra.mxu0 %v896_v39  ;;  %657 = vmatmul.f32.vlgmr.msra.gmra.mxu1 %v899_v59 }
  0xcc   : > { %v900_v55 = vpop.trf.xlu0 }
  0xcd   : > { %v901_v56 = vunpack.i.l.bf16 %v900_v55  ;;  %v904_v60 = vunpack.i.h.bf16 %v900_v55 }
  0xcf   : > { %595 = vmatmul.f32.gmra.mxu0 %v901_v56  ;;  %660 = vmatmul.f32.gmra.mxu1 %v904_v60 }
  0xd4   : > { %v905_v44 = vpop.trf.xlu0 }
  0xd5   : > { %v906_v61 = vunpack.i.l.bf16 %v905_v44  ;;  %v909_v45 = vunpack.i.h.bf16 %v905_v44 }
  0xd7   : > { %598 = vmatmul.f32.gmra.mxu0 %v906_v61  ;;  %663 = vmatmul.f32.gmra.mxu1 %v909_v45 }
  0xdc   : > { %v910_v2 = vpop.trf.xlu0 }
  0xdd   : > { %v911_v48 = vunpack.i.l.bf16 %v910_v2  ;;  %v914_v0 = vunpack.i.h.bf16 %v910_v2 }
  0xdf   : > { %601 = vmatmul.f32.gmra.mxu0 %v911_v48  ;;  %666 = vmatmul.f32.gmra.mxu1 %v914_v0 }
  0xe4   : > { %v915_v5 = vpop.trf.xlu0 }
  0xe5   : > { %v916_v34 = vunpack.i.l.bf16 %v915_v5  ;;  %v919_v38 = vunpack.i.h.bf16 %v915_v5 }
  0xe7   : > { %604 = vmatmul.f32.gmra.mxu0 %v916_v34  ;;  %669 = vmatmul.f32.gmra.mxu1 %v919_v38 }
  0xec   : > { %v920_v1 = vpop.trf.xlu0 }
  0xed   : > { %v921_v7 = vunpack.i.l.bf16 %v920_v1  ;;  %v924_v8 = vunpack.i.h.bf16 %v920_v1 }
  0xef   : > { %607 = vmatmul.f32.gmra.mxu0 %v921_v7  ;;  %672 = vmatmul.f32.gmra.mxu1 %v924_v8 }
  0xf4   : > { %v925_v9 = vpop.trf.xlu0 }
  0xf5   : > { %v926_v13 = vunpack.i.l.bf16 %v925_v9  ;;  %v929_v14 = vunpack.i.h.bf16 %v925_v9 }
  0xf7   : > { %610 = vmatmul.f32.gmra.mxu0 %v926_v13  ;;  %675 = vmatmul.f32.gmra.mxu1 %v929_v14 }
  0xfc   : > { %v930_v19 = vpop.trf.xlu0 }
  0xfd   : > { %v931_v20 = vunpack.i.l.bf16 %v930_v19  ;;  %v934_v22 = vunpack.i.h.bf16 %v930_v19 }
  0xff   : > { %613 = vmatmul.f32.gmra.mxu0 %v931_v20  ;;  %678 = vmatmul.f32.gmra.mxu1 %v934_v22 }
 0x104   : > { %v935_v12 = vpop.trf.xlu0 }
 0x105   : > { %v936_v26 = vunpack.i.l.bf16 %v935_v12  ;;  %v939_v29 = vunpack.i.h.bf16 %v935_v12 }
 0x107   : > { %616 = vmatmul.f32.vlgmr.msra.gmra.mxu2 %v936_v26  ;;  %681 = vmatmul.f32.vlgmr.msra.gmra.mxu3 %v939_v29 }
 0x10c   : > { %v940_v30 = vpop.trf.xlu0 }
 0x10d   : > { %v941_v31 = vunpack.i.l.bf16 %v940_v30  ;;  %v944_v33 = vunpack.i.h.bf16 %v940_v30 }
 0x10f   : > { %619 = vmatmul.f32.gmra.mxu2 %v941_v31  ;;  %684 = vmatmul.f32.gmra.mxu3 %v944_v33 }
 0x114   : > { %v945_v35 = vpop.trf.xlu0 }
 0x115   : > { %v946_v37 = vunpack.i.l.bf16 %v945_v35  ;;  %v949_v11 = vunpack.i.h.bf16 %v945_v35 }
 0x117   : > { %622 = vmatmul.f32.gmra.mxu2 %v946_v37  ;;  %687 = vmatmul.f32.gmra.mxu3 %v949_v11 }
 0x11c   : > { %v950_v40 = vpop.trf.xlu0 }
 0x11d   : > { %v951_v42 = vunpack.i.l.bf16 %v950_v40  ;;  %v954_v15 = vunpack.i.h.bf16 %v950_v40 }
 0x11f   : > { %625 = vmatmul.f32.gmra.mxu2 %v951_v42  ;;  %690 = vmatmul.f32.gmra.mxu3 %v954_v15 }
 0x124   : > { %v955_v21 = vpop.trf.xlu0 }
 0x125   : > { %v956_v63 = vunpack.i.l.bf16 %v955_v21  ;;  %v959_v32 = vunpack.i.h.bf16 %v955_v21 }
 0x127   : > { %628 = vmatmul.f32.gmra.mxu2 %v956_v63  ;;  %693 = vmatmul.f32.gmra.mxu3 %v959_v32 }
 0x12c   : > { %v960_v43 = vpop.trf.xlu0 }
 0x12d   : > { %v961_v16 = vunpack.i.l.bf16 %v960_v43  ;;  %v964_v50 = vunpack.i.h.bf16 %v960_v43 }
 0x12f   : > { %631 = vmatmul.f32.gmra.mxu2 %v961_v16  ;;  %696 = vmatmul.f32.gmra.mxu3 %v964_v50 }
 0x134   : > { %v965_v52 = vpop.trf.xlu0 }
 0x135   : > { %v966_v49 = vunpack.i.l.bf16 %v965_v52  ;;  %v969_v18 = vunpack.i.h.bf16 %v965_v52 }
 0x137   : > { %634 = vmatmul.f32.gmra.mxu2 %v966_v49  ;;  %699 = vmatmul.f32.gmra.mxu3 %v969_v18 }
 0x13c   : > { %v970_v57 = vpop.trf.xlu0 }
 0x13d   : > { %v971_v58 = vunpack.i.l.bf16 %v970_v57  ;;  %v974_v3 = vunpack.i.h.bf16 %v970_v57 }
 0x13f   : > { %637 = vmatmul.f32.gmra.mxu2 %v971_v58  ;;  %702 = vmatmul.f32.gmra.mxu3 %v974_v3 }
 0x144   : > { %v593_v41 = vpop.f32.mrf.mxu0  ;;  %v658_v25 = vpop.f32.mrf.mxu1 }
 0x145   : > { %v659_v36 = vadd.f32 %v658_v25, %v593_v41 }
 0x147   : > { %706 = vst [vmem:[%s1337_s6] sm:$0xff] %v659_v36 }
 0x14c   : > { %v596_v51 = vpop.f32.mrf.mxu0  ;;  %v661_v24 = vpop.f32.mrf.mxu1 }
 0x14d   : > { %v662_v62 = vadd.f32 %v661_v24, %v596_v51 }
 0x14f   : > { %707 = vst [vmem:[%s1337_s6 + $0x8] sm:$0xff] %v662_v62 }
 0x154   : > { %v599_v46 = vpop.f32.mrf.mxu0  ;;  %v664_v4 = vpop.f32.mrf.mxu1 }
 0x155   : > { %v665_v23 = vadd.f32 %v664_v4, %v599_v46 }
 0x157   : > { %708 = vst [vmem:[%s1337_s6 + $0x10] sm:$0xff] %v665_v23 }
 0x15c   : > { %v602_v27 = vpop.f32.mrf.mxu0  ;;  %v667_v47 = vpop.f32.mrf.mxu1 }
 0x15d   : > { %v668_v6 = vadd.f32 %v667_v47, %v602_v27 }
 0x15f   : > { %709 = vst [vmem:[%s1337_s6 + $0x18] sm:$0xff] %v668_v6 }
 0x164   : > { %v605_v28 = vpop.f32.mrf.mxu0  ;;  %v670_v54 = vpop.f32.mrf.mxu1 }
 0x165   : > { %v671_v17 = vadd.f32 %v670_v54, %v605_v28 }
 0x167   : > { %710 = vst [vmem:[%s1337_s6 + $0x20] sm:$0xff] %v671_v17 }
 0x16c   : > { %v608_v53 = vpop.f32.mrf.mxu0  ;;  %v673_v10 = vpop.f32.mrf.mxu1 }
 0x16d   : > { %v674_v39 = vadd.f32 %v673_v10, %v608_v53 }
 0x16f   : > { %711 = vst [vmem:[%s1337_s6 + $0x28] sm:$0xff] %v674_v39 }
 0x174   : > { %v611_v59 = vpop.f32.mrf.mxu0  ;;  %v676_v55 = vpop.f32.mrf.mxu1 }
 0x175   : > { %v677_v56 = vadd.f32 %v676_v55, %v611_v59 }
 0x177   : > { %712 = vst [vmem:[%s1337_s6 + $0x30] sm:$0xff] %v677_v56 }
 0x17c   : > { %v614_v60 = vpop.f32.mrf.mxu0  ;;  %v679_v44 = vpop.f32.mrf.mxu1 }
 0x17d   : > { %v680_v61 = vadd.f32 %v679_v44, %v614_v60 }
 0x17f   : > { %713 = vst [vmem:[%s1337_s6 + $0x38] sm:$0xff] %v680_v61 }
 0x18a   : > { %v617_v45 = vpop.f32.mrf.mxu2  ;;  %v682_v2 = vpop.f32.mrf.mxu3 }
 0x18b   : > { %v683_v48 = vadd.f32 %v682_v2, %v617_v45 }
 0x18d   : > { %714 = vst [vmem:[%s1337_s6 + $0x40] sm:$0xff] %v683_v48 }
 0x192   : > { %v620_v0 = vpop.f32.mrf.mxu2  ;;  %v685_v5 = vpop.f32.mrf.mxu3 }
 0x193   : > { %v686_v34 = vadd.f32 %v685_v5, %v620_v0 }
 0x195   : > { %715 = vst [vmem:[%s1337_s6 + $0x48] sm:$0xff] %v686_v34 }
 0x19a   : > { %v623_v38 = vpop.f32.mrf.mxu2  ;;  %v688_v1 = vpop.f32.mrf.mxu3 }
 0x19b   : > { %v689_v7 = vadd.f32 %v688_v1, %v623_v38 }
 0x19d   : > { %716 = vst [vmem:[%s1337_s6 + $0x50] sm:$0xff] %v689_v7 }
 0x1a2   : > { %v626_v8 = vpop.f32.mrf.mxu2  ;;  %v691_v9 = vpop.f32.mrf.mxu3 }
 0x1a3   : > { %v692_v13 = vadd.f32 %v691_v9, %v626_v8 }
 0x1a5   : > { %717 = vst [vmem:[%s1337_s6 + $0x58] sm:$0xff] %v692_v13 }
 0x1aa   : > { %v629_v14 = vpop.f32.mrf.mxu2  ;;  %v694_v19 = vpop.f32.mrf.mxu3 }
 0x1ab   : > { %v695_v20 = vadd.f32 %v694_v19, %v629_v14 }
 0x1ad   : > { %718 = vst [vmem:[%s1337_s6 + $0x60] sm:$0xff] %v695_v20 }
 0x1b2   : > { %v632_v22 = vpop.f32.mrf.mxu2  ;;  %v697_v12 = vpop.f32.mrf.mxu3 }
 0x1b3   : > { %v698_v26 = vadd.f32 %v697_v12, %v632_v22 }
 0x1b5   : > { %719 = vst [vmem:[%s1337_s6 + $0x68] sm:$0xff] %v698_v26 }
 0x1ba   : > { %v635_v29 = vpop.f32.mrf.mxu2  ;;  %v700_v30 = vpop.f32.mrf.mxu3 }
 0x1bb   : > { %v701_v31 = vadd.f32 %v700_v30, %v635_v29 }
 0x1bd   : > { %720 = vst [vmem:[%s1337_s6 + $0x70] sm:$0xff] %v701_v31 }
 0x1c2   : > { %v638_v33 = vpop.f32.mrf.mxu2  ;;  %v703_v35 = vpop.f32.mrf.mxu3 }
 0x1c3   : > { %v704_v37 = vadd.f32 %v703_v35, %v638_v33 }
 0x1c5   : > { %721 = vst [vmem:[%s1337_s6 + $0x78] sm:$0xff] %v704_v37 }
 0x1c6 PF: > { %s15_s15 = sadd.s32 1, %s983_s15  }
 0x1c7   : > { %p12_p4 = scmp.ge.s32.totalorder %s15_s15, 4  }
 0x1c9   :  { %14 = sbr.rel (!%p12_p4) target bundleno = 1 (0x1), region = 74 }

// kernel: irblock_forward.8
= control target key start
LH: loop header
LB: loop body
LE: loop exit
PB: predicated region body
PF: predicated region fallthrough
CT: control target
= control target key end

     0   :  { %s251_s1 = inlined_call_operand.vmem [shape: f32[128,128], index: 1, kind: input, shape index: {}]   ;;  %s252_s3 = inlined_call_operand.vmem [shape: f32[128,128], index: 3, kind: input, shape index: {}]   ;;  %s253_s2 = inlined_call_operand.vmem [shape: f32[1,128], index: 2, kind: input, shape index: {}]   ;;  %s254_s0 = inlined_call_operand.vmem [shape: f32[2,128], index: 0, kind: input, shape index: {}]   ;;  %s255_s4 = inlined_call_operand.vmem [shape: f32[1,128], index: 4, kind: input, shape index: {}]   ;;  %s256_s5 = inlined_call_operand.vmem [shape: f32[2,128], index: 5, kind: output, shape index: {}]  }
   0x1   :  { %v36_v0 = vld [vmem:[%s251_s1 + $0x78] sm:$0xff]  ;;  %v35_v1 = vld [vmem:[%s251_s1 + $0x70] sm:$0xff]  ;;  %v34_v2 = vld [vmem:[%s251_s1 + $0x68] sm:$0xff] }
   0x2   :  { %41 = vmatpush.msra.mxu0 %v36_v0  ;;  %v33_v3 = vld [vmem:[%s251_s1 + $0x60] sm:$0xff]  ;;  %v77_v4 = vld [vmem:[%s252_s3 + $0x78] sm:$0xff]  ;;  %v76_v6 = vld [vmem:[%s252_s3 + $0x70] sm:$0xff] }
   0x3   :  { %v32_v5 = vld [vmem:[%s251_s1 + $0x58] sm:$0xff]  ;;  %82 = vmatpush.msra.mxu1 %v77_v4  ;;  %v75_v7 = vld [vmem:[%s252_s3 + $0x68] sm:$0xff]  ;;  %v31_v8 = vld [vmem:[%s251_s1 + $0x50] sm:$0xff] }
   0x4   :  { %42 = vmatpush.msra.mxu0 %v35_v1  ;;  %v74_v9 = vld [vmem:[%s252_s3 + $0x60] sm:$0xff]  ;;  %v30_v10 = vld [vmem:[%s251_s1 + $0x48] sm:$0xff]  ;;  %v73_v11 = vld [vmem:[%s252_s3 + $0x58] sm:$0xff] }
   0x5   :  { %83 = vmatpush.msra.mxu1 %v76_v6  ;;  %v29_v12 = vld [vmem:[%s251_s1 + $0x40] sm:$0xff]  ;;  %v72_v13 = vld [vmem:[%s252_s3 + $0x50] sm:$0xff]  ;;  %v28_v14 = vld [vmem:[%s251_s1 + $0x38] sm:$0xff] }
   0x6   :  { %43 = vmatpush.msra.mxu0 %v34_v2  ;;  %v71_v15 = vld [vmem:[%s252_s3 + $0x48] sm:$0xff]  ;;  %v27_v16 = vld [vmem:[%s251_s1 + $0x30] sm:$0xff]  ;;  %v70_v17 = vld [vmem:[%s252_s3 + $0x40] sm:$0xff] }
   0x7   :  { %84 = vmatpush.msra.mxu1 %v75_v7  ;;  %v26_v18 = vld [vmem:[%s251_s1 + $0x28] sm:$0xff]  ;;  %v69_v19 = vld [vmem:[%s252_s3 + $0x38] sm:$0xff]  ;;  %v25_v20 = vld [vmem:[%s251_s1 + $0x20] sm:$0xff] }
   0x8   :  { %44 = vmatpush.msra.mxu0 %v33_v3  ;;  %v68_v21 = vld [vmem:[%s252_s3 + $0x30] sm:$0xff]  ;;  %v24_v22 = vld [vmem:[%s251_s1 + $0x18] sm:$0xff]  ;;  %v67_v23 = vld [vmem:[%s252_s3 + $0x28] sm:$0xff] }
   0x9   :  { %85 = vmatpush.msra.mxu1 %v74_v9  ;;  %v23_v24 = vld [vmem:[%s251_s1 + $0x10] sm:$0xff]  ;;  %v66_v25 = vld [vmem:[%s252_s3 + $0x20] sm:$0xff]  ;;  %v22_v26 = vld [vmem:[%s251_s1 + $0x8] sm:$0xff] }
   0xa   :  { %45 = vmatpush.msra.mxu0 %v32_v5  ;;  %v65_v27 = vld [vmem:[%s252_s3 + $0x18] sm:$0xff]  ;;  %v21_v28 = vld [vmem:[%s251_s1] sm:$0xff]  ;;  %v64_v30 = vld [vmem:[%s252_s3 + $0x10] sm:$0xff] }
   0xb   :  { %86 = vmatpush.msra.mxu1 %v73_v11  ;;  %v20_v29 = vld [vmem:[%s254_s0] sm:$0x3]  ;;  %v63_v31 = vld [vmem:[%s252_s3 + $0x8] sm:$0xff] }
   0xc   :  { %46 = vmatpush.msra.mxu0 %v31_v8  ;;  %v62_v32 = vld [vmem:[%s252_s3] sm:$0xff] }
   0xd   :  { %87 = vmatpush.msra.mxu1 %v72_v13  ;;  %v111_v33 = vld [vmem:[%s253_s2] ss:$0 sm:$0xff] }
   0xe   :  { %47 = vmatpush.msra.mxu0 %v30_v10  ;;  %v112_v37 = vld [vmem:[%s255_s4] ss:$0 sm:$0xff] }
   0xf   :  { %88 = vmatpush.msra.mxu1 %v71_v15 }
  0x10   :  { %48 = vmatpush.msra.mxu0 %v29_v12 }
  0x11   :  { %89 = vmatpush.msra.mxu1 %v70_v17 }
  0x12   :  { %49 = vmatpush.msra.mxu0 %v28_v14 }
  0x13   :  { %90 = vmatpush.msra.mxu1 %v69_v19 }
  0x14   :  { %50 = vmatpush.msra.mxu0 %v27_v16 }
  0x15   :  { %91 = vmatpush.msra.mxu1 %v68_v21 }
  0x16   :  { %51 = vmatpush.msra.mxu0 %v26_v18 }
  0x17   :  { %92 = vmatpush.msra.mxu1 %v67_v23 }
  0x18   :  { %52 = vmatpush.msra.mxu0 %v25_v20 }
  0x19   :  { %93 = vmatpush.msra.mxu1 %v66_v25 }
  0x1a   :  { %53 = vmatpush.msra.mxu0 %v24_v22 }
  0x1b   :  { %94 = vmatpush.msra.mxu1 %v65_v27 }
  0x1c   :  { %54 = vmatpush.msra.mxu0 %v23_v24 }
  0x1d   :  { %95 = vmatpush.msra.mxu1 %v64_v30 }
  0x1e   :  { %55 = vmatpush.msra.mxu0 %v22_v26 }
  0x1f   :  { %96 = vmatpush.msra.mxu1 %v63_v31 }
  0x20   :  { %56 = vmatpush.msra.mxu0 %v21_v28 }
  0x21   :  { %57 = vmatmul.f32.vlgmr.msra.gmra.mxu0 %v20_v29  ;;  %97 = vmatpush.msra.mxu1 %v62_v32 }
  0x9e   :  { %v58_v34 = vpop.f32.mrf.mxu0 }
  0x9f   :  { %v59_v35 = vadd.f32 %v111_v33, %v58_v34 }
  0xa1   :  { %v61_v36 = vmax.f32 %v59_v35, 0.0 }
  0xa3   :  { %98 = vmatmul.f32.vlgmr.msra.gmra.mxu1 %v61_v36 }
 0x120   :  { %v99_v38 = vpop.f32.mrf.mxu1 }
 0x121   :  { %v100_v39 = vadd.f32 %v112_v37, %v99_v38 }
 0x123   :  { %v102_v40 = vadd.f32 3.0, %v100_v39 }
 0x125   :  { %v103_v41 = vmax.f32 %v102_v40, 0.0 }
 0x127   :  { %v104_v42 = vmin.f32 %v103_v41, 6.0 }
 0x129   :  { %v105_v43 = vmul.f32 0.16666667, %v104_v42 }
 0x12b   :  { %106 = vst [vmem:[%s256_s5] sm:$0x3] %v105_v43 }

// kernel: irblock_forward.6
= control target key start
LH: loop header
LB: loop body
LE: loop exit
PB: predicated region body
PF: predicated region fallthrough
CT: control target
= control target key end

     0   :  { %s1931_s21 = smov 0   ;;  %s3122_s0 = inlined_call_operand.vmem [shape: f32[2,16,16,128], index: 0, kind: input, shape index: {}]   ;;  %s3123_s1 = inlined_call_operand.vmem [shape: f32[9,128], index: 1, kind: input, shape index: {}]   ;;  %s3124_s2 = inlined_call_operand.vmem [shape: f32[1,128], index: 2, kind: input, shape index: {}]   ;;  %s3125_s3 = inlined_call_operand.vmem [shape: f32[1,128], index: 3, kind: input, shape index: {}]   ;;  %s3126_s4 = inlined_call_operand.vmem [shape: f32[2,16,16,128], index: 4, kind: output, shape index: {0}]   ;;  %s3127_s5 = inlined_call_operand.vmem [shape: f32[16,128], index: 5, kind: output, shape index: {1}]   ;;  %s3128_s6 = inlined_call_operand.vmem [shape: f32[16,128], index: 6, kind: output, shape index: {2}]  }
   0x1 LB: > { %s1802_s22 = sadd.s32 4294967295, %s1893_s21   ;;  %p1806_p0 = scmp.ge.s32.totalorder %s1893_s21, 1  ;;  %s1893_s21 = sphi %s1931_s21, %s17_s21  }
   0x2   : > { %p217_p1 = scmp.lt.s32.totalorder %s1893_s21, 3 }
   0x4   : > { %p218_p2 = pnand %p1806_p0, %p217_p1 }
   0x6   : > { %221 = sbr.rel (%p218_p2) target bundleno = 261 (0x105), region = 36 }
   0xb   : > { %p255_p3 = scmp.lt.s32.totalorder %s1802_s22, 1  ;;  %v1895_v0 = vmov 0.0   ;;  %v1943_v1 = vld [vmem:[%s3124_s2] ss:$0 sm:$0xff] }
   0xc   : > { %273 = vst [vmem:[#allocation2] sm:$0xff] %v1895_v0  ;;  %v1952_v2 = vld [vmem:[%s3125_s3] ss:$0 sm:$0xff] }
   0xd   : > { %274 = vst [vmem:[#allocation2 + $0x8] sm:$0xff] %v1895_v0  ;;  %s3183_s22 = smov (!%p255_p3, %s1802_s22), 1 }
   0xe   : > { %275 = vst [vmem:[#allocation2 + $0x10] sm:$0x3] %v1895_v0  ;;  %s1831_s27 = sshll.u32 %s3183_s22, 8  ;;  %s1811_s19 = sshll.u32 %s3183_s22, 3 }
   0xf   : > { %276 = vst [vmem:[#allocation2 + $0x18] sm:$0xff] %v1895_v0  ;;  %s1962_s30 = scalar_lea.vmem %s3122_s0, %s1831_s27  ;;  %s2319_s7 = scalar_lea.vmem %s3126_s4, %s1831_s27 }
  0x10   : > { %277 = vst [vmem:[#allocation2 + $0x20] sm:$0xff] %v1895_v0  ;;  %v327_v3 = vld [vmem:[%s1962_s30] sm:$0xff]  ;;  %v328_v5 = vld [vmem:[%s1962_s30 + $0x8] sm:$0xff]  ;;  %v329_v8 = vld [vmem:[%s1962_s30 + $0x10] sm:$0xff]  ;;  %s2480_s26 = scalar_lea.vmem %s3127_s5, %s1811_s19  ;;  %s2591_s11 = scalar_lea.vmem %s3128_s6, %s1811_s19 }
  0x11   : > { %278 = vst [vmem:[#allocation2 + $0x28] sm:$0x3] %v1895_v0  ;;  %v363_v4 = vmul.f32 %v1943_v1, %v327_v3  ;;  %v364_v7 = vmul.f32 %v1943_v1, %v328_v5  ;;  %v365_v9 = vmul.f32 %v1943_v1, %v329_v8  ;;  %v337_v10 = vld [vmem:[%s1962_s30 + $0x50] sm:$0xff]  ;;  %v338_v14 = vld [vmem:[%s1962_s30 + $0x58] sm:$0xff]  ;;  %v339_v17 = vld [vmem:[%s1962_s30 + $0x60] sm:$0xff] }
  0x12   : > { %279 = vst [vmem:[#allocation2 + $0x30] sm:$0xff] %v1895_v0  ;;  %v373_v13 = vmul.f32 %v1943_v1, %v337_v10  ;;  %v374_v16 = vmul.f32 %v1943_v1, %v338_v14  ;;  %v375_v21 = vmul.f32 %v1943_v1, %v339_v17  ;;  %v340_v22 = vld [vmem:[%s1962_s30 + $0x68] sm:$0xff]  ;;  %v341_v26 = vld [vmem:[%s1962_s30 + $0x70] sm:$0xff]  ;;  %v342_v43 = vld [vmem:[%s1962_s30 + $0x78] sm:$0xff] }
  0x13   : > { %280 = vst [vmem:[#allocation2 + $0x38] sm:$0xff] %v1895_v0  ;;  %v399_v6 = vadd.f32 %v1952_v2, %v363_v4  ;;  %v400_v12 = vadd.f32 %v1952_v2, %v364_v7  ;;  %v401_v15 = vadd.f32 %v1952_v2, %v365_v9  ;;  %v376_v25 = vmul.f32 %v1943_v1, %v340_v22  ;;  %v343_v51 = vld [vmem:[%s1962_s30 + $0x80] sm:$0xff]  ;;  %v344_v55 = vld [vmem:[%s1962_s30 + $0x88] sm:$0xff]  ;;  %v345_v60 = vld [vmem:[%s1962_s30 + $0x90] sm:$0xff] }
  0x14   : > { %281 = vst [vmem:[#allocation2 + $0x40] sm:$0x3] %v1895_v0  ;;  %v409_v20 = vadd.f32 %v1952_v2, %v373_v13  ;;  %v410_v24 = vadd.f32 %v1952_v2, %v374_v16  ;;  %v411_v30 = vadd.f32 %v1952_v2, %v375_v21  ;;  %v377_v34 = vmul.f32 %v1943_v1, %v341_v26  ;;  %v330_v4 = vld [vmem:[%s1962_s30 + $0x18] sm:$0xff]  ;;  %v331_v14 = vld [vmem:[%s1962_s30 + $0x20] sm:$0xff] }
  0x15   : > { %282 = vst [vmem:[#allocation2 + $0x48] sm:$0xff] %v1895_v0  ;;  %v431_v11 = vadd.f32 3.0, %v399_v6  ;;  %v432_v19 = vadd.f32 3.0, %v400_v12  ;;  %v433_v23 = vadd.f32 3.0, %v401_v15  ;;  %v412_v33 = vadd.f32 %v1952_v2, %v376_v25  ;;  %v346_v5 = vld [vmem:[%s1962_s30 + $0x98] sm:$0xff] }
  0x16   : > { %283 = vst [vmem:[#allocation2 + $0x50] sm:$0xff] %v1895_v0  ;;  %v441_v29 = vadd.f32 3.0, %v409_v20  ;;  %v442_v32 = vadd.f32 3.0, %v410_v24  ;;  %v443_v38 = vadd.f32 3.0, %v411_v30  ;;  %v2001_v42 = vadd.f32 %v1952_v2, %v377_v34 }
  0x17   : > { %284 = vst [vmem:[#allocation2 + $0x58] sm:$0x3] %v1895_v0  ;;  %v463_v18 = vmax.f32 %v431_v11, 0.0  ;;  %v464_v28 = vmax.f32 %v432_v19, 0.0  ;;  %v465_v31 = vmax.f32 %v433_v23, 0.0  ;;  %v444_v41 = vadd.f32 3.0, %v412_v33 }
  0x18   : > { %285 = vst [vmem:[#allocation2 + $0x60] sm:$0xff] %v1895_v0  ;;  %v473_v37 = vmax.f32 %v441_v29, 0.0  ;;  %v474_v40 = vmax.f32 %v442_v32, 0.0  ;;  %v475_v46 = vmax.f32 %v443_v38, 0.0  ;;  %v445_v50 = vadd.f32 3.0, %v2001_v42  ;;  %v347_v23 = vld [vmem:[%s1962_s30 + $0xa0] sm:$0xff] }
  0x19   : > { %286 = vst [vmem:[#allocation2 + $0x68] sm:$0xff] %v1895_v0  ;;  %v495_v27 = vmin.f32 %v463_v18, 6.0  ;;  %v496_v36 = vmin.f32 %v464_v28, 6.0  ;;  %v497_v39 = vmin.f32 %v465_v31, 6.0  ;;  %v476_v49 = vmax.f32 %v444_v41, 0.0 }
  0x1a   : > { %287 = vst [vmem:[#allocation2 + $0x70] sm:$0x3] %v1895_v0  ;;  %v505_v45 = vmin.f32 %v473_v37, 6.0  ;;  %v506_v48 = vmin.f32 %v474_v40, 6.0  ;;  %v507_v53 = vmin.f32 %v475_v46, 6.0  ;;  %v378_v54 = vmul.f32 %v1943_v1, %v342_v43 }
  0x1b   : > { %288 = vst [vmem:[#allocation2 + $0x78] sm:$0xff] %v1895_v0  ;;  %v527_v35 = vmul.f32 %v495_v27, %v399_v6  ;;  %v528_v44 = vmul.f32 %v496_v36, %v400_v12  ;;  %v529_v47 = vmul.f32 %v497_v39, %v401_v15  ;;  %v508_v58 = vmin.f32 %v476_v49, 6.0 }
  0x1c   : > { %289 = vst [vmem:[#allocation2 + $0x80] sm:$0xff] %v1895_v0  ;;  %v537_v52 = vmul.f32 %v505_v45, %v409_v20  ;;  %v538_v57 = vmul.f32 %v506_v48, %v410_v24  ;;  %v477_v59 = vmax.f32 %v445_v50, 0.0  ;;  %v539_v62 = vmul.f32 %v507_v53, %v411_v30  ;;  %v332_v45 = vld [vmem:[%s1962_s30 + $0x28] sm:$0xff] }
  0x1d   : > { %290 = vst [vmem:[#allocation2 + $0x88] sm:$0x3] %v1895_v0  ;;  %v2012_v56 = vmul.f32 0.16666667, %v527_v35  ;;  %v2016_v61 = vmul.f32 0.16666667, %v528_v44  ;;  %v414_v63 = vadd.f32 %v1952_v2, %v378_v54  ;;  %v379_v3 = vmul.f32 %v1943_v1, %v343_v51 }
  0x1e   : > { %291 = vst [vmem:[#allocation2 + $0x90] sm:$0xff] %v1895_v0  ;;  %v2023_v6 = vmul.f32 0.16666667, %v529_v47  ;;  %v2025_v7 = vmul.f32 0.16666667, %v537_v52  ;;  %v540_v8 = vmul.f32 %v508_v58, %v412_v33  ;;  %v380_v9 = vmul.f32 %v1943_v1, %v344_v55  ;;  %v348_v53 = vld [vmem:[%s1962_s30 + $0xa8] sm:$0xff] }
  0x1f   : > { %292 = vst [vmem:[#allocation2 + $0x98] sm:$0xff] %v1895_v0  ;;  %v2029_v10 = vmul.f32 0.16666667, %v538_v57  ;;  %v446_v11 = vadd.f32 3.0, %v414_v63  ;;  %v415_v12 = vadd.f32 %v1952_v2, %v379_v3  ;;  %v381_v13 = vmul.f32 %v1943_v1, %v345_v60  ;;  %v349_v3 = vld [vmem:[%s1962_s30 + $0xb0] sm:$0xff] }
  0x20   : > { %293 = vst [vmem:[#allocation2 + $0xa0] sm:$0x3] %v1895_v0  ;;  %v2035_v15 = vmul.f32 0.16666667, %v539_v62  ;;  %v509_v16 = vmin.f32 %v477_v59, 6.0  ;;  %v416_v17 = vadd.f32 %v1952_v2, %v380_v9  ;;  %v366_v18 = vmul.f32 %v1943_v1, %v330_v4  ;;  %v333_v59 = vld [vmem:[%s1962_s30 + $0x30] sm:$0xff] }
  0x21   : > { %294 = vst [vmem:[#allocation2 + $0xa8] sm:$0xff] %v1895_v0  ;;  %v478_v19 = vmax.f32 %v446_v11, 0.0  ;;  %v447_v20 = vadd.f32 3.0, %v415_v12  ;;  %v417_v21 = vadd.f32 %v1952_v2, %v381_v13  ;;  %v382_v22 = vmul.f32 %v1943_v1, %v346_v5  ;;  %v334_v11 = vld [vmem:[%s1962_s30 + $0x38] sm:$0xff] }
  0x22   : > { %295 = vst [vmem:[#allocation2 + $0xb0] sm:$0xff] %v1895_v0  ;;  %v2044_v24 = vmul.f32 0.16666667, %v540_v8  ;;  %v448_v25 = vadd.f32 3.0, %v416_v17  ;;  %v402_v26 = vadd.f32 %v1952_v2, %v366_v18  ;;  %v367_v27 = vmul.f32 %v1943_v1, %v331_v14 }
  0x23   : > { %296 = vst [vmem:[#allocation2 + $0xb8] sm:$0x3] %v1895_v0  ;;  %v510_v28 = vmin.f32 %v478_v19, 6.0  ;;  %v479_v29 = vmax.f32 %v447_v20, 0.0  ;;  %v449_v30 = vadd.f32 3.0, %v417_v21  ;;  %v418_v31 = vadd.f32 %v1952_v2, %v382_v22  ;;  %v335_v22 = vld [vmem:[%s1962_s30 + $0x40] sm:$0xff] }
  0x24   : > { %297 = vst [vmem:[#allocation2 + $0xc0] sm:$0xff] %v1895_v0  ;;  %v480_v32 = vmax.f32 %v448_v25, 0.0  ;;  %v434_v33 = vadd.f32 3.0, %v402_v26  ;;  %v403_v34 = vadd.f32 %v1952_v2, %v367_v27  ;;  %v383_v35 = vmul.f32 %v1943_v1, %v347_v23 }
  0x25   : > { %298 = vst [vmem:[#allocation2 + $0xc8] sm:$0xff] %v1895_v0  ;;  %v541_v36 = vmul.f32 %v509_v16, %v2001_v42  ;;  %v511_v37 = vmin.f32 %v479_v29, 6.0  ;;  %v481_v38 = vmax.f32 %v449_v30, 0.0  ;;  %v450_v39 = vadd.f32 3.0, %v418_v31 }
  0x26   : > { %299 = vst [vmem:[#allocation2 + $0xd0] sm:$0x3] %v1895_v0  ;;  %v512_v40 = vmin.f32 %v480_v32, 6.0  ;;  %v466_v41 = vmax.f32 %v434_v33, 0.0  ;;  %v435_v43 = vadd.f32 3.0, %v403_v34  ;;  %v2057_v44 = vadd.f32 %v1952_v2, %v383_v35  ;;  %v351_v32 = vld [vmem:[%s1962_s30 + $0xc0] sm:$0xff] }
  0x27   : > { %300 = vst [vmem:[#allocation2 + $0xd8] sm:$0xff] %v1895_v0  ;;  %v542_v46 = vmul.f32 %v510_v28, %v414_v63  ;;  %v543_v47 = vmul.f32 %v511_v37, %v415_v12  ;;  %v513_v48 = vmin.f32 %v481_v38, 6.0  ;;  %v482_v42 = vmax.f32 %v450_v39, 0.0 }
  0x28   : > { %301 = vst [vmem:[#allocation2 + $0xe0] sm:$0xff] %v1895_v0  ;;  %v544_v49 = vmul.f32 %v512_v40, %v416_v17  ;;  %v498_v50 = vmin.f32 %v466_v41, 6.0  ;;  %v467_v51 = vmax.f32 %v435_v43, 0.0  ;;  %v451_v52 = vadd.f32 3.0, %v2057_v44  ;;  %v350_v17 = vld [vmem:[%s1962_s30 + $0xb8] sm:$0xff] }
  0x29   : > { %302 = vst [vmem:[#allocation2 + $0xe8] sm:$0x3] %v1895_v0  ;;  %v2065_v54 = vmul.f32 0.16666667, %v541_v36  ;;  %v545_v55 = vmul.f32 %v513_v48, %v417_v21  ;;  %v514_v57 = vmin.f32 %v482_v42, 6.0  ;;  %v368_v58 = vmul.f32 %v1943_v1, %v332_v45 }
  0x2a   : > { %303 = vst [vmem:[#allocation2 + $0xf0] sm:$0xff] %v1895_v0  ;;  %v530_v60 = vmul.f32 %v498_v50, %v402_v26  ;;  %v499_v62 = vmin.f32 %v467_v51, 6.0  ;;  %v483_v63 = vmax.f32 %v451_v52, 0.0  ;;  %v2072_v4 = vmul.f32 0.16666667, %v542_v46 }
  0x2b   : > { %304 = vst [vmem:[#allocation2 + $0xf8] sm:$0xff] %v1895_v0  ;;  %v2074_v5 = vmul.f32 0.16666667, %v543_v47  ;;  %v404_v8 = vadd.f32 %v1952_v2, %v368_v58  ;;  %v384_v9 = vmul.f32 %v1943_v1, %v348_v53  ;;  %v2080_v12 = vmul.f32 0.16666667, %v544_v49 }
  0x2c   : > { %305 = vst [vmem:[#allocation2 + $0x100] sm:$0x3] %v1895_v0  ;;  %v2082_v13 = vmul.f32 0.16666667, %v545_v55  ;;  %v546_v14 = vmul.f32 %v514_v57, %v418_v31  ;;  %v369_v16 = vmul.f32 %v1943_v1, %v333_v59  ;;  %v2087_v18 = vmul.f32 0.16666667, %v530_v60 }
  0x2d   : > { %306 = vst [vmem:[#allocation2 + $0x108] sm:$0xff] %v1895_v0  ;;  %v436_v19 = vadd.f32 3.0, %v404_v8  ;;  %v420_v20 = vadd.f32 %v1952_v2, %v384_v9  ;;  %v385_v21 = vmul.f32 %v1943_v1, %v349_v3  ;;  %v531_v23 = vmul.f32 %v499_v62, %v403_v34  ;;  %v336_v55 = vld [vmem:[%s1962_s30 + $0x48] sm:$0xff] }
  0x2e   : > { %307 = vst [vmem:[#allocation2 + $0x110] sm:$0xff] %v1895_v0  ;;  %v515_v25 = vmin.f32 %v483_v63, 6.0  ;;  %v405_v26 = vadd.f32 %v1952_v2, %v369_v16  ;;  %v370_v27 = vmul.f32 %v1943_v1, %v334_v11  ;;  %v386_v31 = vmul.f32 %v1943_v1, %v350_v17  ;;  %v352_v60 = vld [vmem:[%s1962_s30 + $0xc8] sm:$0xff]  ;;  %v353_v11 = vld [vmem:[%s1962_s30 + $0xd0] sm:$0xff] }
  0x2f   : > { %308 = vst [vmem:[#allocation2 + $0x118] sm:$0x3] %v1895_v0  ;;  %v468_v28 = vmax.f32 %v436_v19, 0.0  ;;  %v452_v29 = vadd.f32 3.0, %v420_v20  ;;  %v421_v30 = vadd.f32 %v1952_v2, %v385_v21  ;;  %v2100_v33 = vmul.f32 0.16666667, %v546_v14 }
  0x30   : > { %309 = vst [vmem:[#allocation2 + $0x120] sm:$0xff] %v1895_v0  ;;  %v437_v35 = vadd.f32 3.0, %v405_v26  ;;  %v406_v34 = vadd.f32 %v1952_v2, %v370_v27  ;;  %v371_v36 = vmul.f32 %v1943_v1, %v335_v22  ;;  %v422_v40 = vadd.f32 %v1952_v2, %v386_v31  ;;  %v354_v19 = vld [vmem:[%s1962_s30 + $0xd8] sm:$0xff]  ;;  %v356_v27 = vld [vmem:[%s1962_s30 + $0xe8] sm:$0xff] }
  0x31   : > { %310 = vst [vmem:[#allocation2 + $0x128] sm:$0xff] %v1895_v0  ;;  %v500_v37 = vmin.f32 %v468_v28, 6.0  ;;  %v484_v38 = vmax.f32 %v452_v29, 0.0  ;;  %v453_v39 = vadd.f32 3.0, %v421_v30  ;;  %v387_v46 = vmul.f32 %v1943_v1, %v351_v32  ;;  %v2131_v28 = vld [vmem:[%s3123_s1] ss:$0 sm:$0xff] }
  0x32   : > { %311 = vst [vmem:[#allocation2 + $0x130] sm:$0x3] %v1895_v0  ;;  %v469_v41 = vmax.f32 %v437_v35, 0.0  ;;  %v438_v43 = vadd.f32 3.0, %v406_v34  ;;  %v407_v45 = vadd.f32 %v1952_v2, %v371_v36  ;;  %v547_v47 = vmul.f32 %v515_v25, %v2057_v44 }
  0x33   : > { %312 = vst [vmem:[#allocation2 + $0x138] sm:$0xff] %v1895_v0  ;;  %v516_v48 = vmin.f32 %v484_v38, 6.0  ;;  %v485_v42 = vmax.f32 %v453_v39, 0.0  ;;  %v454_v49 = vadd.f32 3.0, %v422_v40  ;;  %v423_v53 = vadd.f32 %v1952_v2, %v387_v46 }
  0x34   : > { %313 = vst [vmem:[#allocation2 + $0x140] sm:$0xff] %v1895_v0  ;;  %v501_v50 = vmin.f32 %v469_v41, 6.0  ;;  %v470_v51 = vmax.f32 %v438_v43, 0.0  ;;  %v439_v52 = vadd.f32 3.0, %v407_v45  ;;  %v532_v57 = vmul.f32 %v500_v37, %v404_v8  ;;  %v2152_v43 = vld [vmem:[%s3123_s1 + $0x1] ss:$0 sm:$0xff] }
  0x35   : > { %314 = vst [vmem:[#allocation2 + $0x148] sm:$0x3] %v1895_v0  ;;  %v548_v58 = vmul.f32 %v516_v48, %v420_v20  ;;  %v517_v59 = vmin.f32 %v485_v42, 6.0  ;;  %v486_v44 = vmax.f32 %v454_v49, 0.0  ;;  %v455_v9 = vadd.f32 3.0, %v423_v53  ;;  %v355_v20 = vld [vmem:[%s1962_s30 + $0xe0] sm:$0xff] }
  0x36   : > { %315 = vst [vmem:[#allocation2 + $0x150] sm:$0xff] %v1895_v0  ;;  %v533_v62 = vmul.f32 %v501_v50, %v405_v26  ;;  %v502_v63 = vmin.f32 %v470_v51, 6.0  ;;  %v471_v3 = vmax.f32 %v439_v52, 0.0  ;;  %v2119_v14 = vmul.f32 0.16666667, %v531_v23  ;;  %v674_v52 = vld [vmem:[#allocation2 + $0x1] sm:$0xff] }
  0x37   : > { %316 = vst [vmem:[#allocation2 + $0x158] sm:$0xff] %v1895_v0  ;;  %v549_v16 = vmul.f32 %v517_v59, %v421_v30  ;;  %v518_v8 = vmin.f32 %v486_v44, 6.0  ;;  %v372_v17 = vmul.f32 %v1943_v1, %v336_v55  ;;  %v2125_v21 = vmul.f32 0.16666667, %v547_v47  ;;  %v724_v55 = vld [vmem:[#allocation2 + $0x2] sm:$0xff] }
  0x38   : > { %317 = vst [vmem:[#allocation2 + $0x160] sm:$0x3] %v1895_v0  ;;  %v534_v22 = vmul.f32 %v502_v63, %v406_v34  ;;  %v503_v25 = vmin.f32 %v471_v3, 6.0  ;;  %v487_v26 = vmax.f32 %v455_v9, 0.0  ;;  %v2134_v23 = vmul.f32 0.16666667, %v532_v57 }
  0x39   : > { %318 = vst [vmem:[#allocation2 + $0x168] sm:$0xff] %v1895_v0  ;;  %v2136_v29 = vmul.f32 0.16666667, %v548_v58  ;;  %v408_v30 = vadd.f32 %v1952_v2, %v372_v17  ;;  %v388_v31 = vmul.f32 %v1943_v1, %v352_v60  ;;  %v2141_v32 = vmul.f32 0.16666667, %v533_v62 }
  0x3a   : > { %319 = vst [vmem:[#allocation2 + $0x170] sm:$0xff] %v1895_v0  ;;  %v2143_v35 = vmul.f32 0.16666667, %v549_v16  ;;  %v519_v34 = vmin.f32 %v487_v26, 6.0  ;;  %v389_v36 = vmul.f32 %v1943_v1, %v353_v11  ;;  %v550_v37 = vmul.f32 %v518_v8, %v422_v40  ;;  %v2162_v40 = vld [vmem:[%s3123_s1 + $0x2] ss:$0 sm:$0xff] }
  0x3b   : > { %320 = vst [vmem:[#allocation2 + $0x178] sm:$0x3] %v1895_v0  ;;  %v440_v38 = vadd.f32 3.0, %v408_v30  ;;  %v424_v39 = vadd.f32 %v1952_v2, %v388_v31  ;;  %v390_v41 = vmul.f32 %v1943_v1, %v354_v19  ;;  %v2155_v46 = vmul.f32 0.16666667, %v534_v22 }
  0x3c   : > { %321 = vst [vmem:[#allocation2 + $0x180] sm:$0xff] %v1895_v0  ;;  %v535_v47 = vmul.f32 %v503_v25, %v407_v45  ;;  %v425_v48 = vadd.f32 %v1952_v2, %v389_v36  ;;  %v391_v42 = vmul.f32 %v1943_v1, %v355_v20  ;;  %v551_v45 = vmul.f32 %v519_v34, %v423_v53  ;;  %v2175_v3 = vld [vmem:[%s3123_s1 + $0x3] ss:$0 sm:$0xff]  ;;  %v2183_v8 = vld [vmem:[%s3123_s1 + $0x4] ss:$0 sm:$0xff] }
  0x3d   : > { %322 = vst [vmem:[#allocation2 + $0x188] sm:$0xff] %v1895_v0  ;;  %v472_v49 = vmax.f32 %v440_v38, 0.0  ;;  %v456_v50 = vadd.f32 3.0, %v424_v39  ;;  %v426_v51 = vadd.f32 %v1952_v2, %v390_v41  ;;  %v642_v59 = vmul.f32 0.0, %v2131_v28  ;;  %v2192_v34 = vld [vmem:[%s3123_s1 + $0x7] ss:$0 sm:$0xff] }
  0x3e   : > { %323 = vst [vmem:[#allocation2 + $0x190] sm:$0x3] %v1895_v0  ;;  %v457_v57 = vadd.f32 3.0, %v425_v48  ;;  %v427_v58 = vadd.f32 %v1952_v2, %v391_v42  ;;  %v692_v11 = vmul.f32 %v2152_v43, %v674_v52  ;;  %v742_v16 = vmul.f32 %v2162_v40, %v724_v55  ;;  %v675_v42 = vld [vmem:[#allocation2 + $0x9] sm:$0xff] }
  0x3f   : > { %324 = vst [vmem:[#allocation2 + $0x198] sm:$0xff] %v1895_v0  ;;  %v504_v44 = vmin.f32 %v472_v49, 6.0  ;;  %v488_v60 = vmax.f32 %v456_v50, 0.0  ;;  %v458_v62 = vadd.f32 3.0, %v426_v51  ;;  %v2186_v17 = vmul.f32 0.16666667, %v550_v37 }
  0x40   : > { %325 = vst [vmem:[#allocation2 + $0x1a0] sm:$0xff] %v1895_v0  ;;  %v489_v53 = vmax.f32 %v457_v57, 0.0  ;;  %v459_v9 = vadd.f32 3.0, %v427_v58  ;;  %v708_v31 = vadd.f32 %v692_v11, %v642_v59  ;;  %v2195_v36 = vmul.f32 0.16666667, %v535_v47  ;;  %v725_v55 = vld [vmem:[#allocation2 + $0xa] sm:$0xff] }
  0x41   : > { %326 = vst [vmem:[#allocation2 + $0x1a8] sm:$0x3] %v1895_v0  ;;  %v392_v0 = vmul.f32 %v1943_v1, %v356_v27  ;;  %v520_v19 = vmin.f32 %v488_v60, 6.0  ;;  %v490_v20 = vmax.f32 %v458_v62, 0.0  ;;  %v536_v25 = vmul.f32 %v504_v44, %v408_v30 }
  0x42   : > { %592 = vst [vmem:[#allocation2 + $0x19] sm:$0xff] %v2012_v56  ;;  %v521_v26 = vmin.f32 %v489_v53, 6.0  ;;  %v491_v27 = vmax.f32 %v459_v9, 0.0  ;;  %v2198_v49 = vmul.f32 0.16666667, %v551_v45  ;;  %v993_v9 = vmul.f32 %v2192_v34, %v2023_v6 }
  0x43   : > { %593 = vst [vmem:[#allocation2 + $0x21] sm:$0xff] %v2016_v61  ;;  %v428_v63 = vadd.f32 %v1952_v2, %v392_v0  ;;  %v552_v37 = vmul.f32 %v520_v19, %v424_v39  ;;  %v522_v38 = vmin.f32 %v490_v20, 6.0  ;;  %v758_v0 = vadd.f32 %v742_v16, %v708_v31  ;;  %v2207_v45 = vld [vmem:[%s3123_s1 + $0x5] ss:$0 sm:$0xff] }
  0x44   : > { %594 = vst [vmem:[#allocation2 + $0x31] sm:$0xff] %v2023_v6  ;;  %v553_v30 = vmul.f32 %v521_v26, %v425_v48  ;;  %v523_v50 = vmin.f32 %v491_v27, 6.0  ;;  %v842_v39 = vmul.f32 %v2183_v8, %v2012_v56  ;;  %v2210_v62 = vmul.f32 0.16666667, %v536_v25  ;;  %v357_v25 = vld [vmem:[%s1962_s30 + $0xf0] sm:$0xff] }
  0x45   : > { %602 = vst [vmem:[#allocation2 + $0x91] sm:$0xff] %v2025_v7  ;;  %v460_v22 = vadd.f32 3.0, %v428_v63  ;;  %v554_v57 = vmul.f32 %v522_v38, %v426_v51  ;;  %v2215_v51 = vld [vmem:[%s3123_s1 + $0x6] ss:$0 sm:$0xff]  ;;  %v693_v11 = vmul.f32 %v2152_v43, %v675_v42  ;;  %v2221_v16 = vmul.f32 0.16666667, %v552_v37 }
  0x46   : > { %603 = vst [vmem:[#allocation2 + $0x99] sm:$0xff] %v2029_v10  ;;  %v555_v53 = vmul.f32 %v523_v50, %v427_v58  ;;  %v2223_v19 = vmul.f32 0.16666667, %v553_v30  ;;  %v743_v31 = vmul.f32 %v2162_v40, %v725_v55 }
  0x47   : > { %604 = vst [vmem:[#allocation2 + $0xa9] sm:$0xff] %v2035_v15  ;;  %v492_v41 = vmax.f32 %v460_v22, 0.0  ;;  %v709_v27 = vadd.f32 %v693_v11, %v642_v59  ;;  %v843_v59 = vmul.f32 %v2183_v8, %v2016_v61 }
  0x48   : > { %605 = vst [vmem:[#allocation2 + $0xb1] sm:$0xff] %v2044_v24  ;;  %v2233_v37 = vmul.f32 0.16666667, %v555_v53 }
  0x49   : > { %606 = vst [vmem:[#allocation2 + $0xc1] sm:$0xff] %v2065_v54  ;;  %v774_v52 = vld [vmem:[#allocation2 + $0x18] sm:$0xff]  ;;  %v524_v44 = vmin.f32 %v492_v41, 6.0  ;;  %v2231_v41 = vmul.f32 0.16666667, %v554_v57  ;;  %v759_v50 = vadd.f32 %v743_v31, %v709_v27 }
  0x4a   : > { %607 = vst [vmem:[#allocation2 + $0xc9] sm:$0xff] %v2072_v4  ;;  %v792_v47 = vmul.f32 %v2175_v3, %v774_v52  ;;  %v874_v60 = vld [vmem:[#allocation2 + $0x1a] sm:$0xff]  ;;  %v875_v30 = vld [vmem:[#allocation2 + $0x22] sm:$0xff]  ;;  %v644_v55 = vmul.f32 %v2131_v28, %v774_v52 }
  0x4b   : > { %v775_v48 = vld [vmem:[#allocation2 + $0x20] sm:$0xff]  ;;  %608 = vst [vmem:[#allocation2 + $0xd9] sm:$0xff] %v2074_v5  ;;  %v556_v20 = vmul.f32 %v524_v44, %v428_v63  ;;  %v892_v58 = vmul.f32 %v2207_v45, %v874_v60  ;;  %v925_v26 = vld [vmem:[#allocation2 + $0x30] sm:$0xff]  ;;  %v893_v11 = vmul.f32 %v2207_v45, %v875_v30 }
  0x4c   : > { %609 = vst [vmem:[#allocation2 + $0xe1] sm:$0xff] %v2080_v12  ;;  %v808_v22 = vadd.f32 %v792_v47, %v758_v0  ;;  %v793_v38 = vmul.f32 %v2175_v3, %v775_v48  ;;  %v943_v63 = vmul.f32 %v2215_v51, %v925_v26  ;;  %v393_v0 = vmul.f32 %v1943_v1, %v357_v25 }
  0x4d   : > { %610 = vst [vmem:[#allocation2 + $0xf1] sm:$0xff] %v2082_v13  ;;  %v2242_v57 = vmul.f32 0.16666667, %v556_v20  ;;  %v694_v47 = vmul.f32 %v2152_v43, %v2012_v56  ;;  %v794_v1 = vmul.f32 %v2175_v3, %v925_v26  ;;  %v645_v25 = vmul.f32 %v2131_v28, %v775_v48 }
  0x4e   : > { %595 = vst [vmem:[#allocation2 + $0x39] sm:$0xff] %v2087_v18  ;;  %v858_v42 = vadd.f32 %v842_v39, %v808_v22  ;;  %v744_v39 = vmul.f32 %v2162_v40, %v874_v60  ;;  %v809_v53 = vadd.f32 %v793_v38, %v759_v50  ;;  %v429_v22 = vadd.f32 %v1952_v2, %v393_v0  ;;  %v2263_v38 = vld [vmem:[%s3123_s1 + $0x8] ss:$0 sm:$0xff] }
  0x4f   : > { %611 = vst [vmem:[#allocation2 + $0xf9] sm:$0xff] %v2100_v33  ;;  %v710_v20 = vadd.f32 %v694_v47, %v644_v55  ;;  %v695_v56 = vmul.f32 %v2152_v43, %v2016_v61  ;;  %v745_v2 = vmul.f32 %v2162_v40, %v875_v30  ;;  %v844_v61 = vmul.f32 %v2183_v8, %v2023_v6 }
  0x50   : > { %596 = vst [vmem:[#allocation2 + $0x49] sm:$0xff] %v2119_v14  ;;  %v908_v44 = vadd.f32 %v892_v58, %v858_v42  ;;  %v859_v60 = vadd.f32 %v843_v59, %v809_v53  ;;  %v994_v58 = vmul.f32 %v2192_v34, %v2087_v18  ;;  %v461_v27 = vadd.f32 3.0, %v429_v22 }
  0x51   : > { %612 = vst [vmem:[#allocation2 + $0x109] sm:$0xff] %v2125_v21  ;;  %v760_v48 = vadd.f32 %v744_v39, %v710_v20  ;;  %v646_v59 = vmul.f32 %v2131_v28, %v925_v26  ;;  %v995_v20 = vmul.f32 %v2192_v34, %v2119_v14 }
  0x52   : > { %597 = vst [vmem:[#allocation2 + $0x51] sm:$0xff] %v2134_v23  ;;  %v959_v52 = vadd.f32 %v943_v63, %v908_v44  ;;  %v909_v63 = vadd.f32 %v893_v11, %v859_v60  ;;  %v493_v30 = vmax.f32 %v461_v27, 0.0 }
  0x53   : > { %613 = vst [vmem:[#allocation2 + $0x111] sm:$0xff] %v2136_v29  ;;  %v711_v29 = vadd.f32 %v695_v56, %v645_v25  ;;  %v810_v44 = vadd.f32 %v794_v1, %v760_v48 }
  0x54   : > { %598 = vst [vmem:[#allocation2 + $0x61] sm:$0xff] %v2141_v32  ;;  %v1009_v31 = vadd.f32 %v993_v9, %v959_v52  ;;  %v845_v9 = vmul.f32 %v2183_v8, %v2087_v18  ;;  %v525_v47 = vmin.f32 %v493_v30, 6.0 }
  0x55   : > { %614 = vst [vmem:[#allocation2 + $0x121] sm:$0xff] %v2143_v35  ;;  %v1025_v42 = vld [vmem:[#allocation2 + $0x32] sm:$0xff]  ;;  %v696_v35 = vmul.f32 %v2152_v43, %v2023_v6  ;;  %v761_v18 = vadd.f32 %v745_v2, %v711_v29  ;;  %v2286_v52 = vld [vmem:[#allocation2 + $0x3a] sm:$0xff]  ;;  %v860_v1 = vadd.f32 %v844_v61, %v810_v44  ;;  %v996_v61 = vmul.f32 %v2192_v34, %v2134_v23 }
  0x56   : > { %v2268_v50 = vld [vmem:[#allocation2 + $0x38] sm:$0xff]  ;;  %599 = vst [vmem:[#allocation2 + $0x69] sm:$0xff] %v2155_v46  ;;  %v1043_v0 = vmul.f32 %v2263_v38, %v1025_v42  ;;  %v894_v39 = vmul.f32 %v2207_v45, %v1025_v42  ;;  %v895_v56 = vmul.f32 %v2207_v45, %v2286_v52  ;;  %v1044_v60 = vmul.f32 %v2263_v38, %v2286_v52 }
  0x57   : > { %v944_v55 = vmul.f32 %v2215_v51, %v2268_v50  ;;  %615 = vst [vmem:[#allocation2 + $0x129] sm:$0xff] %v2186_v17  ;;  %v2281_v53 = vld [vmem:[#allocation2 + $0x48] sm:$0xff]  ;;  %v795_v46 = vmul.f32 %v2175_v3, %v2268_v50  ;;  %v557_v17 = vmul.f32 %v525_v47, %v429_v22 }
  0x58   : > { %600 = vst [vmem:[#allocation2 + $0x79] sm:$0xff] %v2195_v36  ;;  %v1059_v26 = vadd.f32 %v1043_v0, %v1009_v31  ;;  %v945_v6 = vmul.f32 %v2215_v51, %v2281_v53  ;;  %v910_v27 = vadd.f32 %v894_v39, %v860_v1  ;;  %v712_v31 = vadd.f32 %v696_v35, %v646_v59  ;;  %v2328_v35 = vld [vmem:[#allocation2 + $0x92] sm:$0xff] }
  0x59   : > { %v960_v11 = vadd.f32 %v944_v55, %v909_v63  ;;  %616 = vst [vmem:[#allocation2 + $0x139] sm:$0xff] %v2198_v49  ;;  %v811_v25 = vadd.f32 %v795_v46, %v761_v18  ;;  %v2298_v2 = vld [vmem:[#allocation2 + $0x50] sm:$0xff]  ;;  %v746_v63 = vmul.f32 %v2162_v40, %v1025_v42  ;;  %v796_v30 = vmul.f32 %v2175_v3, %v2281_v53 }
  0x5a   : > { %601 = vst [vmem:[#allocation2 + $0x81] sm:$0xff] %v2210_v62  ;;  %v1113_v49 = vmul.f32 %v1059_v26, %v1059_v26  ;;  %v946_v48 = vmul.f32 %v2215_v51, %v2298_v2  ;;  %v2306_v29 = vld [vmem:[#allocation2 + $0x4a] sm:$0xff]  ;;  %v589_v23 = vmul.f32 0.16666667, %v557_v17  ;;  %v846_v42 = vmul.f32 %v2183_v8, %v2119_v14  ;;  %v2326_v55 = vld [vmem:[#allocation2 + $0x52] sm:$0xff] }
  0x5b   : > { %v1010_v36 = vadd.f32 %v994_v58, %v960_v11  ;;  %617 = vst [vmem:[#allocation2 + $0x141] sm:$0xff] %v2221_v16  ;;  %v861_v22 = vadd.f32 %v845_v9, %v811_v25  ;;  %v961_v58 = vadd.f32 %v945_v6, %v910_v27  ;;  %v2311_v16 = vld [vmem:[#allocation2 + $0x90] sm:$0xff]  ;;  %v762_v44 = vadd.f32 %v746_v63, %v712_v31  ;;  %v2338_v1 = vld [vmem:[#allocation2 + $0x60] sm:$0xff]  ;;  %v786_v6 = vld [vmem:[#allocation2 + $0xa8] sm:$0xff] }
  0x5c   : > { %618 = vst [vmem:[#allocation2 + $0x151] sm:$0xff] %v2223_v19  ;;  %v1045_v19 = vmul.f32 %v2263_v38, %v2306_v29  ;;  %v1046_v39 = vmul.f32 %v2263_v38, %v2326_v55  ;;  %v896_v14 = vmul.f32 %v2207_v45, %v2306_v29  ;;  %v754_v25 = vmul.f32 %v2162_v40, %v2328_v35 }
  0x5d   : > { %v1060_v62 = vadd.f32 %v1044_v60, %v1010_v36  ;;  %3145 = vst [vmem:[#allocation3_spill] sm:$0xff] %v2311_v16  ;;  %v911_v9 = vadd.f32 %v895_v56, %v861_v22  ;;  %v812_v11 = vadd.f32 %v796_v30, %v762_v44  ;;  %v2348_v27 = vld [vmem:[#allocation2 + $0x62] sm:$0xff]  ;;  %v997_v22 = vmul.f32 %v2192_v34, %v2141_v32 }
  0x5e   : > { %619 = vst [vmem:[#allocation2 + $0x159] sm:$0xff] %v2231_v41  ;;  %v1011_v41 = vadd.f32 %v995_v20, %v961_v58  ;;  %v947_v20 = vmul.f32 %v2215_v51, %v2338_v1  ;;  %v854_v30 = vmul.f32 %v2183_v8, %v2035_v15  ;;  %v705_v32 = vmul.f32 %v2152_v43, %v2029_v10 }
  0x5f   : > { %620 = vst [vmem:[#allocation2 + $0x169] sm:$0xff] %v2233_v37  ;;  %v1091_v59 = vadd.f32 %v1060_v62, %v1059_v26  ;;  %v1114_v0 = vmul.f32 %v1060_v62, %v1060_v62  ;;  %v962_v47 = vadd.f32 %v946_v48, %v911_v9  ;;  %v654_v37 = vmul.f32 %v2131_v28, %v2311_v16  ;;  %v886_v9 = vld [vmem:[#allocation2 + $0xaa] sm:$0xff] }
  0x60   : > { %3146 = vst [vmem:[#allocation4_spill] sm:$0xff] %v2328_v35  ;;  %v1061_v46 = vadd.f32 %v1045_v19, %v1011_v41  ;;  %v862_v60 = vadd.f32 %v846_v42, %v812_v11  ;;  %v1047_v48 = vmul.f32 %v2263_v38, %v2348_v27  ;;  %v2358_v42 = vld [vmem:[#allocation2 + $0xc0] sm:$0xff]  ;;  %v904_v44 = vmul.f32 %v2207_v45, %v886_v9 }
  0x61   : > { %621 = vst [vmem:[#allocation2 + $0x171] sm:$0xff] %v2242_v57  ;;  %v1129_v18 = vadd.f32 %v1114_v0, %v1113_v49  ;;  %v704_v57 = vmul.f32 %v2152_v43, %v2025_v7  ;;  %v1012_v17 = vadd.f32 %v996_v61, %v962_v47  ;;  %v637_v7 = vld [vmem:[#allocation2 + $0x98] sm:$0xff] }
  0x62   : > { %1075 = vst [vmem:[%s2319_s7] sm:$0xff] %v1059_v26  ;;  %v804_v26 = vmul.f32 %v2175_v3, %v786_v6  ;;  %v1092_v56 = vadd.f32 %v1091_v59, %v1061_v46  ;;  %v1115_v36 = vmul.f32 %v1061_v46, %v1061_v46  ;;  %v737_v61 = vld [vmem:[#allocation2 + $0x9a] sm:$0xff]  ;;  %v912_v58 = vadd.f32 %v896_v14, %v862_v60 }
  0x63   : > { %3147 = vst [vmem:[#allocation5_spill] sm:$0xff] %v2338_v1  ;;  %v720_v31 = vadd.f32 %v704_v57, %v654_v37  ;;  %v1062_v49 = vadd.f32 %v1046_v39, %v1012_v17  ;;  %v655_v59 = vmul.f32 %v2131_v28, %v637_v7  ;;  %v755_v47 = vmul.f32 %v2162_v40, %v737_v61  ;;  %v787_v39 = vld [vmem:[#allocation2 + $0xb0] sm:$0xff]  ;;  %v2368_v17 = vld [vmem:[#allocation2 + $0xc2] sm:$0xff] }
  0x64   : > { %1076 = vst [vmem:[%s2319_s7 + $0x8] sm:$0xff] %v1060_v62  ;;  %v1130_v62 = vadd.f32 %v1129_v18, %v1115_v36  ;;  %v963_v0 = vadd.f32 %v947_v20, %v912_v58  ;;  %v805_v18 = vmul.f32 %v2175_v3, %v787_v39  ;;  %v955_v57 = vmul.f32 %v2215_v51, %v2358_v42  ;;  %v887_v7 = vld [vmem:[#allocation2 + $0xb2] sm:$0xff] }
  0x65   : > { %622 = vst [vmem:[#allocation2 + $0x181] sm:$0xff] %v589_v23  ;;  %v770_v63 = vadd.f32 %v754_v25, %v720_v31  ;;  %v1093_v23 = vadd.f32 %v1092_v56, %v1062_v49  ;;  %v1116_v19 = vmul.f32 %v1062_v49, %v1062_v49  ;;  %v721_v37 = vadd.f32 %v705_v32, %v655_v59  ;;  %v2372_v25 = vld [vmem:[#allocation2 + $0xc8] sm:$0xff] }
  0x66   : > { %3148 = vst [vmem:[#allocation6_spill] sm:$0xff] %v2348_v27  ;;  %v855_v20 = vmul.f32 %v2183_v8, %v2044_v24  ;;  %v706_v56 = vmul.f32 %v2152_v43, %v2035_v15  ;;  %v1005_v31 = vmul.f32 %v2192_v34, %v2065_v54  ;;  %v856_v32 = vmul.f32 %v2183_v8, %v2065_v54 }
  0x67   : > { %1077 = vst [vmem:[%s2319_s7 + $0x10] sm:$0xff] %v1061_v46  ;;  %v820_v41 = vadd.f32 %v804_v26, %v770_v63  ;;  %v1131_v14 = vadd.f32 %v1130_v62, %v1116_v19  ;;  %v1013_v46 = vadd.f32 %v997_v22, %v963_v0  ;;  %v771_v10 = vadd.f32 %v755_v47, %v721_v37  ;;  %v2388_v19 = vld [vmem:[#allocation2 + $0xca] sm:$0xff]  ;;  %v2404_v37 = vld [vmem:[%s3123_s1] ss:$0 sm:$0xff] }
  0x68   : > { %1078 = vst [vmem:[%s2319_s7 + $0x18] sm:$0xff] %v1062_v49  ;;  %v656_v26 = vmul.f32 %v2131_v28, %v786_v6  ;;  %v756_v49 = vmul.f32 %v2162_v40, %v886_v9  ;;  %v1055_v22 = vmul.f32 %v2263_v38, %v2368_v17  ;;  %v905_v62 = vmul.f32 %v2207_v45, %v887_v7 }
  0x69   : > { %v870_v11 = vadd.f32 %v854_v30, %v820_v41  ;;  %v1063_v36 = vadd.f32 %v1047_v48, %v1013_v46  ;;  %v821_v61 = vadd.f32 %v805_v18, %v771_v10  ;;  %v956_v48 = vmul.f32 %v2215_v51, %v2372_v25 }
  0x6a   : > { %v722_v58 = vadd.f32 %v706_v56, %v656_v26  ;;  %v806_v9 = vmul.f32 %v2175_v3, %v2358_v42  ;;  %v707_v47 = vmul.f32 %v2152_v43, %v2044_v24  ;;  %v1006_v46 = vmul.f32 %v2192_v34, %v2072_v4 }
  0x6b   : > { %v920_v60 = vadd.f32 %v904_v44, %v870_v11  ;;  %1079 = vst [vmem:[%s2319_s7 + $0x20] sm:$0xff] %v1063_v36  ;;  %v2384_v6 = vadd.f32 %v1093_v23, %v1063_v36  ;;  %v1117_v63 = vmul.f32 %v1063_v36, %v1063_v36  ;;  %v871_v30 = vadd.f32 %v855_v20, %v821_v61  ;;  %v2396_v23 = vld [vmem:[#allocation2 + $0xd8] sm:$0xff] }
  0x6c   : > { %v772_v59 = vadd.f32 %v756_v49, %v722_v58  ;;  %v657_v44 = vmul.f32 %v2131_v28, %v787_v39  ;;  %v757_v11 = vmul.f32 %v2162_v40, %v887_v7  ;;  %v2412_v39 = vld [vmem:[%s3123_s1 + $0x1] ss:$0 sm:$0xff]  ;;  %v1056_v24 = vmul.f32 %v2263_v38, %v2388_v19  ;;  %v2427_v7 = vld [vmem:[%s3123_s1 + $0x2] ss:$0 sm:$0xff]  ;;  %v2439_v58 = vld [vmem:[%s3123_s1 + $0x3] ss:$0 sm:$0xff] }
  0x6d   : > { %3149 = vst [vmem:[#allocation7_spill] sm:$0xff] %v2384_v6  ;;  %v971_v15 = vadd.f32 %v955_v57, %v920_v60  ;;  %v2394_v0 = vadd.f32 %v1131_v14, %v1117_v63  ;;  %v921_v18 = vadd.f32 %v905_v62, %v871_v30  ;;  %v906_v10 = vmul.f32 %v2207_v45, %v2368_v17  ;;  %v2418_v20 = vld [vmem:[#allocation2 + $0xda] sm:$0xff] }
  0x6e   : > { %v822_v14 = vadd.f32 %v806_v9, %v772_v59  ;;  %v723_v26 = vadd.f32 %v707_v47, %v657_v44  ;;  %v957_v60 = vmul.f32 %v2215_v51, %v2396_v23  ;;  %v857_v61 = vmul.f32 %v2183_v8, %v2072_v4  ;;  %v2443_v30 = vld [vmem:[#allocation2 + $0xe0] sm:$0xff] }
  0x6f   : > { %3150 = vst [vmem:[#allocation8_spill] sm:$0xff] %v2394_v0  ;;  %v1021_v41 = vadd.f32 %v1005_v31, %v971_v15  ;;  %v972_v56 = vadd.f32 %v956_v48, %v921_v18  ;;  %v1007_v31 = vmul.f32 %v2192_v34, %v2074_v5  ;;  %v1170_v62 = vmul.f32 %v2404_v37, %v2358_v42  ;;  %v2461_v44 = vld [vmem:[%s3123_s1 + $0x6] ss:$0 sm:$0xff]  ;;  %v2581_v0 = vld [vmem:[#allocation2 + $0x111] sm:$0xff] }
  0x70   : > { %v872_v36 = vadd.f32 %v856_v32, %v822_v14  ;;  %v773_v49 = vadd.f32 %v757_v11, %v723_v26  ;;  %v1057_v48 = vmul.f32 %v2263_v38, %v2418_v20  ;;  %v1220_v59 = vmul.f32 %v2412_v39, %v2065_v54  ;;  %v1203_v54 = vld [vmem:[#allocation2 + $0xc9] sm:$0xff]  ;;  %v2473_v11 = vld [vmem:[%s3123_s1 + $0x4] ss:$0 sm:$0xff] }
  0x71   : > { %v1071_v57 = vadd.f32 %v1055_v22, %v1021_v41  ;;  %v807_v22 = vmul.f32 %v2175_v3, %v2372_v25  ;;  %v1022_v63 = vadd.f32 %v1006_v46, %v972_v56  ;;  %v907_v42 = vmul.f32 %v2207_v45, %v2388_v19  ;;  %v2456_v41 = vld [vmem:[%s3123_s1 + $0x5] ss:$0 sm:$0xff]  ;;  %v2494_v56 = vld [vmem:[%s3123_s1 + $0x8] ss:$0 sm:$0xff] }
  0x72   : > { %v922_v15 = vadd.f32 %v906_v10, %v872_v36  ;;  %v958_v9 = vmul.f32 %v2215_v51, %v2443_v30  ;;  %v1008_v32 = vmul.f32 %v2192_v34, %v2080_v12  ;;  %v2466_v46 = vld [vmem:[#allocation2 + $0xe2] sm:$0xff]  ;;  %v1236_v14 = vadd.f32 %v1220_v59, %v1170_v62 }
  0x73   : > { %1087 = vst [vmem:[%s2319_s7 + $0x60] sm:$0xff] %v1071_v57  ;;  %v823_v4 = vadd.f32 %v807_v22, %v773_v49  ;;  %v2464_v47 = vadd.f32 %v1056_v24, %v1022_v63  ;;  %v1270_v12 = vmul.f32 %v2427_v7, %v2368_v17  ;;  %v2482_v24 = vmul.f32 %v1071_v57, %v1071_v57  ;;  %v2489_v17 = vld [vmem:[%s3123_s1 + $0x7] ss:$0 sm:$0xff] }
  0x74   : > { %v973_v18 = vadd.f32 %v957_v60, %v922_v15  ;;  %v1321_v26 = vmul.f32 %v2439_v58, %v2396_v23  ;;  %v1171_v36 = vmul.f32 %v2404_v37, %v2372_v25  ;;  %v2498_v60 = vld [vmem:[#allocation2] sm:$0xff]  ;;  %v1371_v22 = vmul.f32 %v2473_v11, %v2074_v5 }
  0x75   : > { %3151 = vst [vmem:[#allocation9_spill] sm:$0xff] %v2482_v24  ;;  %v873_v10 = vadd.f32 %v857_v61, %v823_v4  ;;  %v1286_v49 = vadd.f32 %v1270_v12, %v1236_v14  ;;  %v2506_v61 = vld [vmem:[#allocation2 + $0xf0] sm:$0xff]  ;;  %v1221_v62 = vmul.f32 %v2412_v39, %v1203_v54  ;;  %v1058_v25 = vmul.f32 %v2263_v38, %v2466_v46  ;;  %v1204_v14 = vld [vmem:[#allocation2 + $0xd9] sm:$0xff] }
  0x76   : > { %1682 = vst [vmem:[%s2480_s26 + $0x1] sm:$0x7f] %v2498_v60  ;;  %v1023_v57 = vadd.f32 %v1007_v31, %v973_v18  ;;  %v1421_v15 = vmul.f32 %v2456_v41, %v2418_v20  ;;  %v1472_v59 = vmul.f32 %v2461_v44, %v2506_v61  ;;  %v2517_v18 = vld [vmem:[#allocation2 + $0xf2] sm:$0xff]  ;;  %v1271_v54 = vmul.f32 %v2427_v7, %v2388_v19 }
  0x77   : > { %1088 = vst [vmem:[%s2319_s7 + $0x68] sm:$0xff] %v2464_v47  ;;  %v923_v63 = vadd.f32 %v907_v42, %v873_v10  ;;  %v1337_v4 = vadd.f32 %v1321_v26, %v1286_v49  ;;  %v1237_v5 = vadd.f32 %v1221_v62, %v1171_v36  ;;  %v1522_v12 = vmul.f32 %v2489_v17, %v2082_v13  ;;  %v2534_v49 = vld [vmem:[#allocation2 + $0xf8] sm:$0xff] }
  0x78   : > { %v2515_v31 = vadd.f32 %v1057_v48, %v1023_v57  ;;  %v1572_v10 = vmul.f32 %v2494_v56, %v2517_v18  ;;  %v1322_v24 = vmul.f32 %v2439_v58, %v2443_v30  ;;  %v1354_v48 = vld [vmem:[#allocation2 + $0xe1] sm:$0xff]  ;;  %v1172_v19 = vmul.f32 %v2404_v37, %v2396_v23  ;;  %1684 = vst [vmem:[%s2591_s11 + $0x1] sm:$0x7f] %v2498_v60  ;;  %v1863_v60 = vld [vmem:[%s3124_s2] ss:$0 sm:$0xff] }
  0x79   : > { %v974_v42 = vadd.f32 %v958_v9, %v923_v63  ;;  %v1387_v26 = vadd.f32 %v1371_v22, %v1337_v4  ;;  %v1287_v57 = vadd.f32 %v1271_v54, %v1237_v5  ;;  %v1372_v36 = vmul.f32 %v2473_v11, %v1354_v48 }
  0x7a   : > { %1089 = vst [vmem:[%s2319_s7 + $0x70] sm:$0xff] %v2515_v31  ;;  %v1422_v13 = vmul.f32 %v2456_v41, %v2466_v46  ;;  %v1222_v62 = vmul.f32 %v2412_v39, %v1204_v14  ;;  %v1272_v63 = vmul.f32 %v2427_v7, %v2418_v20  ;;  %v1473_v4 = vmul.f32 %v2461_v44, %v2534_v49  ;;  %v1355_v20 = vld [vmem:[#allocation2 + $0xf1] sm:$0xff] }
  0x7b   : > { %v1024_v9 = vadd.f32 %v1008_v32, %v974_v42  ;;  %v1437_v35 = vadd.f32 %v1421_v15, %v1387_v26  ;;  %v1338_v22 = vadd.f32 %v1322_v24, %v1287_v57  ;;  %v1523_v23 = vmul.f32 %v2489_v17, %v2100_v33  ;;  %v2543_v32 = vld [vmem:[#allocation2 + $0xfa] sm:$0xff] }
  0x7c   : > { %v1573_v54 = vmul.f32 %v2494_v56, %v2543_v32  ;;  %v1238_v14 = vadd.f32 %v1222_v62, %v1172_v19  ;;  %v1323_v42 = vmul.f32 %v2439_v58, %v2506_v61  ;;  %v1373_v26 = vmul.f32 %v2473_v11, %v1355_v20 }
  0x7d   : > { %v2545_v5 = vadd.f32 %v1058_v25, %v1024_v9  ;;  %v1488_v15 = vadd.f32 %v1472_v59, %v1437_v35  ;;  %v1388_v24 = vadd.f32 %v1372_v36, %v1338_v22  ;;  %v1173_v57 = vmul.f32 %v2404_v37, %v2443_v30  ;;  %v2558_v9 = vld [vmem:[#allocation2 + $0x108] sm:$0xff] }
  0x7e   : > { %v1288_v33 = vadd.f32 %v1272_v63, %v1238_v14  ;;  %v1423_v25 = vmul.f32 %v2456_v41, %v2517_v18  ;;  %3153 = vst [vmem:[#allocation11_spill] sm:$0xff] %v2558_v9  ;;  %v1223_v19 = vmul.f32 %v2412_v39, %v1354_v48  ;;  %v1273_v62 = vmul.f32 %v2427_v7, %v2466_v46  ;;  %v2567_v22 = vld [vmem:[#allocation2 + $0x10a] sm:$0xff] }
  0x7f   : > { %3152 = vst [vmem:[#allocation10_spill] sm:$0xff] %v2545_v5  ;;  %v1538_v35 = vadd.f32 %v1522_v12, %v1488_v15  ;;  %v1438_v59 = vadd.f32 %v1422_v13, %v1388_v24  ;;  %v1474_v36 = vmul.f32 %v2461_v44, %v2558_v9  ;;  %v1524_v30 = vmul.f32 %v2489_v17, %v2125_v21  ;;  %v2573_v12 = vld [vmem:[#allocation2 + $0xf9] sm:$0xff] }
  0x80   : > { %1090 = vst [vmem:[%s2319_s7 + $0x78] sm:$0xff] %v2545_v5  ;;  %v1339_v63 = vadd.f32 %v1323_v42, %v1288_v33  ;;  %v1574_v14 = vmul.f32 %v2494_v56, %v2567_v22  ;;  %v1239_v48 = vadd.f32 %v1223_v19, %v1173_v57  ;;  %v1324_v46 = vmul.f32 %v2439_v58, %v2534_v49  ;;  %v2579_v33 = vld [vmem:[#allocation2 + $0x110] sm:$0xff] }
  0x81   : > { %v1588_v13 = vadd.f32 %v1572_v10, %v1538_v35  ;;  %v1489_v15 = vadd.f32 %v1473_v4, %v1438_v59  ;;  %v1374_v24 = vmul.f32 %v2473_v11, %v2573_v12  ;;  %v1424_v21 = vmul.f32 %v2456_v41, %v2543_v32  ;;  %v2600_v35 = vld [vmem:[#allocation2 + $0x112] sm:$0xff] }
  0x82   : > { %v1389_v16 = vadd.f32 %v1373_v26, %v1339_v63  ;;  %v1289_v42 = vadd.f32 %v1273_v62, %v1239_v48  ;;  %v1174_v57 = vmul.f32 %v2404_v37, %v2506_v61  ;;  %v1224_v19 = vmul.f32 %v2412_v39, %v1355_v20  ;;  %v2604_v48 = vld [vmem:[#allocation2 + $0x109] sm:$0xff] }
  0x83   : > { %1813 = vst [vmem:[%s2319_s7 + $0x80] sm:$0xff] %v1588_v13  ;;  %v1539_v10 = vadd.f32 %v1523_v23, %v1489_v15  ;;  %v1475_v4 = vmul.f32 %v2461_v44, %v2579_v33  ;;  %v1525_v26 = vmul.f32 %v2489_v17, %v2581_v0  ;;  %v1274_v61 = vmul.f32 %v2427_v7, %v2517_v18  ;;  %v358_v23 = vld [vmem:[%s1962_s30 + $0xf8] sm:$0xff] }
  0x84   : > { %v1439_v62 = vadd.f32 %v1423_v25, %v1389_v16  ;;  %v1340_v20 = vadd.f32 %v1324_v46, %v1289_v42  ;;  %v1240_v59 = vadd.f32 %v1224_v19, %v1174_v57  ;;  %v1325_v63 = vmul.f32 %v2439_v58, %v2558_v9  ;;  %3154 = vst [vmem:[#allocation12_spill] sm:$0xff] %v2604_v48  ;;  %v679_v18 = vld [vmem:[#allocation2 + $0x39] sm:$0xff] }
  0x85   : > { %v1643_v15 = vmul.f32 %v1588_v13, %v1588_v13  ;;  %v1589_v5 = vadd.f32 %v1573_v54, %v1539_v10  ;;  %v1575_v6 = vmul.f32 %v2494_v56, %v2600_v35  ;;  %v1375_v16 = vmul.f32 %v2473_v11, %v2604_v48 }
  0x86   : > { %v1490_v25 = vadd.f32 %v1474_v36, %v1439_v62  ;;  %v1390_v46 = vadd.f32 %v1374_v24, %v1340_v20  ;;  %v1290_v42 = vadd.f32 %v1274_v61, %v1240_v59  ;;  %v1425_v57 = vmul.f32 %v2456_v41, %v2567_v22  ;;  %v2621_v36 = vld [vmem:[#allocation2 + $0x120] sm:$0xff] }
  0x87   : > { %1814 = vst [vmem:[%s2319_s7 + $0x88] sm:$0xff] %v1589_v5  ;;  %v1621_v19 = vadd.f32 %v1589_v5, %v1588_v13  ;;  %v1644_v27 = vmul.f32 %v1589_v5, %v1589_v5  ;;  %v394_v54 = vmul.f32 %v1863_v60, %v358_v23  ;;  %v647_v10 = vmul.f32 %v2131_v28, %v2268_v50  ;;  %v1864_v13 = vld [vmem:[%s3125_s3] ss:$0 sm:$0xff]  ;;  %v2631_v59 = vld [vmem:[#allocation2 + $0x121] sm:$0xff] }
  0x88   : > { %v1540_v9 = vadd.f32 %v1524_v30, %v1490_v25  ;;  %v1440_v48 = vadd.f32 %v1424_v21, %v1390_v46  ;;  %v1341_v1 = vadd.f32 %v1325_v63, %v1290_v42  ;;  %v697_v24 = vmul.f32 %v2152_v43, %v679_v18  ;;  %v2633_v63 = vld [vmem:[#allocation2 + $0x122] sm:$0xff] }
  0x89   : > { %v1659_v61 = vadd.f32 %v1644_v27, %v1643_v15  ;;  %v1476_v5 = vmul.f32 %v2461_v44, %v2621_v36  ;;  %v430_v62 = vadd.f32 %v1864_v13, %v394_v54  ;;  %v747_v50 = vmul.f32 %v2162_v40, %v2286_v52  ;;  %v2650_v13 = vld [vmem:[#allocation2 + $0x68] sm:$0xff] }
  0x8a   : > { %v1590_v30 = vadd.f32 %v1574_v14, %v1540_v9  ;;  %v1491_v21 = vadd.f32 %v1475_v4, %v1440_v48  ;;  %v1391_v20 = vadd.f32 %v1375_v16, %v1341_v1  ;;  %v713_v23 = vadd.f32 %v697_v24, %v647_v10  ;;  %v2642_v4 = vld [vmem:[#allocation2 + $0x51] sm:$0xff] }
  0x8b   : > { %v1526_v27 = vmul.f32 %v2489_v17, %v2631_v59  ;;  %v1576_v15 = vmul.f32 %v2494_v56, %v2633_v63  ;;  %v462_v18 = vadd.f32 3.0, %v430_v62  ;;  %v797_v25 = vmul.f32 %v2175_v3, %v2298_v2 }
  0x8c   : > { %1815 = vst [vmem:[%s2319_s7 + $0x90] sm:$0xff] %v1590_v30  ;;  %v1622_v52 = vadd.f32 %v1621_v19, %v1590_v30  ;;  %v1645_v9 = vmul.f32 %v1590_v30, %v1590_v30  ;;  %v1541_v14 = vadd.f32 %v1525_v26, %v1491_v21  ;;  %v1441_v1 = vadd.f32 %v1425_v57, %v1391_v20 }
  0x8d   : > { %v494_v48 = vmax.f32 %v462_v18, 0.0  ;;  %v763_v16 = vadd.f32 %v747_v50, %v713_v23  ;;  %v847_v46 = vmul.f32 %v2183_v8, %v2642_v4  ;;  %v897_v42 = vmul.f32 %v2207_v45, %v2326_v55  ;;  %v2661_v23 = vld [vmem:[#allocation2 + $0x6a] sm:$0xff] }
  0x8e   : > { %v1660_v60 = vadd.f32 %v1659_v61, %v1645_v9  ;;  %v1591_v54 = vadd.f32 %v1575_v6, %v1541_v14  ;;  %v1492_v10 = vadd.f32 %v1476_v5, %v1441_v1  ;;  %v1175_v19 = vmul.f32 %v2404_v37, %v2534_v49  ;;  %v2659_v5 = vld [vmem:[#allocation2 + $0x69] sm:$0xff] }
  0x8f   : > { %v526_v24 = vmin.f32 %v494_v48, 6.0  ;;  %v813_v26 = vadd.f32 %v797_v25, %v763_v16  ;;  %v1225_v57 = vmul.f32 %v2412_v39, %v2573_v12  ;;  %v1275_v50 = vmul.f32 %v2427_v7, %v2543_v32  ;;  %v680_v9 = vld [vmem:[#allocation2 + $0x49] sm:$0xff] }
  0x90   : > { %1816 = vst [vmem:[%s2319_s7 + $0x98] sm:$0xff] %v1591_v54  ;;  %v1623_v30 = vadd.f32 %v1622_v52, %v1591_v54  ;;  %v1646_v21 = vmul.f32 %v1591_v54, %v1591_v54  ;;  %v1542_v20 = vadd.f32 %v1526_v27, %v1492_v10  ;;  %v948_v6 = vmul.f32 %v2215_v51, %v2650_v13 }
  0x91   : > { %v558_v61 = vmul.f32 %v526_v24, %v430_v62  ;;  %v863_v49 = vadd.f32 %v847_v46, %v813_v26  ;;  %v1241_v18 = vadd.f32 %v1225_v57, %v1175_v19  ;;  %v1326_v12 = vmul.f32 %v2439_v58, %v2579_v33  ;;  %v2681_v19 = vld [vmem:[#allocation2 + $0x128] sm:$0xff] }
  0x92   : > { %v1661_v25 = vadd.f32 %v1660_v60, %v1646_v21  ;;  %v1592_v32 = vadd.f32 %v1576_v15, %v1542_v20  ;;  %v998_v52 = vmul.f32 %v2192_v34, %v2659_v5  ;;  %v1048_v27 = vmul.f32 %v2263_v38, %v2661_v23  ;;  %v2698_v21 = vld [vmem:[#allocation2 + $0x129] sm:$0xff]  ;;  %v3158_v20 = vld [vmem:[#allocation5_spill] sm:$0xff] }
  0x93   : > { %v2669_v14 = vmul.f32 0.16666667, %v558_v61  ;;  %v913_v62 = vadd.f32 %v897_v42, %v863_v49  ;;  %v1291_v1 = vadd.f32 %v1275_v50, %v1241_v18  ;;  %v1376_v48 = vmul.f32 %v2473_v11, %v2581_v0  ;;  %v3160_v49 = vld [vmem:[#allocation12_spill] sm:$0xff] }
  0x94   : > { %1817 = vst [vmem:[%s2319_s7 + $0xa0] sm:$0xff] %v1592_v32  ;;  %v2674_v16 = vadd.f32 %v1623_v30, %v1592_v32  ;;  %v1647_v46 = vmul.f32 %v1592_v32, %v1592_v32  ;;  %v1426_v15 = vmul.f32 %v2456_v41, %v2600_v35  ;;  %v648_v60 = vmul.f32 %v2131_v28, %v2281_v53  ;;  %v2712_v32 = vld [vmem:[#allocation2 + $0x12a] sm:$0xff] }
  0x95   : > { %3155 = vst [vmem:[#allocation13_spill] sm:$0xff] %v2669_v14  ;;  %v964_v54 = vadd.f32 %v948_v6, %v913_v62  ;;  %v1342_v10 = vadd.f32 %v1326_v12, %v1291_v1  ;;  %v698_v42 = vmul.f32 %v2152_v43, %v680_v9  ;;  %v748_v24 = vmul.f32 %v2162_v40, %v2306_v29  ;;  %v2702_v29 = vld [vmem:[#allocation2 + $0x61] sm:$0xff]  ;;  %v3159_v6 = vld [vmem:[#allocation11_spill] sm:$0xff] }
  0x96   : > { %623 = vst [vmem:[#allocation2 + $0x189] sm:$0xff] %v2669_v14  ;;  %v2688_v26 = vmul.f32 %v2464_v47, %v2464_v47  ;;  %v2692_v57 = vmul.f32 %v2515_v31, %v2515_v31  ;;  %v2694_v28 = vadd.f32 %v1661_v25, %v1647_v46  ;;  %v1477_v53 = vmul.f32 %v2461_v44, %v2681_v19  ;;  %v3161_v1 = vld [vmem:[#allocation6_spill] sm:$0xff] }
  0x97   : > { %v1014_v50 = vadd.f32 %v998_v52, %v964_v54  ;;  %v1392_v30 = vadd.f32 %v1376_v48, %v1342_v10  ;;  %v714_v43 = vadd.f32 %v698_v42, %v648_v60  ;;  %v798_v40 = vmul.f32 %v2175_v3, %v3158_v20  ;;  %v3162_v54 = vld [vmem:[#allocation7_spill] sm:$0xff] }
  0x98   : > { %3156 = vst [vmem:[#allocation14_spill] sm:$0xff] %v2688_v26  ;;  %v1527_v47 = vmul.f32 %v2489_v17, %v2698_v21  ;;  %v848_v31 = vmul.f32 %v2183_v8, %v2702_v29  ;;  %v1176_v61 = vmul.f32 %v2404_v37, %v3159_v6  ;;  %v1226_v18 = vmul.f32 %v2412_v39, %v3160_v49  ;;  %v2787_v26 = vld [vmem:[#allocation2 + $0x80] sm:$0xff] }
  0x99   : > { %3157 = vst [vmem:[#allocation15_spill] sm:$0xff] %v2692_v57  ;;  %v1064_v12 = vadd.f32 %v1048_v27, %v1014_v50  ;;  %v1442_v25 = vadd.f32 %v1426_v15, %v1392_v30  ;;  %v764_v52 = vadd.f32 %v748_v24, %v714_v43  ;;  %v1276_v9 = vmul.f32 %v2427_v7, %v2567_v22  ;;  %v2726_v24 = vld [vmem:[#allocation2 + $0x78] sm:$0xff]  ;;  %v3163_v22 = vld [vmem:[#allocation10_spill] sm:$0xff] }
  0x9a   : > { %v1577_v62 = vmul.f32 %v2494_v56, %v2712_v32  ;;  %v898_v48 = vmul.f32 %v2207_v45, %v3161_v1  ;;  %v1242_v46 = vadd.f32 %v1226_v18, %v1176_v61  ;;  %v1327_v60 = vmul.f32 %v2439_v58, %v2621_v36  ;;  %v3165_v61 = vld [vmem:[#allocation8_spill] sm:$0xff]  ;;  %3166 = vst [vmem:[#allocation11_spill] sm:$0xff] %v2787_v26 }
  0x9b   : > { %1080 = vst [vmem:[%s2319_s7 + $0x28] sm:$0xff] %v1064_v12  ;;  %v2724_v27 = vadd.f32 %v3162_v54, %v1064_v12  ;;  %v1118_v15 = vmul.f32 %v1064_v12, %v1064_v12  ;;  %v1493_v10 = vadd.f32 %v1477_v53, %v1442_v25  ;;  %v814_v42 = vadd.f32 %v798_v40, %v764_v52  ;;  %v2742_v53 = vld [vmem:[%s3123_s1] ss:$0 sm:$0xff] }
  0x9c   : > { %v2730_v50 = vmul.f32 %v3163_v22, %v3163_v22  ;;  %v949_v30 = vmul.f32 %v2215_v51, %v2726_v24  ;;  %v1292_v43 = vadd.f32 %v1276_v9, %v1242_v46  ;;  %v1377_v6 = vmul.f32 %v2473_v11, %v2631_v59  ;;  %v2746_v25 = vld [vmem:[#allocation2 + $0x79] sm:$0xff] }
  0x9d   : > { %v2737_v49 = vadd.f32 %v3165_v61, %v1118_v15  ;;  %v1543_v18 = vadd.f32 %v1527_v47, %v1493_v10  ;;  %v864_v12 = vadd.f32 %v848_v31, %v814_v42  ;;  %v649_v40 = vmul.f32 %v2742_v53, %v2298_v2  ;;  %v2748_v52 = vld [vmem:[#allocation2 + $0x7a] sm:$0xff]  ;;  %v2762_v2 = vld [vmem:[%s3123_s1 + $0x2] ss:$0 sm:$0xff] }
  0x9e   : > { %3164 = vst [vmem:[#allocation5_spill] sm:$0xff] %v2730_v50  ;;  %v1343_v9 = vadd.f32 %v1327_v60, %v1292_v43  ;;  %v1427_v46 = vmul.f32 %v2456_v41, %v2633_v63  ;;  %v2755_v47 = vld [vmem:[%s3123_s1 + $0x1] ss:$0 sm:$0xff]  ;;  %v749_v60 = vmul.f32 %v2762_v2, %v2326_v55  ;;  %v999_v10 = vmul.f32 %v2192_v34, %v2746_v25  ;;  %v2770_v43 = vld [vmem:[#allocation2 + $0x138] sm:$0xff] }
  0x9f   : > { %v699_v31 = vmul.f32 %v2755_v47, %v2642_v4  ;;  %v1593_v54 = vadd.f32 %v1577_v62, %v1543_v18  ;;  %v914_v15 = vadd.f32 %v898_v48, %v864_v12  ;;  %v1049_v42 = vmul.f32 %v2263_v38, %v2748_v52  ;;  %v2774_v50 = vld [vmem:[#allocation2 + $0x139] sm:$0xff] }
  0xa0   : > { %v1393_v61 = vadd.f32 %v1377_v6, %v1343_v9  ;;  %v1478_v4 = vmul.f32 %v2461_v44, %v2770_v43  ;;  %v2776_v57 = vld [vmem:[#allocation2 + $0x13a] sm:$0xff]  ;;  %v799_v55 = vmul.f32 %v2175_v3, %v2650_v13  ;;  %v1528_v48 = vmul.f32 %v2489_v17, %v2774_v50 }
  0xa1   : > { %v715_v22 = vadd.f32 %v699_v31, %v649_v40  ;;  %1818 = vst [vmem:[%s2319_s7 + $0xa8] sm:$0xff] %v1593_v54  ;;  %v965_v62 = vadd.f32 %v949_v30, %v914_v15  ;;  %v1578_v18 = vmul.f32 %v2494_v56, %v2776_v57  ;;  %v849_v6 = vmul.f32 %v2183_v8, %v2659_v5 }
  0xa2   : > { %v1443_v12 = vadd.f32 %v1427_v46, %v1393_v61  ;;  %v1177_v40 = vmul.f32 %v2404_v37, %v2579_v33  ;;  %v1227_v3 = vmul.f32 %v2412_v39, %v2581_v0  ;;  %v899_v31 = vmul.f32 %v2207_v45, %v2661_v23 }
  0xa3   : > { %v765_v9 = vadd.f32 %v749_v60, %v715_v22  ;;  %v1015_v30 = vadd.f32 %v999_v10, %v965_v62  ;;  %v950_v15 = vmul.f32 %v2215_v51, %v2787_v26  ;;  %v1277_v8 = vmul.f32 %v2427_v7, %v2600_v35  ;;  %v2799_v60 = vld [vmem:[#allocation2 + $0x81] sm:$0xff] }
  0xa4   : > { %v1494_v22 = vadd.f32 %v1478_v4, %v1443_v12  ;;  %v1243_v61 = vadd.f32 %v1227_v3, %v1177_v40  ;;  %v1328_v33 = vmul.f32 %v2439_v58, %v2681_v19  ;;  %v1625_v0 = vadd.f32 %v2674_v16, %v1593_v54  ;;  %v2806_v26 = vld [vmem:[#allocation2 + $0x82] sm:$0xff] }
  0xa5   : > { %v815_v46 = vadd.f32 %v799_v55, %v765_v9  ;;  %v1648_v10 = vmul.f32 %v1593_v54, %v1593_v54  ;;  %v1065_v62 = vadd.f32 %v1049_v42, %v1015_v30  ;;  %v1000_v45 = vmul.f32 %v2192_v34, %v2799_v60  ;;  %v2819_v12 = vld [vmem:[#allocation2 + $0x140] sm:$0xff] }
  0xa6   : > { %v1544_v51 = vadd.f32 %v1528_v48, %v1494_v22  ;;  %v1293_v35 = vadd.f32 %v1277_v8, %v1243_v61  ;;  %v1378_v4 = vmul.f32 %v2473_v11, %v2698_v21  ;;  %v1050_v55 = vmul.f32 %v2263_v38, %v2806_v26  ;;  %v2826_v30 = vld [vmem:[#allocation2 + $0x141] sm:$0xff] }
  0xa7   : > { %v865_v14 = vadd.f32 %v849_v6, %v815_v46  ;;  %1081 = vst [vmem:[%s2319_s7 + $0x30] sm:$0xff] %v1065_v62  ;;  %v1428_v16 = vmul.f32 %v2456_v41, %v2712_v32  ;;  %v650_v54 = vmul.f32 %v2742_v53, %v3158_v20  ;;  %v700_v34 = vmul.f32 %v2755_v47, %v2702_v29  ;;  %v2831_v20 = vld [vmem:[%s3123_s1 + $0x3] ss:$0 sm:$0xff] }
  0xa8   : > { %v1594_v42 = vadd.f32 %v1578_v18, %v1544_v51  ;;  %v1344_v6 = vadd.f32 %v1328_v33, %v1293_v35  ;;  %v750_v9 = vmul.f32 %v2762_v2, %v3161_v1  ;;  %v1663_v40 = vadd.f32 %v2694_v28, %v1648_v10  ;;  %3167 = vst [vmem:[#allocation12_spill] sm:$0xff] %v2826_v30  ;;  %v2846_v33 = vld [vmem:[%s3123_s1 + $0x4] ss:$0 sm:$0xff] }
  0xa9   : > { %v915_v48 = vadd.f32 %v899_v31, %v865_v14  ;;  %v1479_v3 = vmul.f32 %v2461_v44, %v2819_v12  ;;  %v716_v8 = vadd.f32 %v700_v34, %v650_v54  ;;  %v800_v14 = vmul.f32 %v2831_v20, %v2726_v24  ;;  %v2838_v31 = vld [vmem:[#allocation2 + $0x142] sm:$0xff] }
  0xaa   : > { %v1119_v29 = vmul.f32 %v1065_v62, %v1065_v62  ;;  %1819 = vst [vmem:[%s2319_s7 + $0xb0] sm:$0xff] %v1594_v42  ;;  %v1394_v1 = vadd.f32 %v1378_v4, %v1344_v6  ;;  %v1529_v28 = vmul.f32 %v2489_v17, %v2826_v30  ;;  %v1096_v22 = vadd.f32 %v2724_v27, %v1065_v62  ;;  %v2854_v27 = vld [vmem:[%s3123_s1 + $0x5] ss:$0 sm:$0xff] }
  0xab   : > { %v966_v18 = vadd.f32 %v950_v15, %v915_v48  ;;  %3168 = vst [vmem:[#allocation6_spill] sm:$0xff] %v2838_v31  ;;  %v1579_v46 = vmul.f32 %v2494_v56, %v2838_v31  ;;  %v766_v61 = vadd.f32 %v750_v9, %v716_v8  ;;  %v850_v15 = vmul.f32 %v2846_v33, %v2746_v25  ;;  %v2867_v8 = vld [vmem:[%s3123_s1 + $0x6] ss:$0 sm:$0xff] }
  0xac   : > { %v1134_v10 = vadd.f32 %v2737_v49, %v1119_v29  ;;  %v1444_v35 = vadd.f32 %v1428_v16, %v1394_v1  ;;  %v900_v62 = vmul.f32 %v2854_v27, %v2748_v52  ;;  %v1178_v54 = vmul.f32 %v2404_v37, %v2621_v36  ;;  %v2871_v36 = vld [vmem:[#allocation2 + $0x91] sm:$0xff] }
  0xad   : > { %v1016_v51 = vadd.f32 %v1000_v45, %v966_v18  ;;  %v816_v4 = vadd.f32 %v800_v14, %v766_v61  ;;  %v1228_v34 = vmul.f32 %v2412_v39, %v2631_v59  ;;  %v1278_v49 = vmul.f32 %v2427_v7, %v2633_v63  ;;  %v3169_v14 = vld [vmem:[#allocation3_spill] sm:$0xff] }
  0xae   : > { %v1626_v45 = vadd.f32 %v1625_v0, %v1594_v42  ;;  %v1649_v16 = vmul.f32 %v1594_v42, %v1594_v42  ;;  %v1495_v6 = vadd.f32 %v1479_v3, %v1444_v35  ;;  %v951_v29 = vmul.f32 %v2867_v8, %v3169_v14  ;;  %v3170_v3 = vld [vmem:[#allocation4_spill] sm:$0xff] }
  0xaf   : > { %v1066_v48 = vadd.f32 %v1050_v55, %v1016_v51  ;;  %v866_v9 = vadd.f32 %v850_v15, %v816_v4  ;;  %v1244_v18 = vadd.f32 %v1228_v34, %v1178_v54  ;;  %v1329_v59 = vmul.f32 %v2439_v58, %v2770_v43  ;;  %v2879_v55 = vld [vmem:[%s3123_s1 + $0x7] ss:$0 sm:$0xff]  ;;  %v2891_v4 = vld [vmem:[#allocation2 + $0x150] sm:$0xff] }
  0xb0   : > { %v1664_v63 = vadd.f32 %v1663_v40, %v1649_v16  ;;  %v1545_v0 = vadd.f32 %v1529_v28, %v1495_v6  ;;  %v1001_v42 = vmul.f32 %v2879_v55, %v2871_v36  ;;  %v1051_v1 = vmul.f32 %v2263_v38, %v3170_v3  ;;  %v2899_v6 = vld [vmem:[#allocation2 + $0x151] sm:$0xff] }
  0xb1   : > { %1082 = vst [vmem:[%s2319_s7 + $0x38] sm:$0xff] %v1066_v48  ;;  %v916_v61 = vadd.f32 %v900_v62, %v866_v9  ;;  %v1294_v15 = vadd.f32 %v1278_v49, %v1244_v18  ;;  %v1379_v51 = vmul.f32 %v2473_v11, %v2774_v50  ;;  %v651_v40 = vmul.f32 %v2742_v53, %v2650_v13  ;;  %v2904_v9 = vld [vmem:[#allocation2 + $0x152] sm:$0xff] }
  0xb2   : > { %v1595_v28 = vadd.f32 %v1579_v46, %v1545_v0  ;;  %v1429_v35 = vmul.f32 %v2456_v41, %v2776_v57  ;;  %v701_v54 = vmul.f32 %v2755_v47, %v2659_v5  ;;  %v751_v38 = vmul.f32 %v2762_v2, %v2661_v23  ;;  %v3171_v5 = vld [vmem:[#allocation11_spill] sm:$0xff] }
  0xb3   : > { %v1120_v62 = vmul.f32 %v1066_v48, %v1066_v48  ;;  %v967_v34 = vadd.f32 %v951_v29, %v916_v61  ;;  %v1345_v49 = vadd.f32 %v1329_v59, %v1294_v15  ;;  %v1480_v16 = vmul.f32 %v2461_v44, %v2891_v4 }
  0xb4   : > { %v1097_v13 = vadd.f32 %v1096_v22, %v1066_v48  ;;  %1820 = vst [vmem:[%s2319_s7 + $0xb8] sm:$0xff] %v1595_v28  ;;  %v1530_v46 = vmul.f32 %v2489_v17, %v2899_v6  ;;  %v717_v14 = vadd.f32 %v701_v54, %v651_v40  ;;  %v801_v18 = vmul.f32 %v2831_v20, %v3171_v5  ;;  %v2916_v54 = vld [vmem:[#allocation2 + $0x98] sm:$0xff] }
  0xb5   : > { %v1135_v23 = vadd.f32 %v1134_v10, %v1120_v62  ;;  %v1017_v0 = vadd.f32 %v1001_v42, %v967_v34  ;;  %v1395_v29 = vadd.f32 %v1379_v51, %v1345_v49  ;;  %v1580_v59 = vmul.f32 %v2494_v56, %v2904_v9  ;;  %v2926_v34 = vld [vmem:[#allocation2 + $0x99] sm:$0xff] }
  0xb6   : > { %v2910_v3 = vadd.f32 %v1626_v45, %v1595_v28  ;;  %v767_v22 = vadd.f32 %v751_v38, %v717_v14  ;;  %v851_v48 = vmul.f32 %v2846_v33, %v2799_v60  ;;  %v1179_v61 = vmul.f32 %v2404_v37, %v2681_v19  ;;  %v2938_v14 = vld [vmem:[%s3123_s1 + $0x8] ss:$0 sm:$0xff] }
  0xb7   : > { %v1067_v15 = vadd.f32 %v1051_v1, %v1017_v0  ;;  %v1445_v40 = vadd.f32 %v1429_v35, %v1395_v29  ;;  %v1229_v10 = vmul.f32 %v2412_v39, %v2698_v21  ;;  %v1279_v42 = vmul.f32 %v2427_v7, %v2712_v32  ;;  %v2931_v35 = vld [vmem:[#allocation2 + $0x9a] sm:$0xff] }
  0xb8   : > { %v1650_v51 = vmul.f32 %v1595_v28, %v1595_v28  ;;  %v817_v45 = vadd.f32 %v801_v18, %v767_v22  ;;  %v901_v38 = vmul.f32 %v2854_v27, %v2806_v26  ;;  %v952_v62 = vmul.f32 %v2867_v8, %v2916_v54  ;;  %3172 = vst [vmem:[#allocation7_spill] sm:$0xff] %v2931_v35 }
  0xb9   : > { %1083 = vst [vmem:[%s2319_s7 + $0x40] sm:$0xff] %v1067_v15  ;;  %v1496_v19 = vadd.f32 %v1480_v16, %v1445_v40  ;;  %v1002_v1 = vmul.f32 %v2879_v55, %v2926_v34  ;;  %v1245_v21 = vadd.f32 %v1229_v10, %v1179_v61  ;;  %v1330_v32 = vmul.f32 %v2439_v58, %v2819_v12  ;;  %v2950_v10 = vld [vmem:[#allocation2 + $0x158] sm:$0xff] }
  0xba   : > { %v1665_v28 = vadd.f32 %v1664_v63, %v1650_v51  ;;  %v867_v49 = vadd.f32 %v851_v48, %v817_v45  ;;  %v1052_v18 = vmul.f32 %v2938_v14, %v2931_v35  ;;  %v1380_v16 = vmul.f32 %v2473_v11, %v2826_v30  ;;  %v784_v48 = vld [vmem:[#allocation2 + $0x90] sm:$0xff]  ;;  %v935_v35 = vld [vmem:[#allocation2 + $0xa8] sm:$0xff] }
  0xbb   : > { %v1546_v0 = vadd.f32 %v1530_v46, %v1496_v19  ;;  %v1295_v29 = vadd.f32 %v1279_v42, %v1245_v21  ;;  %v1430_v22 = vmul.f32 %v2456_v41, %v2838_v31  ;;  %v652_v63 = vmul.f32 %v2742_v53, %v2726_v24  ;;  %v2958_v24 = vld [vmem:[#allocation2 + $0x159] sm:$0xff] }
  0xbc   : > { %v2948_v61 = vadd.f32 %v1097_v13, %v1067_v15  ;;  %v917_v40 = vadd.f32 %v901_v38, %v867_v49  ;;  %v702_v51 = vmul.f32 %v2755_v47, %v2746_v25  ;;  %v752_v46 = vmul.f32 %v2762_v2, %v2748_v52  ;;  %v2962_v49 = vld [vmem:[#allocation2 + $0x15a] sm:$0xff]  ;;  %v884_v30 = vld [vmem:[#allocation2 + $0x92] sm:$0xff] }
  0xbd   : > { %v1121_v42 = vmul.f32 %v1067_v15, %v1067_v15  ;;  %v1596_v45 = vadd.f32 %v1580_v59, %v1546_v0  ;;  %v1346_v19 = vadd.f32 %v1330_v32, %v1295_v29  ;;  %v1481_v21 = vmul.f32 %v2461_v44, %v2950_v10  ;;  %v985_v29 = vld [vmem:[#allocation2 + $0xa9] sm:$0xff] }
  0xbe   : > { %v968_v13 = vadd.f32 %v952_v62, %v917_v40  ;;  %v1531_v38 = vmul.f32 %v2489_v17, %v2958_v24  ;;  %v718_v31 = vadd.f32 %v702_v51, %v652_v63  ;;  %v802_v25 = vmul.f32 %v2831_v20, %v784_v48  ;;  %v1035_v51 = vld [vmem:[#allocation2 + $0xaa] sm:$0xff] }
  0xbf   : > { %v1136_v52 = vadd.f32 %v1135_v23, %v1121_v42  ;;  %1821 = vst [vmem:[%s2319_s7 + $0xc0] sm:$0xff] %v1596_v45  ;;  %v1396_v59 = vadd.f32 %v1380_v16, %v1346_v19  ;;  %v1581_v15 = vmul.f32 %v2494_v56, %v2962_v49  ;;  %v852_v32 = vmul.f32 %v2846_v33, %v2871_v36 }
  0xc0   : > { %v1018_v62 = vadd.f32 %v1002_v1, %v968_v13  ;;  %v768_v0 = vadd.f32 %v752_v46, %v718_v31  ;;  %v1180_v63 = vmul.f32 %v2404_v37, %v2770_v43  ;;  %v1230_v48 = vmul.f32 %v2412_v39, %v2774_v50 }
  0xc1   : > { %v1446_v40 = vadd.f32 %v1430_v22, %v1396_v59  ;;  %v902_v23 = vmul.f32 %v2854_v27, %v884_v30  ;;  %v953_v16 = vmul.f32 %v2867_v8, %v935_v35  ;;  %v1280_v42 = vmul.f32 %v2427_v7, %v2776_v57 }
  0xc2   : > { %v1068_v36 = vadd.f32 %v1052_v18, %v1018_v62  ;;  %v818_v1 = vadd.f32 %v802_v25, %v768_v0  ;;  %v1246_v31 = vadd.f32 %v1230_v48, %v1180_v63  ;;  %v1331_v46 = vmul.f32 %v2439_v58, %v2891_v4  ;;  %v2992_v62 = vld [vmem:[#allocation2 + $0x168] sm:$0xff] }
  0xc3   : > { %v1628_v43 = vadd.f32 %v2910_v3, %v1596_v45  ;;  %v1651_v19 = vmul.f32 %v1596_v45, %v1596_v45  ;;  %v1497_v13 = vadd.f32 %v1481_v21, %v1446_v40  ;;  %v1003_v50 = vmul.f32 %v2879_v55, %v985_v29  ;;  %v3004_v40 = vld [vmem:[#allocation2 + $0x16a] sm:$0xff] }
  0xc4   : > { %1084 = vst [vmem:[%s2319_s7 + $0x48] sm:$0xff] %v1068_v36  ;;  %v868_v30 = vadd.f32 %v852_v32, %v818_v1  ;;  %v1053_v35 = vmul.f32 %v2938_v14, %v1035_v51  ;;  %v1296_v22 = vadd.f32 %v1280_v42, %v1246_v31  ;;  %v1381_v57 = vmul.f32 %v2473_v11, %v2899_v6  ;;  %v936_v51 = vld [vmem:[#allocation2 + $0xb0] sm:$0xff] }
  0xc5   : > { %v1666_v18 = vadd.f32 %v1665_v28, %v1651_v19  ;;  %v1547_v25 = vadd.f32 %v1531_v38, %v1497_v13  ;;  %v653_v59 = vmul.f32 %v2742_v53, %v3171_v5  ;;  %v703_v3 = vmul.f32 %v2755_v47, %v2799_v60  ;;  %v2998_v38 = vld [vmem:[#allocation2 + $0x169] sm:$0xff]  ;;  %v3174_v19 = vld [vmem:[#allocation12_spill] sm:$0xff] }
  0xc6   : > { %v918_v45 = vadd.f32 %v902_v23, %v868_v30  ;;  %v1347_v21 = vadd.f32 %v1331_v46, %v1296_v22  ;;  %v1431_v32 = vmul.f32 %v2456_v41, %v2904_v9  ;;  %v753_v0 = vmul.f32 %v2762_v2, %v2806_v26  ;;  %v3173_v31 = vld [vmem:[#allocation7_spill] sm:$0xff]  ;;  %v3175_v30 = vld [vmem:[#allocation6_spill] sm:$0xff] }
  0xc7   : > { %v1597_v29 = vadd.f32 %v1581_v15, %v1547_v25  ;;  %v1482_v28 = vmul.f32 %v2461_v44, %v2992_v62  ;;  %v719_v53 = vadd.f32 %v703_v3, %v653_v59  ;;  %v803_v47 = vmul.f32 %v2831_v20, %v2916_v54  ;;  %v1036_v46 = vld [vmem:[#allocation2 + $0xb2] sm:$0xff] }
  0xc8   : > { %v1122_v60 = vmul.f32 %v1068_v36, %v1068_v36  ;;  %v969_v5 = vadd.f32 %v953_v16, %v918_v45  ;;  %v1397_v63 = vadd.f32 %v1381_v57, %v1347_v21  ;;  %v1532_v48 = vmul.f32 %v2489_v17, %v2998_v38 }
  0xc9   : > { %v1099_v26 = vadd.f32 %v2948_v61, %v1068_v36  ;;  %1822 = vst [vmem:[%s2319_s7 + $0xc8] sm:$0xff] %v1597_v29  ;;  %v1582_v2 = vmul.f32 %v2494_v56, %v3004_v40  ;;  %v769_v15 = vadd.f32 %v753_v0, %v719_v53  ;;  %v853_v23 = vmul.f32 %v2846_v33, %v2926_v34  ;;  %v986_v36 = vld [vmem:[#allocation2 + $0xb1] sm:$0xff] }
  0xca   : > { %v1137_v20 = vadd.f32 %v1136_v52, %v1122_v60  ;;  %v1019_v54 = vadd.f32 %v1003_v50, %v969_v5  ;;  %v1447_v16 = vadd.f32 %v1431_v32, %v1397_v63  ;;  %v1181_v42 = vmul.f32 %v2404_v37, %v2819_v12  ;;  %v3040_v5 = vld [vmem:[#allocation2 + $0x171] sm:$0xff] }
  0xcb   : > { %v819_v1 = vadd.f32 %v803_v47, %v769_v15  ;;  %v903_v61 = vmul.f32 %v2854_v27, %v3173_v31  ;;  %v1231_v13 = vmul.f32 %v2412_v39, %v3174_v19  ;;  %v1281_v33 = vmul.f32 %v2427_v7, %v3175_v30  ;;  %v3045_v63 = vld [vmem:[#allocation2 + $0x172] sm:$0xff]  ;;  %v1875_v31 = vld [vmem:[%s3123_s1 + $0x1] ss:$0 sm:$0xff] }
  0xcc   : > { %v1652_v34 = vmul.f32 %v1597_v29, %v1597_v29  ;;  %v1069_v52 = vadd.f32 %v1053_v35, %v1019_v54  ;;  %v1498_v50 = vadd.f32 %v1482_v28, %v1447_v16  ;;  %v954_v22 = vmul.f32 %v2867_v8, %v936_v51  ;;  %v1874_v16 = vld [vmem:[%s3123_s1] ss:$0 sm:$0xff] }
  0xcd   : > { %v1629_v57 = vadd.f32 %v1628_v43, %v1597_v29  ;;  %v869_v12 = vadd.f32 %v853_v23, %v819_v1  ;;  %v1247_v25 = vadd.f32 %v1231_v13, %v1181_v42  ;;  %v1332_v59 = vmul.f32 %v2439_v58, %v2950_v10  ;;  %v1466_v23 = vld [vmem:[#allocation2 + $0x180] sm:$0xff] }
  0xce   : > { %v1667_v27 = vadd.f32 %v1666_v18, %v1652_v34  ;;  %1085 = vst [vmem:[%s2319_s7 + $0x50] sm:$0xff] %v1069_v52  ;;  %v1548_v3 = vadd.f32 %v1532_v48, %v1498_v50  ;;  %v1004_v45 = vmul.f32 %v2879_v55, %v986_v36  ;;  %v1054_v21 = vmul.f32 %v2938_v14, %v1036_v46  ;;  %v3032_v18 = vld [vmem:[#allocation2 + $0x170] sm:$0xff]  ;;  %v1516_v1 = vld [vmem:[#allocation2 + $0x181] sm:$0xff] }
  0xcf   : > { %v919_v32 = vadd.f32 %v903_v61, %v869_v12  ;;  %v1297_v0 = vadd.f32 %v1281_v33, %v1247_v25  ;;  %v1382_v35 = vmul.f32 %v2473_v11, %v2958_v24  ;;  %v1182_v8 = vmul.f32 %v2404_v37, %v2891_v4  ;;  %v1566_v25 = vld [vmem:[#allocation2 + $0x182] sm:$0xff] }
  0xd0   : > { %v1598_v43 = vadd.f32 %v1582_v2, %v1548_v3  ;;  %v1432_v29 = vmul.f32 %v2456_v41, %v2962_v49  ;;  %v1232_v55 = vmul.f32 %v2412_v39, %v2899_v6  ;;  %v1282_v14 = vmul.f32 %v2427_v7, %v2904_v9 }
  0xd1   : > { %v1123_v28 = vmul.f32 %v1069_v52, %v1069_v52  ;;  %v970_v53 = vadd.f32 %v954_v22, %v919_v32  ;;  %v1348_v47 = vadd.f32 %v1332_v59, %v1297_v0  ;;  %v1483_v60 = vmul.f32 %v2461_v44, %v3032_v18 }
  0xd2   : > { %v1100_v37 = vadd.f32 %v1099_v26, %v1069_v52  ;;  %1823 = vst [vmem:[%s2319_s7 + $0xd0] sm:$0xff] %v1598_v43  ;;  %v1533_v4 = vmul.f32 %v2489_v17, %v3040_v5  ;;  %v1248_v48 = vadd.f32 %v1232_v55, %v1182_v8  ;;  %v1333_v39 = vmul.f32 %v2439_v58, %v2992_v62  ;;  %v1876_v52 = vld [vmem:[%s3123_s1 + $0x3] ss:$0 sm:$0xff] }
  0xd3   : > { %v1138_v6 = vadd.f32 %v1137_v20, %v1123_v28  ;;  %v1020_v9 = vadd.f32 %v1004_v45, %v970_v53  ;;  %v1398_v2 = vadd.f32 %v1382_v35, %v1348_v47  ;;  %v1583_v15 = vmul.f32 %v2494_v56, %v3045_v63  ;;  %v1467_v45 = vld [vmem:[#allocation2 + $0x188] sm:$0xff]  ;;  %v1881_v47 = vld [vmem:[%s3123_s1 + $0x7] ss:$0 sm:$0xff] }
  0xd4   : > { %v3051_v51 = vadd.f32 %v1629_v57, %v1598_v43  ;;  %v1298_v26 = vadd.f32 %v1282_v14, %v1248_v48  ;;  %v1383_v54 = vmul.f32 %v2473_v11, %v2998_v38  ;;  %v1183_v58 = vmul.f32 %v1874_v16, %v2950_v10  ;;  %v1883_v48 = vld [vmem:[%s2319_s7 + $0x68] sm:$0xff] }
  0xd5   : > { %v1070_v20 = vadd.f32 %v1054_v21, %v1020_v9  ;;  %v1448_v42 = vadd.f32 %v1432_v29, %v1398_v2  ;;  %v1233_v61 = vmul.f32 %v1875_v31, %v2958_v24  ;;  %v1283_v36 = vmul.f32 %v2427_v7, %v2962_v49  ;;  %v1567_v21 = vld [vmem:[#allocation2 + $0x18a] sm:$0xff]  ;;  %v1884_v2 = vld [vmem:[%s3123_s1 + $0x4] ss:$0 sm:$0xff] }
  0xd6   : > { %v1653_v46 = vmul.f32 %v1598_v43, %v1598_v43  ;;  %v1349_v19 = vadd.f32 %v1333_v39, %v1298_v26  ;;  %v1433_v13 = vmul.f32 %v2456_v41, %v3004_v40  ;;  %v1484_v10 = vmul.f32 %v2461_v44, %v1466_v23  ;;  %v1877_v41 = vld [vmem:[%s2319_s7 + $0x60] sm:$0xff] }
  0xd7   : > { %1086 = vst [vmem:[%s2319_s7 + $0x58] sm:$0xff] %v1070_v20  ;;  %v1101_v30 = vadd.f32 %v1100_v37, %v1070_v20  ;;  %v1499_v33 = vadd.f32 %v1483_v60, %v1448_v42  ;;  %v1249_v34 = vadd.f32 %v1233_v61, %v1183_v58  ;;  %v1334_v24 = vmul.f32 %v1876_v52, %v3032_v18  ;;  %v1879_v43 = vld [vmem:[%s3123_s1 + $0x5] ss:$0 sm:$0xff] }
  0xd8   : > { %v1668_v50 = vadd.f32 %v1667_v27, %v1653_v46  ;;  %v1399_v22 = vadd.f32 %v1383_v54, %v1349_v19  ;;  %v1534_v7 = vmul.f32 %v2489_v17, %v1516_v1  ;;  %v1384_v49 = vmul.f32 %v2473_v11, %v3040_v5  ;;  %v1878_v17 = vld [vmem:[%s3123_s1 + $0x2] ss:$0 sm:$0xff]  ;;  %v1568_v46 = vld [vmem:[#allocation2 + $0x19a] sm:$0xff] }
  0xd9   : > { %v1102_v57 = vadd.f32 %v1877_v41, %v1101_v30  ;;  %v1124_v44 = vmul.f32 %v1070_v20, %v1070_v20  ;;  %v1549_v12 = vadd.f32 %v1533_v4, %v1499_v33  ;;  %v1299_v59 = vadd.f32 %v1283_v36, %v1249_v34  ;;  %v3176_v60 = vld [vmem:[#allocation13_spill] sm:$0xff]  ;;  %v1882_v4 = vld [vmem:[%s3123_s1 + $0x8] ss:$0 sm:$0xff] }
  0xda   : > { %v1449_v3 = vadd.f32 %v1433_v13, %v1399_v22  ;;  %v1184_v32 = vmul.f32 %v1874_v16, %v2992_v62  ;;  %v1234_v27 = vmul.f32 %v1875_v31, %v2998_v38  ;;  %v1284_v11 = vmul.f32 %v1878_v17, %v3004_v40  ;;  %v1880_v40 = vld [vmem:[%s3123_s1 + $0x6] ss:$0 sm:$0xff]  ;;  %v1518_v20 = vld [vmem:[#allocation2 + $0x199] sm:$0xff] }
  0xdb   : > { %v1139_v0 = vadd.f32 %v1138_v6, %v1124_v44  ;;  %v1599_v35 = vadd.f32 %v1583_v15, %v1549_v12  ;;  %v1350_v8 = vadd.f32 %v1334_v24, %v1299_v59  ;;  %v1434_v29 = vmul.f32 %v1879_v43, %v3045_v63  ;;  %v1885_v33 = vld [vmem:[#allocation2] sm:$0xff]  ;;  %v1368_v24 = vld [vmem:[#allocation2 + $0x189] sm:$0xff] }
  0xdc   : > { %v1500_v55 = vadd.f32 %v1484_v10, %v1449_v3  ;;  %v1584_v62 = vmul.f32 %v2494_v56, %v1566_v25  ;;  %v1250_v38 = vadd.f32 %v1234_v27, %v1184_v32  ;;  %v1335_v14 = vmul.f32 %v1876_v52, %v1466_v23  ;;  %v3177_v23 = vld [vmem:[#allocation9_spill] sm:$0xff] }
  0xdd   : > { %1824 = vst [vmem:[%s2319_s7 + $0xd8] sm:$0xff] %v1599_v35  ;;  %v1400_v28 = vadd.f32 %v1384_v49, %v1350_v8  ;;  %v1485_v53 = vmul.f32 %v1880_v40, %v1467_v45  ;;  %v1535_v37 = vmul.f32 %v1881_v47, %v3176_v60  ;;  %v1585_v56 = vmul.f32 %v1882_v4, %v1567_v21 }
  0xde   : > { %v1103_v39 = vadd.f32 %v1883_v48, %v1102_v57  ;;  %v1550_v6 = vadd.f32 %v1534_v7, %v1500_v55  ;;  %v1300_v9 = vadd.f32 %v1284_v11, %v1250_v38  ;;  %v1385_v15 = vmul.f32 %v1884_v2, %v1516_v1 }
  0xdf   : > { %v1140_v26 = vadd.f32 %v1139_v0, %v3177_v23  ;;  %v1450_v54 = vadd.f32 %v1434_v29, %v1400_v28  ;;  %v1435_v58 = vmul.f32 %v1879_v43, %v1566_v25  ;;  %v1185_v42 = vmul.f32 %v1874_v16, %v3032_v18  ;;  %v1519_v0 = vld [vmem:[#allocation2 + $0x1a1] sm:$0xff] }
  0xe0   : > { %v1600_v61 = vadd.f32 %v1584_v62, %v1550_v6  ;;  %v1351_v36 = vadd.f32 %v1335_v14, %v1300_v9  ;;  %v1235_v19 = vmul.f32 %v1875_v31, %v3040_v5  ;;  %v1285_v13 = vmul.f32 %v1878_v17, %v3045_v63  ;;  %v1886_v5 = vld [vmem:[%s2319_s7 + $0x70] sm:$0xff]  ;;  %v3181_v62 = vld [vmem:[#allocation5_spill] sm:$0xff] }
  0xe1   : > { %v1631_v10 = vadd.f32 %v3051_v51, %v1599_v35  ;;  %v1654_v30 = vmul.f32 %v1599_v35, %v1599_v35  ;;  %v1501_v1 = vadd.f32 %v1485_v53, %v1450_v54  ;;  %v1486_v34 = vmul.f32 %v1885_v33, %v1880_v40  ;;  %v3178_v51 = vld [vmem:[#allocation14_spill] sm:$0xff] }
  0xe2   : > { %1825 = vst [vmem:[%s2319_s7 + $0xe0] sm:$0xff] %v1600_v61  ;;  %v1401_v22 = vadd.f32 %v1385_v15, %v1351_v36  ;;  %v1536_v7 = vmul.f32 %v1881_v47, %v1518_v20  ;;  %v1251_v49 = vadd.f32 %v1235_v19, %v1185_v42  ;;  %v1336_v18 = vmul.f32 %v1876_v52, %v1467_v45  ;;  %v3179_v35 = vld [vmem:[#allocation10_spill] sm:$0xff] }
  0xe3   : > { %v1669_v16 = vadd.f32 %v1668_v50, %v1654_v30  ;;  %v1551_v41 = vadd.f32 %v1535_v37, %v1501_v1  ;;  %v1586_v57 = vmul.f32 %v1882_v4, %v1568_v46  ;;  %v1104_v31 = vadd.f32 %v1886_v5, %v1103_v39  ;;  %v3180_v50 = vld [vmem:[#allocation15_spill] sm:$0xff]  ;;  %v1569_v40 = vld [vmem:[#allocation2 + $0x1a2] sm:$0xff] }
  0xe4   : > { %v1451_v44 = vadd.f32 %v1435_v58, %v1401_v22  ;;  %v1301_v63 = vadd.f32 %v1285_v13, %v1251_v49  ;;  %v1386_v12 = vmul.f32 %v1884_v2, %v1368_v24  ;;  %v1141_v25 = vadd.f32 %v1140_v26, %v3178_v51 }
  0xe5   : > { %v1632_v59 = vadd.f32 %v1631_v10, %v1600_v61  ;;  %v1655_v3 = vmul.f32 %v1600_v61, %v1600_v61  ;;  %v1601_v32 = vadd.f32 %v1585_v56, %v1551_v41  ;;  %v1436_v27 = vmul.f32 %v1879_v43, %v1567_v21 }
  0xe6   : > { %v1502_v17 = vadd.f32 %v1486_v34, %v1451_v44  ;;  %v1352_v11 = vadd.f32 %v1336_v18, %v1301_v63  ;;  %v1105_v52 = vadd.f32 %v1104_v31, %v3179_v35  ;;  %v1142_v45 = vadd.f32 %v1141_v25, %v3180_v50 }
  0xe7   : > { %1826 = vst [vmem:[%s2319_s7 + $0xe8] sm:$0xff] %v1601_v32  ;;  %v1670_v8 = vadd.f32 %v1669_v16, %v1655_v3  ;;  %v1633_v14 = vadd.f32 %v1632_v59, %v1601_v32  ;;  %v1537_v28 = vmul.f32 %v1881_v47, %v1519_v0  ;;  %v1656_v53 = vmul.f32 %v1601_v32, %v1601_v32 }
  0xe8   : > { %v1552_v29 = vadd.f32 %v1536_v7, %v1502_v17  ;;  %v1402_v55 = vadd.f32 %v1386_v12, %v1352_v11  ;;  %v1143_v38 = vadd.f32 %v1142_v45, %v3181_v62  ;;  %v1106_v60 = vrot.slane %v1105_v52, 4 }
  0xe9   : > { %v1671_v37 = vadd.f32 %v1670_v8, %v1656_v53  ;;  %v1587_v48 = vmul.f32 %v1882_v4, %v1569_v40 }
  0xea   : > { %v1602_v21 = vadd.f32 %v1586_v57, %v1552_v29  ;;  %v1452_v43 = vadd.f32 %v1436_v27, %v1402_v55  ;;  %v1144_v39 = vrot.slane %v1143_v38, 4  ;;  %v1107_v15 = vadd.f32 %v1106_v60, %v1105_v52 }
  0xec   : > { %1827 = vst [vmem:[%s2319_s7 + $0xf0] sm:$0xff] %v1602_v21  ;;  %v1503_v56 = vadd.f32 %v1486_v34, %v1452_v43  ;;  %v1634_v6 = vadd.f32 %v1633_v14, %v1602_v21  ;;  %v1657_v9 = vmul.f32 %v1602_v21, %v1602_v21  ;;  %v1145_v54 = vadd.f32 %v1144_v39, %v1143_v38 }
  0xed   : > { %v1108_v20 = vrot.slane %v1107_v15, 2 }
  0xee   : > { %v1553_v2 = vadd.f32 %v1537_v28, %v1503_v56  ;;  %v1672_v23 = vadd.f32 %v1671_v37, %v1657_v9  ;;  %v1146_v61 = vrot.slane %v1145_v54, 2 }
  0xef   : > { %v1109_v46 = vadd.f32 %v1108_v20, %v1107_v15 }
  0xf0   : > { %v1603_v26 = vadd.f32 %v1587_v48, %v1553_v2  ;;  %v1147_v10 = vadd.f32 %v1146_v61, %v1145_v54 }
  0xf1   : > { %v1110_v1 = vrot.slane %v1109_v46, 1 }
  0xf2   : > { %1828 = vst [vmem:[%s2319_s7 + $0xf8] sm:$0xff] %v1603_v26  ;;  %v1635_v47 = vadd.f32 %v1634_v6, %v1603_v26  ;;  %v1658_v58 = vmul.f32 %v1603_v26, %v1603_v26  ;;  %v1148_v22 = vrot.slane %v1147_v10, 1 }
  0xf3   : > { %v1111_v49 = vadd.f32 %v1110_v1, %v1109_v46 }
  0xf4   : > { %v1636_v42 = vrot.slane %v1635_v47, 4  ;;  %v1673_v36 = vadd.f32 %v1672_v23, %v1658_v58  ;;  %v1149_v57 = vadd.f32 %v1148_v22, %v1147_v10 }
  0xf6   : > { %v1637_v19 = vadd.f32 %v1636_v42, %v1635_v47  ;;  %v1674_v13 = vrot.slane %v1673_v36, 4 }
  0xf8   : > { %v1638_v4 = vrot.slane %v1637_v19, 2  ;;  %v1675_v30 = vadd.f32 %v1674_v13, %v1673_v36 }
  0xfa   : > { %v1639_v33 = vadd.f32 %v1638_v4, %v1637_v19  ;;  %v1676_v34 = vrot.slane %v1675_v30, 2 }
  0xfc   : > { %v1640_v24 = vrot.slane %v1639_v33, 1  ;;  %v1677_v7 = vadd.f32 %v1676_v34, %v1675_v30 }
  0xfe   : > { %v1641_v18 = vadd.f32 %v1640_v24, %v1639_v33  ;;  %v1678_v16 = vrot.slane %v1677_v7, 1 }
 0x100   : > { %v1642_v41 = vadd.f32 %v1641_v18, %v1111_v49  ;;  %v1679_v5 = vadd.f32 %v1678_v16, %v1677_v7 }
 0x102   : > { %1681 = vst [vmem:[%s2480_s26] sm:$0x1] %v1642_v41  ;;  %v1680_v31 = vadd.f32 %v1679_v5, %v1149_v57 }
 0x104   : > { %1683 = vst [vmem:[%s2591_s11] sm:$0x1] %v1680_v31 }
 0x105 PF: > { %s17_s21 = sadd.s32 1, %s1893_s21  }
 0x106   : > { %p14_p4 = scmp.ge.s32.totalorder %s17_s21, 4  }
 0x108   :  { %16 = sbr.rel (!%p14_p4) target bundleno = 1 (0x1), region = 96 }

// kernel: irblock_forward.9
= control target key start
LH: loop header
LB: loop body
LE: loop exit
PB: predicated region body
PF: predicated region fallthrough
CT: control target
= control target key end

     0   :  { %s1245_s27 = smov 0   ;;  %s1247_s28 = smov 0   ;;  %s1643_s0 = inlined_call_operand.vmem [shape: f32[2,256,128], index: 0, kind: input, shape index: {}]   ;;  %s1644_s1 = inlined_call_operand.vmem [shape: f32[1,128], index: 1, kind: input, shape index: {}]   ;;  %s1645_s2 = inlined_call_operand.vmem [shape: f32[1,128], index: 2, kind: input, shape index: {}]   ;;  %s1646_s3 = inlined_call_operand.vmem [shape: f32[2,128], index: 3, kind: input, shape index: {}]   ;;  %s1647_s4 = inlined_call_operand.vmem [shape: f32[128,128], index: 4, kind: input, shape index: {}]   ;;  %s1648_s5 = inlined_call_operand.vmem [shape: f32[1,128], index: 5, kind: input, shape index: {}]   ;;  %s1649_s6 = inlined_call_operand.vmem [shape: f32[1,128], index: 6, kind: input, shape index: {}]   ;;  %s1650_s7 = inlined_call_operand.vmem [shape: f32[2,256,128], index: 7, kind: input, shape index: {}]   ;;  %s1651_s8 = inlined_call_operand.vmem [shape: f32[2,256,128], index: 8, kind: output, shape index: {}]  }
   0x1   :  { %s1249_s29 = smov 0  }
   0x2 LB: > { %s30_s30 = sadd.s32 1, %s1194_s28  ;;  %p1087_p0 = scmp.ge.s32.totalorder %s1198_s29, 1  ;;  %s1198_s29 = sphi %s1249_s29, %s18_s29   ;;  %s1194_s28 = sphi %s1247_s28, %s1653_s28   ;;  %s1190_s27 = sphi %s1245_s27, %s1652_s27  }
   0x3   : > { %p32_p1 = scmp.ge.s32.totalorder %s30_s30, 2  ;;  %p300_p2 = scmp.lt.s32.totalorder %s1198_s29, 3 }
   0x5   : > { %s1655_s30 = smov (%p32_p1, %s30_s30), 0  ;;  %p301_p3 = pnand %p1087_p0, %p300_p2 }
   0x6   : > { %p352_p4 = scmp.lt.s32.totalorder (!%p301_p3), %s1190_s27, 1  ;;  %s645_s12 = scalar_lea.vmem (!%p301_p3), %s1646_s3, %s1190_s27 }
   0x7   : > { %304 = sbr.rel (%p301_p3) target bundleno = 240 (0xf0), region = 52 }
   0xc   : > { %v695_v0 = vld [vmem:[%s1647_s4 + $0x78] sm:$0xff]  ;;  %v694_v1 = vld [vmem:[%s1647_s4 + $0x70] sm:$0xff]  ;;  %v693_v2 = vld [vmem:[%s1647_s4 + $0x68] sm:$0xff]  ;;  %s353_s15 = scalar_select %p352_p4, %s1190_s27, 1 }
   0xd   : > { %1100 = vmatpush.msra.mxu2 %v695_v0  ;;  %1101 = vmatpush.msra.mxu3 %v695_v0  ;;  %v692_v3 = vld [vmem:[%s1647_s4 + $0x60] sm:$0xff]  ;;  %v691_v4 = vld [vmem:[%s1647_s4 + $0x58] sm:$0xff]  ;;  %v690_v8 = vld [vmem:[%s1647_s4 + $0x50] sm:$0xff] }
   0xe   : > { %696 = vmatpush.msra.mxu0 %v695_v0  ;;  %1099 = vmatpush.msra.mxu1 %v695_v0  ;;  %s1279_s18 = sshll.u32 %s353_s15, 8  ;;  %v1293_v5 = vld [vmem:[%s1644_s1] ss:$0 sm:$0xff]  ;;  %v689_v21 = vld [vmem:[%s1647_s4 + $0x48] sm:$0xff]  ;;  %v687_v38 = vld [vmem:[%s1647_s4 + $0x38] sm:$0xff] }
   0xf   : > { %1103 = vmatpush.msra.mxu2 %v694_v1  ;;  %1104 = vmatpush.msra.mxu3 %v694_v1  ;;  %s1288_s23 = scalar_lea.vmem %s1643_s0, %s1279_s18  ;;  %v1299_v7 = vld [vmem:[%s1645_s2] ss:$0 sm:$0xff]  ;;  %v686_v47 = vld [vmem:[%s1647_s4 + $0x30] sm:$0xff]  ;;  %v685_v56 = vld [vmem:[%s1647_s4 + $0x28] sm:$0xff]  ;;  %s1493_s25 = scalar_lea.vmem %s1650_s7, %s1279_s18 }
  0x10   : > { %697 = vmatpush.msra.mxu0 %v694_v1  ;;  %1102 = vmatpush.msra.mxu1 %v694_v1  ;;  %v397_v6 = vld [vmem:[%s1288_s23 + $0x80] sm:$0xff]  ;;  %v398_v14 = vld [vmem:[%s1288_s23 + $0x88] sm:$0xff]  ;;  %s1510_s13 = scalar_lea.vmem %s1651_s8, %s1279_s18 }
  0x11   : > { %1106 = vmatpush.msra.mxu2 %v693_v2  ;;  %1107 = vmatpush.msra.mxu3 %v693_v2  ;;  %v433_v9 = vmul.f32 %v1293_v5, %v397_v6  ;;  %v405_v10 = vld [vmem:[%s1288_s23 + $0xc0] sm:$0xff]  ;;  %v406_v18 = vld [vmem:[%s1288_s23 + $0xc8] sm:$0xff]  ;;  %v434_v23 = vmul.f32 %v1293_v5, %v398_v14  ;;  %v683_v14 = vld [vmem:[%s1647_s4 + $0x18] sm:$0xff] }
  0x12   : > { %698 = vmatpush.msra.mxu0 %v693_v2  ;;  %1105 = vmatpush.msra.mxu1 %v693_v2  ;;  %v441_v11 = vmul.f32 %v1293_v5, %v405_v10  ;;  %v381_v12 = vld [vmem:[%s1288_s23] sm:$0xff]  ;;  %v382_v19 = vld [vmem:[%s1288_s23 + $0x8] sm:$0xff]  ;;  %v442_v24 = vmul.f32 %v1293_v5, %v406_v18  ;;  %v383_v18 = vld [vmem:[%s1288_s23 + $0x10] sm:$0xff] }
  0x13   : > { %1109 = vmatpush.msra.mxu2 %v692_v3  ;;  %1110 = vmatpush.msra.mxu3 %v692_v3  ;;  %v389_v13 = vld [vmem:[%s1288_s23 + $0x40] sm:$0xff]  ;;  %v469_v15 = vadd.f32 %v1299_v7, %v433_v9  ;;  %v417_v16 = vmul.f32 %v1293_v5, %v381_v12  ;;  %v390_v20 = vld [vmem:[%s1288_s23 + $0x48] sm:$0xff]  ;;  %v418_v28 = vmul.f32 %v1293_v5, %v382_v19  ;;  %v399_v9 = vld [vmem:[%s1288_s23 + $0x90] sm:$0xff] }
  0x14   : > { %699 = vmatpush.msra.mxu0 %v692_v3  ;;  %1108 = vmatpush.msra.mxu1 %v692_v3  ;;  %v425_v17 = vmul.f32 %v1293_v5, %v389_v13  ;;  %v477_v22 = vadd.f32 %v1299_v7, %v441_v11  ;;  %v688_v29 = vld [vmem:[%s1647_s4 + $0x40] sm:$0xff]  ;;  %v470_v31 = vadd.f32 %v1299_v7, %v434_v23  ;;  %v407_v13 = vld [vmem:[%s1288_s23 + $0xd0] sm:$0xff] }
  0x15   : > { %1112 = vmatpush.msra.mxu2 %v691_v4  ;;  %1113 = vmatpush.msra.mxu3 %v691_v4  ;;  %v501_v25 = vadd.f32 3.0, %v469_v15  ;;  %v453_v26 = vadd.f32 %v1299_v7, %v417_v16  ;;  %v478_v32 = vadd.f32 %v1299_v7, %v442_v24  ;;  %v426_v33 = vmul.f32 %v1293_v5, %v390_v20  ;;  %v1351_v62 = vld [vmem:[%s645_s12] ss:$0 sm:$0xff]  ;;  %v682_v23 = vld [vmem:[%s1647_s4 + $0x10] sm:$0xff] }
  0x16   : > { %700 = vmatpush.msra.mxu0 %v691_v4  ;;  %1111 = vmatpush.msra.mxu1 %v691_v4  ;;  %v461_v27 = vadd.f32 %v1299_v7, %v425_v17  ;;  %v509_v30 = vadd.f32 3.0, %v477_v22  ;;  %v454_v37 = vadd.f32 %v1299_v7, %v418_v28  ;;  %v502_v40 = vadd.f32 3.0, %v470_v31  ;;  %v684_v2 = vld [vmem:[%s1647_s4 + $0x20] sm:$0xff]  ;;  %v408_v28 = vld [vmem:[%s1288_s23 + $0xd8] sm:$0xff] }
  0x17   : > { %1115 = vmatpush.msra.mxu2 %v690_v8  ;;  %1116 = vmatpush.msra.mxu3 %v690_v8  ;;  %v533_v34 = vmax.f32 %v501_v25, 0.0  ;;  %v485_v35 = vadd.f32 3.0, %v453_v26  ;;  %v510_v41 = vadd.f32 3.0, %v478_v32  ;;  %v462_v42 = vadd.f32 %v1299_v7, %v426_v33  ;;  %v384_v33 = vld [vmem:[%s1288_s23 + $0x18] sm:$0xff] }
  0x18   : > { %701 = vmatpush.msra.mxu0 %v690_v8  ;;  %1114 = vmatpush.msra.mxu1 %v690_v8  ;;  %v493_v36 = vadd.f32 3.0, %v461_v27  ;;  %v541_v39 = vmax.f32 %v509_v30, 0.0  ;;  %v486_v46 = vadd.f32 3.0, %v454_v37  ;;  %v534_v49 = vmax.f32 %v502_v40, 0.0 }
  0x19   : > { %1118 = vmatpush.msra.mxu2 %v689_v21  ;;  %1119 = vmatpush.msra.mxu3 %v689_v21  ;;  %v565_v43 = vmin.f32 %v533_v34, 6.0  ;;  %v517_v44 = vmax.f32 %v485_v35, 0.0  ;;  %v542_v50 = vmax.f32 %v510_v41, 0.0  ;;  %v494_v51 = vadd.f32 3.0, %v462_v42  ;;  %v392_v34 = vld [vmem:[%s1288_s23 + $0x58] sm:$0xff]  ;;  %v681_v35 = vld [vmem:[%s1647_s4 + $0x8] sm:$0xff] }
  0x1a   : > { %702 = vmatpush.msra.mxu0 %v689_v21  ;;  %1117 = vmatpush.msra.mxu1 %v689_v21  ;;  %v525_v45 = vmax.f32 %v493_v36, 0.0  ;;  %v573_v48 = vmin.f32 %v541_v39, 6.0  ;;  %v518_v55 = vmax.f32 %v486_v46, 0.0  ;;  %v566_v58 = vmin.f32 %v534_v49, 6.0 }
  0x1b   : > { %1121 = vmatpush.msra.mxu2 %v688_v29  ;;  %1122 = vmatpush.msra.mxu3 %v688_v29  ;;  %v597_v52 = vmul.f32 %v565_v43, %v469_v15  ;;  %v549_v53 = vmin.f32 %v517_v44, 6.0  ;;  %v574_v59 = vmin.f32 %v542_v50, 6.0  ;;  %v526_v60 = vmax.f32 %v494_v51, 0.0  ;;  %v680_v44 = vld [vmem:[%s1647_s4] sm:$0xff] }
  0x1c   : > { %703 = vmatpush.msra.mxu0 %v688_v29  ;;  %1120 = vmatpush.msra.mxu1 %v688_v29  ;;  %v557_v54 = vmin.f32 %v525_v45, 6.0  ;;  %v605_v57 = vmul.f32 %v573_v48, %v477_v22  ;;  %v550_v1 = vmin.f32 %v518_v55, 6.0  ;;  %v598_v4 = vmul.f32 %v566_v58, %v470_v31  ;;  %v391_v22 = vld [vmem:[%s1288_s23 + $0x50] sm:$0xff] }
  0x1d   : > { %1124 = vmatpush.msra.mxu2 %v687_v38  ;;  %1125 = vmatpush.msra.mxu3 %v687_v38  ;;  %v629_v61 = vmul.f32 0.16666667, %v597_v52  ;;  %v581_v63 = vmul.f32 %v549_v53, %v453_v26  ;;  %v606_v6 = vmul.f32 %v574_v59, %v478_v32  ;;  %v558_v8 = vmin.f32 %v526_v60, 6.0 }
  0x1e   : > { %704 = vmatpush.msra.mxu0 %v687_v38  ;;  %1123 = vmatpush.msra.mxu1 %v687_v38  ;;  %v589_v0 = vmul.f32 %v557_v54, %v461_v27  ;;  %v637_v3 = vmul.f32 0.16666667, %v605_v57  ;;  %v582_v12 = vmul.f32 %v550_v1, %v454_v37  ;;  %v630_v15 = vmul.f32 0.16666667, %v598_v4  ;;  %v400_v27 = vld [vmem:[%s1288_s23 + $0x98] sm:$0xff] }
  0x1f   : > { %1127 = vmatpush.msra.mxu2 %v686_v47  ;;  %1128 = vmatpush.msra.mxu3 %v686_v47  ;;  %v613_v10 = vmul.f32 0.16666667, %v581_v63  ;;  %v638_v16 = vmul.f32 0.16666667, %v606_v6  ;;  %v590_v17 = vmul.f32 %v558_v8, %v462_v42  ;;  %v664_v19 = vmul.f32 %v1351_v62, %v629_v61 }
  0x20   : > { %705 = vmatpush.msra.mxu0 %v686_v47  ;;  %1126 = vmatpush.msra.mxu1 %v686_v47  ;;  %v621_v11 = vmul.f32 0.16666667, %v589_v0  ;;  %v672_v20 = vmul.f32 %v1351_v62, %v637_v3  ;;  %v435_v21 = vmul.f32 %v1293_v5, %v399_v9  ;;  %v443_v26 = vmul.f32 %v1293_v5, %v407_v13 }
  0x21   : > { %1130 = vmatpush.msra.mxu2 %v685_v56  ;;  %1131 = vmatpush.msra.mxu3 %v685_v56  ;;  %v648_v24 = vmul.f32 %v1351_v62, %v613_v10  ;;  %v1375_v29 = vmul.f32 %v1351_v62, %v630_v15  ;;  %v1377_v30 = vmul.f32 0.16666667, %v582_v12  ;;  %v419_v32 = vmul.f32 %v1293_v5, %v383_v18 }
  0x22   : > { %706 = vmatpush.msra.mxu0 %v685_v56  ;;  %1129 = vmatpush.msra.mxu1 %v685_v56  ;;  %v656_v25 = vmul.f32 %v1351_v62, %v621_v11  ;;  %v471_v31 = vadd.f32 %v1299_v7, %v435_v21  ;;  %v1387_v36 = vmul.f32 %v1351_v62, %v638_v16  ;;  %v1389_v37 = vmul.f32 0.16666667, %v590_v17 }
  0x23   : > { %1133 = vmatpush.msra.mxu2 %v684_v2  ;;  %1134 = vmatpush.msra.mxu3 %v684_v2  ;;  %v479_v38 = vadd.f32 %v1299_v7, %v443_v26  ;;  %v427_v39 = vmul.f32 %v1293_v5, %v391_v22  ;;  %v455_v41 = vadd.f32 %v1299_v7, %v419_v32  ;;  %v385_v32 = vld [vmem:[%s1288_s23 + $0x20] sm:$0xff] }
  0x24   : > { %707 = vmatpush.msra.mxu0 %v684_v2  ;;  %1132 = vmatpush.msra.mxu1 %v684_v2  ;;  %v503_v40 = vadd.f32 3.0, %v471_v31  ;;  %v436_v42 = vmul.f32 %v1293_v5, %v400_v27  ;;  %v444_v43 = vmul.f32 %v1293_v5, %v408_v28  ;;  %v420_v47 = vmul.f32 %v1293_v5, %v384_v33 }
  0x25   : > { %1136 = vmatpush.msra.mxu2 %v683_v14  ;;  %1137 = vmatpush.msra.mxu3 %v683_v14  ;;  %v511_v45 = vadd.f32 3.0, %v479_v38  ;;  %v463_v46 = vadd.f32 %v1299_v7, %v427_v39  ;;  %v428_v48 = vmul.f32 %v1293_v5, %v392_v34  ;;  %v487_v50 = vadd.f32 3.0, %v455_v41  ;;  %v402_v39 = vld [vmem:[%s1288_s23 + $0xa8] sm:$0xff] }
  0x26   : > { %708 = vmatpush.msra.mxu0 %v683_v14  ;;  %1135 = vmatpush.msra.mxu1 %v683_v14  ;;  %v535_v49 = vmax.f32 %v503_v40, 0.0  ;;  %v472_v51 = vadd.f32 %v1299_v7, %v436_v42  ;;  %v480_v52 = vadd.f32 %v1299_v7, %v444_v43  ;;  %v456_v55 = vadd.f32 %v1299_v7, %v420_v47  ;;  %v410_v40 = vld [vmem:[%s1288_s23 + $0xe8] sm:$0xff] }
  0x27   : > { %1139 = vmatpush.msra.mxu2 %v682_v23  ;;  %1140 = vmatpush.msra.mxu3 %v682_v23  ;;  %v543_v53 = vmax.f32 %v511_v45, 0.0  ;;  %v495_v54 = vadd.f32 3.0, %v463_v46  ;;  %v464_v56 = vadd.f32 %v1299_v7, %v428_v48  ;;  %v519_v58 = vmax.f32 %v487_v50, 0.0  ;;  %v386_v45 = vld [vmem:[%s1288_s23 + $0x28] sm:$0xff] }
  0x28   : > { %709 = vmatpush.msra.mxu0 %v682_v23  ;;  %1138 = vmatpush.msra.mxu1 %v682_v23  ;;  %v567_v57 = vmin.f32 %v535_v49, 6.0  ;;  %v504_v59 = vadd.f32 3.0, %v472_v51  ;;  %v512_v60 = vadd.f32 3.0, %v480_v52  ;;  %v488_v0 = vadd.f32 3.0, %v456_v55 }
  0x29   : > { %1142 = vmatpush.msra.mxu2 %v681_v35  ;;  %1143 = vmatpush.msra.mxu3 %v681_v35  ;;  %v575_v61 = vmin.f32 %v543_v53, 6.0  ;;  %v527_v63 = vmax.f32 %v495_v54, 0.0  ;;  %v496_v1 = vadd.f32 3.0, %v464_v56  ;;  %v551_v3 = vmin.f32 %v519_v58, 6.0 }
  0x2a   : > { %710 = vmatpush.msra.mxu0 %v681_v35  ;;  %1141 = vmatpush.msra.mxu1 %v681_v35  ;;  %v599_v2 = vmul.f32 %v567_v57, %v471_v31  ;;  %v536_v4 = vmax.f32 %v504_v59, 0.0  ;;  %v544_v6 = vmax.f32 %v512_v60, 0.0  ;;  %v520_v10 = vmax.f32 %v488_v0, 0.0 }
  0x2b   : > { %1145 = vmatpush.msra.mxu2 %v680_v44  ;;  %1146 = vmatpush.msra.mxu3 %v680_v44  ;;  %v607_v8 = vmul.f32 %v575_v61, %v479_v38  ;;  %v559_v9 = vmin.f32 %v527_v63, 6.0  ;;  %v528_v11 = vmax.f32 %v496_v1, 0.0  ;;  %v583_v13 = vmul.f32 %v551_v3, %v455_v41  ;;  %v393_v38 = vld [vmem:[%s1288_s23 + $0x60] sm:$0xff] }
  0x2c   : > { %760 = vmatmul.f32.vlgmr.msra.gmra.mxu2 %v664_v19  ;;  %784 = vmatmul.f32.vlgmr.msra.gmra.mxu3 %v672_v20  ;;  %v631_v12 = vmul.f32 0.16666667, %v599_v2  ;;  %v568_v14 = vmin.f32 %v536_v4, 6.0  ;;  %v576_v15 = vmin.f32 %v544_v6, 6.0  ;;  %v552_v18 = vmin.f32 %v520_v10, 6.0  ;;  %v401_v20 = vld [vmem:[%s1288_s23 + $0xa0] sm:$0xff] }
  0x2d   : > { %711 = vmatpush.msra.mxu0 %v680_v44  ;;  %1144 = vmatpush.msra.mxu1 %v680_v44  ;;  %v639_v16 = vmul.f32 0.16666667, %v607_v8  ;;  %v591_v17 = vmul.f32 %v559_v9, %v463_v46  ;;  %v560_v19 = vmin.f32 %v528_v11, 6.0  ;;  %v649_v21 = vmul.f32 %v1351_v62, %v1377_v30  ;;  %v394_v46 = vld [vmem:[%s1288_s23 + $0x68] sm:$0xff] }
  0x2e   : > { %712 = vmatmul.f32.vlgmr.msra.gmra.mxu0 %v648_v24  ;;  %736 = vmatmul.f32.vlgmr.msra.gmra.mxu1 %v656_v25  ;;  %v615_v22 = vmul.f32 0.16666667, %v583_v13  ;;  %v600_v23 = vmul.f32 %v568_v14, %v472_v51  ;;  %v608_v24 = vmul.f32 %v576_v15, %v480_v52  ;;  %v409_v25 = vld [vmem:[%s1288_s23 + $0xe0] sm:$0xff]  ;;  %v657_v26 = vmul.f32 %v1351_v62, %v1389_v37 }
  0x2f   : > { %v623_v27 = vmul.f32 0.16666667, %v591_v17  ;;  %v584_v28 = vmul.f32 %v552_v18, %v456_v55  ;;  %v592_v31 = vmul.f32 %v560_v19, %v464_v56  ;;  %v666_v33 = vmul.f32 %v1351_v62, %v631_v12 }
  0x30   : > { %v437_v30 = vmul.f32 %v1293_v5, %v401_v20  ;;  %v674_v34 = vmul.f32 %v1351_v62, %v639_v16  ;;  %v650_v35 = vmul.f32 %v1351_v62, %v615_v22  ;;  %v445_v37 = vmul.f32 %v1293_v5, %v409_v25 }
  0x31   : > { %v632_v41 = vmul.f32 0.16666667, %v600_v23  ;;  %v640_v42 = vmul.f32 0.16666667, %v608_v24  ;;  %v421_v44 = vmul.f32 %v1293_v5, %v385_v32  ;;  %v624_v47 = vmul.f32 0.16666667, %v592_v31 }
  0x32   : > { %v473_v43 = vadd.f32 %v1299_v7, %v437_v30  ;;  %v481_v48 = vadd.f32 %v1299_v7, %v445_v37  ;;  %v429_v51 = vmul.f32 %v1293_v5, %v393_v38  ;;  %v438_v52 = vmul.f32 %v1293_v5, %v402_v39  ;;  %v411_v30 = vld [vmem:[%s1288_s23 + $0xf0] sm:$0xff] }
  0x33   : > { %v457_v50 = vadd.f32 %v1299_v7, %v421_v44  ;;  %v446_v54 = vmul.f32 %v1293_v5, %v410_v40  ;;  %v422_v55 = vmul.f32 %v1293_v5, %v386_v45  ;;  %v430_v56 = vmul.f32 %v1293_v5, %v394_v46  ;;  %v387_v39 = vld [vmem:[%s1288_s23 + $0x30] sm:$0xff]  ;;  %v404_v46 = vld [vmem:[%s1288_s23 + $0xb8] sm:$0xff] }
  0x34   : > { %763 = vmatmul.f32.gmra.mxu2 %v1375_v29  ;;  %787 = vmatmul.f32.gmra.mxu3 %v1387_v36  ;;  %v658_v29 = vmul.f32 %v1351_v62, %v623_v27  ;;  %v616_v36 = vmul.f32 0.16666667, %v584_v28  ;;  %v505_v49 = vadd.f32 3.0, %v473_v43  ;;  %v513_v53 = vadd.f32 3.0, %v481_v48  ;;  %v403_v27 = vld [vmem:[%s1288_s23 + $0xb0] sm:$0xff] }
  0x35   : > { %v489_v58 = vadd.f32 3.0, %v457_v50  ;;  %v465_v59 = vadd.f32 %v1299_v7, %v429_v51  ;;  %v474_v60 = vadd.f32 %v1299_v7, %v438_v52  ;;  %v482_v63 = vadd.f32 %v1299_v7, %v446_v54  ;;  %v395_v45 = vld [vmem:[%s1288_s23 + $0x70] sm:$0xff]  ;;  %v396_v51 = vld [vmem:[%s1288_s23 + $0x78] sm:$0xff] }
  0x36   : > { %715 = vmatmul.f32.gmra.mxu0 %v649_v21  ;;  %739 = vmatmul.f32.gmra.mxu1 %v657_v26  ;;  %v537_v57 = vmax.f32 %v505_v49, 0.0  ;;  %v545_v61 = vmax.f32 %v513_v53, 0.0  ;;  %v458_v0 = vadd.f32 %v1299_v7, %v422_v55  ;;  %v466_v1 = vadd.f32 %v1299_v7, %v430_v56  ;;  %v412_v49 = vld [vmem:[%s1288_s23 + $0xf8] sm:$0xff] }
  0x37   : > { %v521_v3 = vmax.f32 %v489_v58, 0.0  ;;  %v497_v4 = vadd.f32 3.0, %v465_v59  ;;  %v506_v6 = vadd.f32 3.0, %v474_v60  ;;  %v514_v9 = vadd.f32 3.0, %v482_v63 }
  0x38   : > { %v569_v2 = vmin.f32 %v537_v57, 6.0  ;;  %v577_v8 = vmin.f32 %v545_v61, 6.0  ;;  %v490_v10 = vadd.f32 3.0, %v458_v0  ;;  %v498_v11 = vadd.f32 3.0, %v466_v1 }
  0x39   : > { %v553_v13 = vmin.f32 %v521_v3, 6.0  ;;  %v529_v14 = vmax.f32 %v497_v4, 0.0  ;;  %v538_v15 = vmax.f32 %v506_v6, 0.0  ;;  %v546_v17 = vmax.f32 %v514_v9, 0.0 }
  0x3a   : > { %v601_v12 = vmul.f32 %v569_v2, %v473_v43  ;;  %v609_v16 = vmul.f32 %v577_v8, %v481_v48  ;;  %v522_v18 = vmax.f32 %v490_v10, 0.0  ;;  %v530_v19 = vmax.f32 %v498_v11, 0.0 }
  0x3b   : > { %v585_v20 = vmul.f32 %v553_v13, %v457_v50  ;;  %v561_v21 = vmin.f32 %v529_v14, 6.0  ;;  %v570_v22 = vmin.f32 %v538_v15, 6.0  ;;  %v667_v23 = vmul.f32 %v1351_v62, %v632_v41  ;;  %v388_v50 = vld [vmem:[%s1288_s23 + $0x38] sm:$0xff] }
  0x3c   : > { %766 = vmatmul.f32.gmra.mxu2 %v666_v33  ;;  %790 = vmatmul.f32.gmra.mxu3 %v674_v34  ;;  %v675_v24 = vmul.f32 %v1351_v62, %v640_v42  ;;  %v633_v25 = vmul.f32 0.16666667, %v601_v12  ;;  %v641_v26 = vmul.f32 0.16666667, %v609_v16  ;;  %v651_v28 = vmul.f32 %v1351_v62, %v616_v36 }
  0x3d   : > { %v593_v31 = vmul.f32 %v561_v21, %v465_v59  ;;  %v578_v32 = vmin.f32 %v546_v17, 6.0  ;;  %v554_v33 = vmin.f32 %v522_v18, 6.0  ;;  %v659_v34 = vmul.f32 %v1351_v62, %v624_v47 }
  0x3e   : > { %718 = vmatmul.f32.gmra.mxu0 %v650_v35  ;;  %742 = vmatmul.f32.gmra.mxu1 %v658_v29  ;;  %v617_v35 = vmul.f32 0.16666667, %v585_v20  ;;  %v602_v37 = vmul.f32 %v570_v22, %v474_v60  ;;  %v562_v38 = vmin.f32 %v530_v19, 6.0  ;;  %v439_v41 = vmul.f32 %v1293_v5, %v403_v27 }
  0x3f   : > { %v625_v40 = vmul.f32 0.16666667, %v593_v31  ;;  %v668_v42 = vmul.f32 %v1351_v62, %v633_v25  ;;  %v676_v43 = vmul.f32 %v1351_v62, %v641_v26  ;;  %v447_v44 = vmul.f32 %v1293_v5, %v411_v30 }
  0x40   : > { %v610_v29 = vmul.f32 %v578_v32, %v482_v63  ;;  %v586_v36 = vmul.f32 %v554_v33, %v458_v0  ;;  %v475_v47 = vadd.f32 %v1299_v7, %v439_v41  ;;  %v423_v48 = vmul.f32 %v1293_v5, %v387_v39 }
  0x41   : > { %v652_v52 = vmul.f32 %v1351_v62, %v617_v35  ;;  %v660_v53 = vmul.f32 %v1351_v62, %v625_v40  ;;  %v634_v54 = vmul.f32 0.16666667, %v602_v37  ;;  %v594_v55 = vmul.f32 %v562_v38, %v466_v1 }
  0x42   : > { %v507_v56 = vadd.f32 3.0, %v475_v47  ;;  %v483_v57 = vadd.f32 %v1299_v7, %v447_v44  ;;  %v459_v58 = vadd.f32 %v1299_v7, %v423_v48  ;;  %v431_v59 = vmul.f32 %v1293_v5, %v395_v45 }
  0x43   : > { %v440_v60 = vmul.f32 %v1293_v5, %v404_v46  ;;  %v448_v61 = vmul.f32 %v1293_v5, %v412_v49  ;;  %v424_v63 = vmul.f32 %v1293_v5, %v388_v50  ;;  %v432_v0 = vmul.f32 %v1293_v5, %v396_v51 }
  0x44   : > { %769 = vmatmul.f32.gmra.mxu2 %v667_v23  ;;  %793 = vmatmul.f32.gmra.mxu3 %v675_v24  ;;  %v539_v2 = vmax.f32 %v507_v56, 0.0  ;;  %v515_v3 = vadd.f32 3.0, %v483_v57  ;;  %v491_v4 = vadd.f32 3.0, %v459_v58  ;;  %v467_v1 = vadd.f32 %v1299_v7, %v431_v59 }
  0x45   : > { %v476_v6 = vadd.f32 %v1299_v7, %v440_v60  ;;  %v484_v8 = vadd.f32 %v1299_v7, %v448_v61  ;;  %v460_v9 = vadd.f32 %v1299_v7, %v424_v63  ;;  %v468_v10 = vadd.f32 %v1299_v7, %v432_v0  ;;  %v1487_v60 = vld [vmem:[%s1648_s5] ss:$0 sm:$0xff] }
  0x46   : > { %721 = vmatmul.f32.gmra.mxu0 %v651_v28  ;;  %745 = vmatmul.f32.gmra.mxu1 %v659_v34  ;;  %v642_v11 = vmul.f32 0.16666667, %v610_v29  ;;  %v547_v12 = vmax.f32 %v515_v3, 0.0  ;;  %v523_v13 = vmax.f32 %v491_v4, 0.0  ;;  %v499_v14 = vadd.f32 3.0, %v467_v1  ;;  %v881_v3 = vld [vmem:[%s1493_s25] sm:$0xff] }
  0x47   : > { %v571_v5 = vmin.f32 %v539_v2, 6.0  ;;  %v508_v15 = vadd.f32 3.0, %v476_v6  ;;  %v516_v16 = vadd.f32 3.0, %v484_v8  ;;  %v618_v17 = vmul.f32 0.16666667, %v586_v36  ;;  %v889_v4 = vld [vmem:[%s1493_s25 + $0x40] sm:$0xff] }
  0x48   : > { %v626_v18 = vmul.f32 0.16666667, %v594_v55  ;;  %v579_v19 = vmin.f32 %v547_v12, 6.0  ;;  %v531_v20 = vmax.f32 %v499_v14, 0.0  ;;  %v555_v21 = vmin.f32 %v523_v13, 6.0  ;;  %v897_v14 = vld [vmem:[%s1493_s25 + $0x80] sm:$0xff] }
  0x49   : > { %v492_v22 = vadd.f32 3.0, %v460_v9  ;;  %v500_v23 = vadd.f32 3.0, %v468_v10  ;;  %v669_v7 = vmul.f32 %v1351_v62, %v634_v54  ;;  %v677_v24 = vmul.f32 %v1351_v62, %v642_v11 }
  0x4a   : > { %v563_v25 = vmin.f32 %v531_v20, 6.0  ;;  %v603_v26 = vmul.f32 %v571_v5, %v475_v47  ;;  %v611_v27 = vmul.f32 %v579_v19, %v483_v57  ;;  %v540_v28 = vmax.f32 %v508_v15, 0.0  ;;  %v905_v5 = vld [vmem:[%s1493_s25 + $0xc0] sm:$0xff] }
  0x4b   : > { %v548_v31 = vmax.f32 %v516_v16, 0.0  ;;  %v653_v32 = vmul.f32 %v1351_v62, %v618_v17  ;;  %v661_v33 = vmul.f32 %v1351_v62, %v626_v18  ;;  %v587_v30 = vmul.f32 %v555_v21, %v459_v58 }
  0x4c   : > { %772 = vmatmul.f32.gmra.mxu2 %v668_v42  ;;  %796 = vmatmul.f32.gmra.mxu3 %v676_v43  ;;  %v595_v34 = vmul.f32 %v563_v25, %v467_v1  ;;  %v524_v35 = vmax.f32 %v492_v22, 0.0  ;;  %v532_v37 = vmax.f32 %v500_v23, 0.0  ;;  %v635_v38 = vmul.f32 0.16666667, %v603_v26  ;;  %v882_v23 = vld [vmem:[%s1493_s25 + $0x8] sm:$0xff] }
  0x4d   : > { %v643_v39 = vmul.f32 0.16666667, %v611_v27  ;;  %v572_v40 = vmin.f32 %v540_v28, 6.0  ;;  %v580_v41 = vmin.f32 %v548_v31, 6.0  ;;  %v619_v42 = vmul.f32 0.16666667, %v587_v30 }
  0x4e   : > { %724 = vmatmul.f32.gmra.mxu0 %v652_v52  ;;  %748 = vmatmul.f32.gmra.mxu1 %v660_v53  ;;  %v627_v43 = vmul.f32 0.16666667, %v595_v34  ;;  %v556_v44 = vmin.f32 %v524_v35, 6.0  ;;  %v564_v45 = vmin.f32 %v532_v37, 6.0  ;;  %v670_v46 = vmul.f32 %v1351_v62, %v635_v38  ;;  %v898_v30 = vld [vmem:[%s1493_s25 + $0x88] sm:$0xff] }
  0x4f   : > { %v678_v29 = vmul.f32 %v1351_v62, %v643_v39  ;;  %v604_v36 = vmul.f32 %v572_v40, %v476_v6  ;;  %v612_v47 = vmul.f32 %v580_v41, %v484_v8  ;;  %v654_v48 = vmul.f32 %v1351_v62, %v619_v42  ;;  %v906_v34 = vld [vmem:[%s1493_s25 + $0xc8] sm:$0xff] }
  0x50   : > { %v662_v49 = vmul.f32 %v1351_v62, %v627_v43  ;;  %v588_v50 = vmul.f32 %v556_v44, %v460_v9  ;;  %v596_v51 = vmul.f32 %v564_v45, %v468_v10  ;;  %v883_v44 = vld [vmem:[%s1493_s25 + $0x10] sm:$0xff] }
  0x51   : > { %v636_v52 = vmul.f32 0.16666667, %v604_v36  ;;  %v644_v53 = vmul.f32 0.16666667, %v612_v47  ;;  %v891_v45 = vld [vmem:[%s1493_s25 + $0x50] sm:$0xff] }
  0x52   : > { %v620_v54 = vmul.f32 0.16666667, %v588_v50  ;;  %v628_v55 = vmul.f32 0.16666667, %v596_v51 }
  0x53   : > { %v671_v56 = vmul.f32 %v1351_v62, %v636_v52  ;;  %v679_v57 = vmul.f32 %v1351_v62, %v644_v53  ;;  %v899_v52 = vld [vmem:[%s1493_s25 + $0x90] sm:$0xff] }
  0x54   : > { %775 = vmatmul.f32.gmra.mxu2 %v669_v7  ;;  %799 = vmatmul.f32.gmra.mxu3 %v677_v24  ;;  %v655_v58 = vmul.f32 %v1351_v62, %v620_v54  ;;  %v663_v59 = vmul.f32 %v1351_v62, %v628_v55  ;;  %v1498_v62 = vld [vmem:[%s1649_s6] ss:$0 sm:$0xff]  ;;  %v890_v7 = vld [vmem:[%s1493_s25 + $0x48] sm:$0xff]  ;;  %v907_v53 = vld [vmem:[%s1493_s25 + $0xd0] sm:$0xff] }
  0x56   : > { %727 = vmatmul.f32.gmra.mxu0 %v653_v32  ;;  %751 = vmatmul.f32.gmra.mxu1 %v661_v33 }
  0x5c   : > { %778 = vmatmul.f32.gmra.mxu2 %v670_v46  ;;  %802 = vmatmul.f32.gmra.mxu3 %v678_v29 }
  0x5e   : > { %730 = vmatmul.f32.gmra.mxu0 %v654_v48  ;;  %754 = vmatmul.f32.gmra.mxu1 %v662_v49 }
  0x64   : > { %781 = vmatmul.f32.gmra.mxu2 %v671_v56  ;;  %805 = vmatmul.f32.gmra.mxu3 %v679_v57 }
  0x66   : > { %733 = vmatmul.f32.gmra.mxu0 %v655_v58  ;;  %757 = vmatmul.f32.gmra.mxu1 %v663_v59 }
  0xab   : > { %v713_v61 = vpop.f32.mrf.mxu0  ;;  %v737_v63 = vpop.f32.mrf.mxu1 }
  0xac   : > { %v813_v0 = vmul.f32 %v1487_v60, %v713_v61  ;;  %v821_v2 = vmul.f32 %v1487_v60, %v737_v63 }
  0xae   : > { %v849_v1 = vadd.f32 %v1498_v62, %v813_v0  ;;  %v857_v6 = vadd.f32 %v1498_v62, %v821_v2  ;;  %v884_v0 = vld [vmem:[%s1493_s25 + $0x18] sm:$0xff] }
  0xaf   : > { %v761_v8 = vpop.f32.mrf.mxu2  ;;  %v785_v9 = vpop.f32.mrf.mxu3  ;;  %v892_v2 = vld [vmem:[%s1493_s25 + $0x58] sm:$0xff] }
  0xb0   : > { %v913_v10 = vadd.f32 %v881_v3, %v849_v1  ;;  %v921_v11 = vadd.f32 %v889_v4, %v857_v6  ;;  %v829_v12 = vmul.f32 %v1487_v60, %v761_v8  ;;  %v837_v13 = vmul.f32 %v1487_v60, %v785_v9 }
  0xb2   : > { %945 = vst [vmem:[%s1510_s13] sm:$0xff] %v913_v10  ;;  %v865_v15 = vadd.f32 %v1498_v62, %v829_v12  ;;  %v873_v16 = vadd.f32 %v1498_v62, %v837_v13  ;;  %v900_v12 = vld [vmem:[%s1493_s25 + $0x98] sm:$0xff] }
  0xb3   : > { %953 = vst [vmem:[%s1510_s13 + $0x40] sm:$0xff] %v921_v11  ;;  %v716_v17 = vpop.f32.mrf.mxu0  ;;  %v740_v18 = vpop.f32.mrf.mxu1  ;;  %v908_v13 = vld [vmem:[%s1493_s25 + $0xd8] sm:$0xff] }
  0xb4   : > { %v929_v19 = vadd.f32 %v897_v14, %v865_v15  ;;  %v937_v20 = vadd.f32 %v905_v5, %v873_v16  ;;  %v814_v21 = vmul.f32 %v1487_v60, %v716_v17  ;;  %v822_v22 = vmul.f32 %v1487_v60, %v740_v18 }
  0xb6   : > { %961 = vst [vmem:[%s1510_s13 + $0x80] sm:$0xff] %v929_v19  ;;  %v850_v24 = vadd.f32 %v1498_v62, %v814_v21  ;;  %v858_v25 = vadd.f32 %v1498_v62, %v822_v22  ;;  %v885_v21 = vld [vmem:[%s1493_s25 + $0x20] sm:$0xff] }
  0xb7   : > { %969 = vst [vmem:[%s1510_s13 + $0xc0] sm:$0xff] %v937_v20  ;;  %v764_v26 = vpop.f32.mrf.mxu2  ;;  %v788_v27 = vpop.f32.mrf.mxu3  ;;  %v893_v22 = vld [vmem:[%s1493_s25 + $0x60] sm:$0xff] }
  0xb8   : > { %v914_v28 = vadd.f32 %v882_v23, %v850_v24  ;;  %v922_v31 = vadd.f32 %v890_v7, %v858_v25  ;;  %v830_v32 = vmul.f32 %v1487_v60, %v764_v26  ;;  %v838_v33 = vmul.f32 %v1487_v60, %v788_v27 }
  0xba   : > { %946 = vst [vmem:[%s1510_s13 + $0x8] sm:$0xff] %v914_v28  ;;  %v866_v35 = vadd.f32 %v1498_v62, %v830_v32  ;;  %v874_v37 = vadd.f32 %v1498_v62, %v838_v33  ;;  %v901_v32 = vld [vmem:[%s1493_s25 + $0xa0] sm:$0xff] }
  0xbb   : > { %954 = vst [vmem:[%s1510_s13 + $0x48] sm:$0xff] %v922_v31  ;;  %v719_v38 = vpop.f32.mrf.mxu0  ;;  %v743_v39 = vpop.f32.mrf.mxu1  ;;  %v909_v33 = vld [vmem:[%s1493_s25 + $0xe0] sm:$0xff] }
  0xbc   : > { %v930_v40 = vadd.f32 %v898_v30, %v866_v35  ;;  %v938_v41 = vadd.f32 %v906_v34, %v874_v37  ;;  %v815_v42 = vmul.f32 %v1487_v60, %v719_v38  ;;  %v823_v43 = vmul.f32 %v1487_v60, %v743_v39 }
  0xbe   : > { %962 = vst [vmem:[%s1510_s13 + $0x88] sm:$0xff] %v930_v40  ;;  %v851_v46 = vadd.f32 %v1498_v62, %v815_v42  ;;  %v859_v29 = vadd.f32 %v1498_v62, %v823_v43  ;;  %v886_v42 = vld [vmem:[%s1493_s25 + $0x28] sm:$0xff] }
  0xbf   : > { %970 = vst [vmem:[%s1510_s13 + $0xc8] sm:$0xff] %v938_v41  ;;  %v767_v36 = vpop.f32.mrf.mxu2  ;;  %v791_v47 = vpop.f32.mrf.mxu3  ;;  %v894_v43 = vld [vmem:[%s1493_s25 + $0x68] sm:$0xff] }
  0xc0   : > { %v915_v48 = vadd.f32 %v883_v44, %v851_v46  ;;  %v923_v49 = vadd.f32 %v891_v45, %v859_v29  ;;  %v831_v50 = vmul.f32 %v1487_v60, %v767_v36  ;;  %v839_v51 = vmul.f32 %v1487_v60, %v791_v47 }
  0xc2   : > { %947 = vst [vmem:[%s1510_s13 + $0x10] sm:$0xff] %v915_v48  ;;  %v867_v54 = vadd.f32 %v1498_v62, %v831_v50  ;;  %v875_v55 = vadd.f32 %v1498_v62, %v839_v51  ;;  %v902_v50 = vld [vmem:[%s1493_s25 + $0xa8] sm:$0xff] }
  0xc3   : > { %955 = vst [vmem:[%s1510_s13 + $0x50] sm:$0xff] %v923_v49  ;;  %v722_v56 = vpop.f32.mrf.mxu0  ;;  %v746_v57 = vpop.f32.mrf.mxu1  ;;  %v910_v51 = vld [vmem:[%s1493_s25 + $0xe8] sm:$0xff] }
  0xc4   : > { %v931_v58 = vadd.f32 %v899_v52, %v867_v54  ;;  %v939_v59 = vadd.f32 %v907_v53, %v875_v55  ;;  %v816_v61 = vmul.f32 %v1487_v60, %v722_v56  ;;  %v824_v63 = vmul.f32 %v1487_v60, %v746_v57 }
  0xc6   : > { %963 = vst [vmem:[%s1510_s13 + $0x90] sm:$0xff] %v931_v58  ;;  %v852_v3 = vadd.f32 %v1498_v62, %v816_v61  ;;  %v860_v4 = vadd.f32 %v1498_v62, %v824_v63  ;;  %v887_v61 = vld [vmem:[%s1493_s25 + $0x30] sm:$0xff] }
  0xc7   : > { %971 = vst [vmem:[%s1510_s13 + $0xd0] sm:$0xff] %v939_v59  ;;  %v770_v1 = vpop.f32.mrf.mxu2  ;;  %v794_v6 = vpop.f32.mrf.mxu3  ;;  %v895_v63 = vld [vmem:[%s1493_s25 + $0x70] sm:$0xff] }
  0xc8   : > { %v916_v8 = vadd.f32 %v884_v0, %v852_v3  ;;  %v924_v9 = vadd.f32 %v892_v2, %v860_v4  ;;  %v832_v10 = vmul.f32 %v1487_v60, %v770_v1  ;;  %v840_v11 = vmul.f32 %v1487_v60, %v794_v6 }
  0xca   : > { %948 = vst [vmem:[%s1510_s13 + $0x18] sm:$0xff] %v916_v8  ;;  %v868_v14 = vadd.f32 %v1498_v62, %v832_v10  ;;  %v876_v5 = vadd.f32 %v1498_v62, %v840_v11  ;;  %v903_v10 = vld [vmem:[%s1493_s25 + $0xb0] sm:$0xff] }
  0xcb   : > { %956 = vst [vmem:[%s1510_s13 + $0x58] sm:$0xff] %v924_v9  ;;  %v725_v15 = vpop.f32.mrf.mxu0  ;;  %v749_v16 = vpop.f32.mrf.mxu1  ;;  %v911_v11 = vld [vmem:[%s1493_s25 + $0xf0] sm:$0xff] }
  0xcc   : > { %v932_v17 = vadd.f32 %v900_v12, %v868_v14  ;;  %v940_v18 = vadd.f32 %v908_v13, %v876_v5  ;;  %v817_v19 = vmul.f32 %v1487_v60, %v725_v15  ;;  %v825_v20 = vmul.f32 %v1487_v60, %v749_v16 }
  0xce   : > { %964 = vst [vmem:[%s1510_s13 + $0x98] sm:$0xff] %v932_v17  ;;  %v853_v23 = vadd.f32 %v1498_v62, %v817_v19  ;;  %v861_v7 = vadd.f32 %v1498_v62, %v825_v20  ;;  %v888_v19 = vld [vmem:[%s1493_s25 + $0x38] sm:$0xff] }
  0xcf   : > { %972 = vst [vmem:[%s1510_s13 + $0xd8] sm:$0xff] %v940_v18  ;;  %v773_v24 = vpop.f32.mrf.mxu2  ;;  %v797_v25 = vpop.f32.mrf.mxu3  ;;  %v896_v20 = vld [vmem:[%s1493_s25 + $0x78] sm:$0xff] }
  0xd0   : > { %v917_v26 = vadd.f32 %v885_v21, %v853_v23  ;;  %v925_v27 = vadd.f32 %v893_v22, %v861_v7  ;;  %v833_v28 = vmul.f32 %v1487_v60, %v773_v24  ;;  %v841_v31 = vmul.f32 %v1487_v60, %v797_v25 }
  0xd2   : > { %949 = vst [vmem:[%s1510_s13 + $0x20] sm:$0xff] %v917_v26  ;;  %v869_v30 = vadd.f32 %v1498_v62, %v833_v28  ;;  %v877_v34 = vadd.f32 %v1498_v62, %v841_v31  ;;  %v904_v28 = vld [vmem:[%s1493_s25 + $0xb8] sm:$0xff] }
  0xd3   : > { %957 = vst [vmem:[%s1510_s13 + $0x60] sm:$0xff] %v925_v27  ;;  %v728_v35 = vpop.f32.mrf.mxu0  ;;  %v752_v37 = vpop.f32.mrf.mxu1  ;;  %v912_v31 = vld [vmem:[%s1493_s25 + $0xf8] sm:$0xff] }
  0xd4   : > { %v933_v38 = vadd.f32 %v901_v32, %v869_v30  ;;  %v941_v39 = vadd.f32 %v909_v33, %v877_v34  ;;  %v818_v40 = vmul.f32 %v1487_v60, %v728_v35  ;;  %v826_v41 = vmul.f32 %v1487_v60, %v752_v37 }
  0xd6   : > { %965 = vst [vmem:[%s1510_s13 + $0xa0] sm:$0xff] %v933_v38  ;;  %v854_v44 = vadd.f32 %v1498_v62, %v818_v40  ;;  %v862_v45 = vadd.f32 %v1498_v62, %v826_v41 }
  0xd7   : > { %973 = vst [vmem:[%s1510_s13 + $0xe0] sm:$0xff] %v941_v39  ;;  %v776_v46 = vpop.f32.mrf.mxu2  ;;  %v800_v29 = vpop.f32.mrf.mxu3 }
  0xd8   : > { %v918_v36 = vadd.f32 %v886_v42, %v854_v44  ;;  %v926_v47 = vadd.f32 %v894_v43, %v862_v45  ;;  %v834_v48 = vmul.f32 %v1487_v60, %v776_v46  ;;  %v842_v49 = vmul.f32 %v1487_v60, %v800_v29 }
  0xda   : > { %950 = vst [vmem:[%s1510_s13 + $0x28] sm:$0xff] %v918_v36  ;;  %v870_v52 = vadd.f32 %v1498_v62, %v834_v48  ;;  %v878_v53 = vadd.f32 %v1498_v62, %v842_v49 }
  0xdb   : > { %958 = vst [vmem:[%s1510_s13 + $0x68] sm:$0xff] %v926_v47  ;;  %v731_v54 = vpop.f32.mrf.mxu0  ;;  %v755_v55 = vpop.f32.mrf.mxu1 }
  0xdc   : > { %v934_v56 = vadd.f32 %v902_v50, %v870_v52  ;;  %v942_v57 = vadd.f32 %v910_v51, %v878_v53  ;;  %v819_v58 = vmul.f32 %v1487_v60, %v731_v54  ;;  %v827_v59 = vmul.f32 %v1487_v60, %v755_v55 }
  0xde   : > { %966 = vst [vmem:[%s1510_s13 + $0xa8] sm:$0xff] %v934_v56  ;;  %v855_v0 = vadd.f32 %v1498_v62, %v819_v58  ;;  %v863_v2 = vadd.f32 %v1498_v62, %v827_v59 }
  0xdf   : > { %974 = vst [vmem:[%s1510_s13 + $0xe8] sm:$0xff] %v942_v57  ;;  %v779_v3 = vpop.f32.mrf.mxu2  ;;  %v803_v4 = vpop.f32.mrf.mxu3 }
  0xe0   : > { %v919_v1 = vadd.f32 %v887_v61, %v855_v0  ;;  %v927_v6 = vadd.f32 %v895_v63, %v863_v2  ;;  %v835_v8 = vmul.f32 %v1487_v60, %v779_v3  ;;  %v843_v9 = vmul.f32 %v1487_v60, %v803_v4 }
  0xe2   : > { %951 = vst [vmem:[%s1510_s13 + $0x30] sm:$0xff] %v919_v1  ;;  %v871_v12 = vadd.f32 %v1498_v62, %v835_v8  ;;  %v879_v13 = vadd.f32 %v1498_v62, %v843_v9 }
  0xe3   : > { %959 = vst [vmem:[%s1510_s13 + $0x70] sm:$0xff] %v927_v6  ;;  %v734_v14 = vpop.f32.mrf.mxu0  ;;  %v758_v5 = vpop.f32.mrf.mxu1 }
  0xe4   : > { %v935_v15 = vadd.f32 %v903_v10, %v871_v12  ;;  %v943_v16 = vadd.f32 %v911_v11, %v879_v13  ;;  %v820_v17 = vmul.f32 %v1487_v60, %v734_v14  ;;  %v828_v18 = vmul.f32 %v1487_v60, %v758_v5 }
  0xe6   : > { %967 = vst [vmem:[%s1510_s13 + $0xb0] sm:$0xff] %v935_v15  ;;  %v856_v21 = vadd.f32 %v1498_v62, %v820_v17  ;;  %v864_v22 = vadd.f32 %v1498_v62, %v828_v18 }
  0xe7   : > { %975 = vst [vmem:[%s1510_s13 + $0xf0] sm:$0xff] %v943_v16  ;;  %v782_v23 = vpop.f32.mrf.mxu2  ;;  %v806_v7 = vpop.f32.mrf.mxu3 }
  0xe8   : > { %v920_v24 = vadd.f32 %v888_v19, %v856_v21  ;;  %v928_v25 = vadd.f32 %v896_v20, %v864_v22  ;;  %v836_v26 = vmul.f32 %v1487_v60, %v782_v23  ;;  %v844_v27 = vmul.f32 %v1487_v60, %v806_v7 }
  0xea   : > { %952 = vst [vmem:[%s1510_s13 + $0x38] sm:$0xff] %v920_v24  ;;  %v872_v32 = vadd.f32 %v1498_v62, %v836_v26  ;;  %v880_v33 = vadd.f32 %v1498_v62, %v844_v27 }
  0xeb   : > { %960 = vst [vmem:[%s1510_s13 + $0x78] sm:$0xff] %v928_v25 }
  0xec   : > { %v936_v30 = vadd.f32 %v904_v28, %v872_v32  ;;  %v944_v34 = vadd.f32 %v912_v31, %v880_v33 }
  0xee   : > { %968 = vst [vmem:[%s1510_s13 + $0xb8] sm:$0xff] %v936_v30 }
  0xef   : > { %976 = vst [vmem:[%s1510_s13 + $0xf8] sm:$0xff] %v944_v34 }
  0xf0 PF: > { %s18_s29 = sadd.s32 1, %s1198_s29   ;;  %s1652_s27 = smov %s1194_s28 }
  0xf1   : > { %p15_p5 = scmp.ge.s32.totalorder %s18_s29, 4   ;;  %s1653_s28 = smov %s1655_s30 }
  0xf3   :  { %17 = sbr.rel (!%p15_p5) target bundleno = 2 (0x2), region = 86 }

</bundles_post_ra>
